<compile_context>
chip_gen: v7x
topology: tpu7x:2x2x1
jax: 0.10.0
libtpu: 0.0.40
codegen_flags: <defaults>
</compile_context>

<pallas_src>
import functools

import jax
import jax.numpy as jnp
import numpy as np
from jax.experimental import pallas as pl
from jax.experimental.pallas import tpu as pltpu


# ----------------------------------------------------------------------------
# Config mirroring AirNet2d.__init__ (network_init)
# ----------------------------------------------------------------------------
FEATURE_CHANNELS = 1          # single 2D PET image
MID_CHANNELS = 8
NUM_SEQ_BLOCKS = 2
NUM_ITERS = 3
S_FACTOR = 1.0                # unused by the surrogate recon layer

_N_LAYERS = NUM_SEQ_BLOCKS + 2    # convs per ConvSequence
_EPS = 1e-6

assert FEATURE_CHANNELS == 1
assert FEATURE_CHANNELS + NUM_ITERS - 1 <= MID_CHANNELS


# ----------------------------------------------------------------------------
# In-kernel 3x3 conv (pad=1): one (Cp, 9*Cp) x (9*Cp, HW) MXU matmul.
# ----------------------------------------------------------------------------
def _conv3x3(h, w_mat, b_col, masks_ref, H, W, relu):
    """h: (Cp, HW) f32, w_mat: (Cp, 9*Cp) bf16, b_col: (Cp, 1) f32."""
    HW = H * W
    taps = []
    t = 0
    for dh in (-1, 0, 1):
        for dw in (-1, 0, 1):
            delta = dh * W + dw
            # shifted[c, idx] == h[c, idx + delta] (wrapped); wraps are zeroed
            # by the boundary mask below, so the net effect is zero padding.
            shifted = h if delta == 0 else pltpu.roll(h, (-delta) % HW, axis=1)
            if dh == 0 and dw == 0:
                taps.append(shifted)                  # center tap always valid
            else:
                taps.append(shifted * masks_ref[t])   # zero out-of-image taps
            t += 1
    patches = jnp.concatenate(taps, axis=0).astype(jnp.bfloat16)   # (9*Cp, HW)
    acc = jnp.dot(w_mat, patches, preferred_element_type=jnp.float32)
    acc = acc + b_col
    if relu:
        acc = jnp.maximum(acc, 0.0)
    return acc                                                     # (Cp, HW)


# ----------------------------------------------------------------------------
# Fused forward kernel: one batch element per grid step.
# ----------------------------------------------------------------------------
def _airnet_kernel(x0_ref, proj_ref, w_ref, b_ref, masks_ref,
                   x_out_ref, y_out_ref, *, H, W):
    HW = H * W
    Cp = MID_CHANNELS

    x = x0_ref[0]            # (1, HW) f32
    p = proj_ref[0]          # (1, HW) f32

    dense_rows = []
    y = x
    for i in range(NUM_ITERS):
        # ---- surrogate ReconLayer: y = "projection" of x (identity
        #      projector); x_1_2 = multiplicative EM-style correction.
        y = x
        x_1_2 = x * p * pl.reciprocal(x + jnp.float32(_EPS), approx=True)
        dense_rows.append(x_1_2)

        # ---- dense = cat(all x_1_2 so far), zero padded to Cp channel rows
        #      (padded weight columns are zero, so padding is exact).
        pieces = list(dense_rows)
        k = len(pieces)
        if k < Cp:
            pieces.append(jnp.zeros((Cp - k, HW), jnp.float32))
        h = jnp.concatenate(pieces, axis=0)                       # (Cp, HW)

        # ---- ConvSequence i: conv+ReLU, NUM_SEQ_BLOCKS x (conv+ReLU), conv
        for li in range(_N_LAYERS):
            lidx = i * _N_LAYERS + li
            h = _conv3x3(h, w_ref[lidx], b_ref[lidx], masks_ref, H, W,
                         relu=(li < _N_LAYERS - 1))

        # conv_seq output has 1 real channel (row 0); residual skip.
        x = h[0:1, :] + x_1_2

    x_out_ref[0] = x
    y_out_ref[0] = y


# ----------------------------------------------------------------------------
# Host-side packing helpers
# ----------------------------------------------------------------------------
def _make_tap_masks(H, W):
    """(9, Cp, H*W) f32 validity masks for the 3x3 taps (built once)."""
    HW = H * W
    rows = np.arange(HW) // W
    cols = np.arange(HW) % W
    m = []
    for dh in (-1, 0, 1):
        for dw in (-1, 0, 1):
            v = ((rows + dh >= 0) & (rows + dh < H) &
                 (cols + dw >= 0) & (cols + dw < W)).astype(np.float32)
            m.append(np.broadcast_to(v, (MID_CHANNELS, HW)))
    return jnp.asarray(np.stack(m, axis=0))


def pack_params(params):
    """Pack PyTorch-layout (OIHW) conv params into MXU-ready arrays.

    Returns:
      w_pack: (12, Cp, 9*Cp) bf16 with W[l, co, t*Cp + ci] = w[co, ci, kh, kw],
              t = kh*3 + kw, zero padded to Cp in/out channels.
      b_pack: (12, Cp, 1) f32.
    """
    Cp = MID_CHANNELS
    w_rows, b_rows = [], []
    for layer_params in params:
        for w, b in layer_params:
            cout, cin = int(w.shape[0]), int(w.shape[1])
            wp = jnp.zeros((Cp, Cp, 3, 3), jnp.float32).at[:cout, :cin].set(w)
            w_rows.append(jnp.transpose(wp, (0, 2, 3, 1)).reshape(Cp, 9 * Cp))
            bp = jnp.zeros((Cp,), jnp.float32).at[:cout].set(b)
            b_rows.append(bp.reshape(Cp, 1))
    return (jnp.stack(w_rows, axis=0).astype(jnp.bfloat16),
            jnp.stack(b_rows, axis=0))


def init_params(key):
    """Deterministic ConvSequence parameters in PyTorch OIHW layout."""
    params = []
    for i in range(NUM_ITERS):
        in_ch = FEATURE_CHANNELS + i
        shapes = [(MID_CHANNELS, in_ch, 3, 3)]
        shapes += [(MID_CHANNELS, MID_CHANNELS, 3, 3)] * NUM_SEQ_BLOCKS
        shapes += [(1, MID_CHANNELS, 3, 3)]
        layer_params = []
        for li, s in enumerate(shapes):
            kw = jax.random.fold_in(key, i * 100 + li * 2)
            kb = jax.random.fold_in(key, i * 100 + li * 2 + 1)
            w = 0.1 * jax.random.normal(kw, s, dtype=jnp.float32)
            b = 0.01 * jax.random.normal(kb, (s[0],), dtype=jnp.float32)
            layer_params.append((w, b))
        params.append(layer_params)
    return params


# ----------------------------------------------------------------------------
# AirNet2d forward (NCHW in / NCHW out, matching the PyTorch module)
# ----------------------------------------------------------------------------
def airnet2d_forward(x0_nchw, proj_nchw, listmode, packed_params):
    # TODO(synk): `listmode` is unused by the surrogate recon layer.
    del listmode
    w_pack, b_pack = packed_params
    N, C, H, W = x0_nchw.shape
    assert C == FEATURE_CHANNELS
    HW = H * W

    x0 = x0_nchw.reshape(N, C, HW).astype(jnp.float32)
    proj = proj_nchw.reshape(N, C, HW).astype(jnp.float32)
    masks = _make_tap_masks(H, W)

    kern = functools.partial(_airnet_kernel, H=H, W=W)
    out_sds = jax.ShapeDtypeStruct((N, 1, HW), jnp.float32)
    x_out, y_out = pl.pallas_call(
        kern,
        out_shape=(out_sds, out_sds),
        grid=(N,),
        in_specs=[
            pl.BlockSpec((1, 1, HW), lambda n: (n, 0, 0)),       # x0
            pl.BlockSpec((1, 1, HW), lambda n: (n, 0, 0)),       # projection
            pl.BlockSpec(w_pack.shape, lambda n: (0, 0, 0)),     # packed weights
            pl.BlockSpec(b_pack.shape, lambda n: (0, 0, 0)),     # packed biases
            pl.BlockSpec(masks.shape, lambda n: (0, 0, 0)),      # tap masks
        ],
        out_specs=(
            pl.BlockSpec((1, 1, HW), lambda n: (n, 0, 0)),
            pl.BlockSpec((1, 1, HW), lambda n: (n, 0, 0)),
        ),
        compiler_params=pltpu.CompilerParams(
            dimension_semantics=("parallel",)),
    )(x0, proj, w_pack, b_pack, masks)
    return x_out.reshape(N, 1, H, W), y_out.reshape(N, 1, H, W)


# ----------------------------------------------------------------------------
# Pure-JAX (XLA) f32 reference of the same forward, for the self-check.
# ----------------------------------------------------------------------------
def airnet2d_reference(x0_nchw, proj_nchw, params):
    x = x0_nchw.astype(jnp.float32)
    p = proj_nchw.astype(jnp.float32)
    dense = None
    y = x
    for i, layer_params in enumerate(params):
        y = x
        x_1_2 = x * p / (x + _EPS)
        dense = x_1_2 if i == 0 else jnp.concatenate([dense, x_1_2], axis=1)
        h = dense
        for li, (w, b) in enumerate(layer_params):
            h = jax.lax.conv_general_dilated(
                h, w, window_strides=(1, 1), padding="SAME",
                dimension_numbers=("NCHW", "OIHW", "NCHW"))
            h = h + b.reshape(1, -1, 1, 1)
            if li < len(layer_params) - 1:
                h = jnp.maximum(h, 0.0)
        x = h + x_1_2
    return x, y


if __name__ == "__main__":
    key = jax.random.PRNGKey(0)
    params = init_params(jax.random.fold_in(key, 1234))
    packed = pack_params(params)

    N, C, H, W = 2, FEATURE_CHANNELS, 16, 16
    kx, kp = jax.random.split(jax.random.fold_in(key, 7))
    x0 = jax.nn.softplus(jax.random.normal(kx, (N, C, H, W), jnp.float32))
    projection_data = jax.nn.softplus(
        jax.random.normal(kp, (N, C, H, W), jnp.float32))
    listmode = None     # TODO(synk): unused by the surrogate recon layer

    fwd = jax.jit(lambda a, b: airnet2d_forward(a, b, listmode, packed))
    x_out, y_out = fwd(x0, projection_data)
    jax.block_until_ready((x_out, y_out))

    assert x_out.shape == (N, 1, H, W), x_out.shape
    assert y_out.shape == (N, 1, H, W), y_out.shape
    assert bool(jnp.all(jnp.isfinite(x_out)))
    assert bool(jnp.all(jnp.isfinite(y_out)))

    # Numerical self-check against the pure-XLA f32 reference.  Mean-abs
    # metric (robust to the surrogate recon's x/(x+eps) sensitivity near 0)
    # with headroom for bf16 MXU inputs + approx reciprocal.
    x_ref, y_ref = jax.jit(
        lambda a, b: airnet2d_reference(a, b, params))(x0, projection_data)
    assert float(jnp.mean(jnp.abs(x_out - x_ref))) < 3e-2
    assert float(jnp.mean(jnp.abs(y_out - y_ref))) < 3e-2

    print("KERNEL_OK")
</pallas_src>

<mosaic_0001>
module attributes {stable_mosaic.version = 11 : i64} {
  func.func @_airnet_kernel(%arg0: i32, %arg1: memref<1x1x256xf32, #tpu.memory_space<vmem>>, %arg2: memref<1x1x256xf32, #tpu.memory_space<vmem>>, %arg3: memref<12x8x72xbf16, #tpu.memory_space<vmem>>, %arg4: memref<12x8x1xf32, #tpu.memory_space<vmem>>, %arg5: memref<9x8x256xf32, #tpu.memory_space<vmem>>, %arg6: memref<1x1x256xf32, #tpu.memory_space<vmem>>, %arg7: memref<1x1x256xf32, #tpu.memory_space<vmem>>) attributes {dimension_semantics = [#tpu.dimension_semantics<parallel>], iteration_bounds = array<i64: 2>, scalar_prefetch = 0 : i64, scratch_operands = 0 : i64, tpu.core_type = #tpu.core_type<tc>, window_params = [{transform_indices = @transform_0, window_bounds = array<i64: 1, 1, 256>}, {transform_indices = @transform_1, window_bounds = array<i64: 1, 1, 256>}, {pipeline_mode = #tpu.pipeline_mode<synchronous>, transform_indices = @transform_2, window_bounds = array<i64: 12, 8, 72>}, {pipeline_mode = #tpu.pipeline_mode<synchronous>, transform_indices = @transform_3, window_bounds = array<i64: 12, 8, 1>}, {pipeline_mode = #tpu.pipeline_mode<synchronous>, transform_indices = @transform_4, window_bounds = array<i64: 9, 8, 256>}, {transform_indices = @transform_5, window_bounds = array<i64: 1, 1, 256>}, {transform_indices = @transform_6, window_bounds = array<i64: 1, 1, 256>}]} {
    %c0 = arith.constant 0 : index
    %c0_0 = arith.constant 0 : index
    %c0_1 = arith.constant 0 : index
    %0 = vector.load %arg1[%c0, %c0_0, %c0_1] : memref<1x1x256xf32, #tpu.memory_space<vmem>>, vector<1x1x256xf32>
    %1 = vector.shape_cast %0 : vector<1x1x256xf32> to vector<1x256xf32>
    %c0_2 = arith.constant 0 : index
    %c0_3 = arith.constant 0 : index
    %c0_4 = arith.constant 0 : index
    %2 = vector.load %arg2[%c0_2, %c0_3, %c0_4] : memref<1x1x256xf32, #tpu.memory_space<vmem>>, vector<1x1x256xf32>
    %3 = vector.shape_cast %2 : vector<1x1x256xf32> to vector<1x256xf32>
    %4 = arith.mulf %1, %3 : vector<1x256xf32>
    %cst = arith.constant 9.99999997E-7 : f32
    %5 = vector.broadcast %cst : f32 to vector<1x256xf32>
    %6 = arith.addf %1, %5 : vector<1x256xf32>
    %7 = tpu.reciprocal %6 {approx = true} : vector<1x256xf32> -> vector<1x256xf32>
    %8 = arith.mulf %4, %7 : vector<1x256xf32>
    %cst_5 = arith.constant 0.000000e+00 : f32
    %9 = vector.broadcast %cst_5 : f32 to vector<7x256xf32>
    %10 = tpu.concatenate %8, %9 in 0 : vector<1x256xf32>, vector<7x256xf32> -> vector<8x256xf32>
    %c0_6 = arith.constant 0 : index
    %c0_7 = arith.constant 0 : index
    %c0_8 = arith.constant 0 : index
    %11 = vector.load %arg3[%c0_6, %c0_7, %c0_8] : memref<12x8x72xbf16, #tpu.memory_space<vmem>>, vector<1x8x72xbf16>
    %12 = vector.shape_cast %11 : vector<1x8x72xbf16> to vector<8x72xbf16>
    %c0_9 = arith.constant 0 : index
    %c0_10 = arith.constant 0 : index
    %c0_11 = arith.constant 0 : index
    %13 = vector.load %arg4[%c0_9, %c0_10, %c0_11] : memref<12x8x1xf32, #tpu.memory_space<vmem>>, vector<1x8x1xf32>
    %14 = vector.shape_cast %13 : vector<1x8x1xf32> to vector<8x1xf32>
    %c17_i32 = arith.constant 17 : i32
    %15 = tpu.dynamic_rotate %10 by %c17_i32 dim 1 : vector<8x256xf32>, i32 -> vector<8x256xf32>
    %c0_12 = arith.constant 0 : index
    %c0_13 = arith.constant 0 : index
    %c0_14 = arith.constant 0 : index
    %16 = vector.load %arg5[%c0_12, %c0_13, %c0_14] : memref<9x8x256xf32, #tpu.memory_space<vmem>>, vector<1x8x256xf32>
    %17 = vector.shape_cast %16 : vector<1x8x256xf32> to vector<8x256xf32>
    %18 = arith.mulf %15, %17 : vector<8x256xf32>
    %c16_i32 = arith.constant 16 : i32
    %19 = tpu.dynamic_rotate %10 by %c16_i32 dim 1 : vector<8x256xf32>, i32 -> vector<8x256xf32>
    %c1 = arith.constant 1 : index
    %c0_15 = arith.constant 0 : index
    %c0_16 = arith.constant 0 : index
    %20 = vector.load %arg5[%c1, %c0_15, %c0_16] : memref<9x8x256xf32, #tpu.memory_space<vmem>>, vector<1x8x256xf32>
    %21 = vector.shape_cast %20 : vector<1x8x256xf32> to vector<8x256xf32>
    %22 = arith.mulf %19, %21 : vector<8x256xf32>
    %c15_i32 = arith.constant 15 : i32
    %23 = tpu.dynamic_rotate %10 by %c15_i32 dim 1 : vector<8x256xf32>, i32 -> vector<8x256xf32>
    %c2 = arith.constant 2 : index
    %c0_17 = arith.constant 0 : index
    %c0_18 = arith.constant 0 : index
    %24 = vector.load %arg5[%c2, %c0_17, %c0_18] : memref<9x8x256xf32, #tpu.memory_space<vmem>>, vector<1x8x256xf32>
    %25 = vector.shape_cast %24 : vector<1x8x256xf32> to vector<8x256xf32>
    %26 = arith.mulf %23, %25 : vector<8x256xf32>
    %c1_i32 = arith.constant 1 : i32
    %27 = tpu.dynamic_rotate %10 by %c1_i32 dim 1 : vector<8x256xf32>, i32 -> vector<8x256xf32>
    %c3 = arith.constant 3 : index
    %c0_19 = arith.constant 0 : index
    %c0_20 = arith.constant 0 : index
    %28 = vector.load %arg5[%c3, %c0_19, %c0_20] : memref<9x8x256xf32, #tpu.memory_space<vmem>>, vector<1x8x256xf32>
    %29 = vector.shape_cast %28 : vector<1x8x256xf32> to vector<8x256xf32>
    %30 = arith.mulf %27, %29 : vector<8x256xf32>
    %c255_i32 = arith.constant 255 : i32
    %31 = tpu.dynamic_rotate %10 by %c255_i32 dim 1 : vector<8x256xf32>, i32 -> vector<8x256xf32>
    %c5 = arith.constant 5 : index
    %c0_21 = arith.constant 0 : index
    %c0_22 = arith.constant 0 : index
    %32 = vector.load %arg5[%c5, %c0_21, %c0_22] : memref<9x8x256xf32, #tpu.memory_space<vmem>>, vector<1x8x256xf32>
    %33 = vector.shape_cast %32 : vector<1x8x256xf32> to vector<8x256xf32>
    %34 = arith.mulf %31, %33 : vector<8x256xf32>
    %c241_i32 = arith.constant 241 : i32
    %35 = tpu.dynamic_rotate %10 by %c241_i32 dim 1 : vector<8x256xf32>, i32 -> vector<8x256xf32>
    %c6 = arith.constant 6 : index
    %c0_23 = arith.constant 0 : index
    %c0_24 = arith.constant 0 : index
    %36 = vector.load %arg5[%c6, %c0_23, %c0_24] : memref<9x8x256xf32, #tpu.memory_space<vmem>>, vector<1x8x256xf32>
    %37 = vector.shape_cast %36 : vector<1x8x256xf32> to vector<8x256xf32>
    %38 = arith.mulf %35, %37 : vector<8x256xf32>
    %c240_i32 = arith.constant 240 : i32
    %39 = tpu.dynamic_rotate %10 by %c240_i32 dim 1 : vector<8x256xf32>, i32 -> vector<8x256xf32>
    %c7 = arith.constant 7 : index
    %c0_25 = arith.constant 0 : index
    %c0_26 = arith.constant 0 : index
    %40 = vector.load %arg5[%c7, %c0_25, %c0_26] : memref<9x8x256xf32, #tpu.memory_space<vmem>>, vector<1x8x256xf32>
    %41 = vector.shape_cast %40 : vector<1x8x256xf32> to vector<8x256xf32>
    %42 = arith.mulf %39, %41 : vector<8x256xf32>
    %c239_i32 = arith.constant 239 : i32
    %43 = tpu.dynamic_rotate %10 by %c239_i32 dim 1 : vector<8x256xf32>, i32 -> vector<8x256xf32>
    %c8 = arith.constant 8 : index
    %c0_27 = arith.constant 0 : index
    %c0_28 = arith.constant 0 : index
    %44 = vector.load %arg5[%c8, %c0_27, %c0_28] : memref<9x8x256xf32, #tpu.memory_space<vmem>>, vector<1x8x256xf32>
    %45 = vector.shape_cast %44 : vector<1x8x256xf32> to vector<8x256xf32>
    %46 = arith.mulf %43, %45 : vector<8x256xf32>
    %47 = tpu.concatenate %18, %22, %26, %30, %10, %34, %38, %42, %46 in 0 : vector<8x256xf32>, vector<8x256xf32>, vector<8x256xf32>, vector<8x256xf32>, vector<8x256xf32>, vector<8x256xf32>, vector<8x256xf32>, vector<8x256xf32>, vector<8x256xf32> -> vector<72x256xf32>
    %48 = arith.truncf %47 : vector<72x256xf32> to vector<72x256xbf16>
    %cst_29 = arith.constant dense<0.000000e+00> : vector<8x256xf32>
    %49 = tpu.matmul %12, %48, %cst_29 {dimension_numbers = #tpu.dot_dimension_numbers<[1], [0], [0], [1], [0, 0, 1, 1], [], []>} : vector<8x72xbf16>, vector<72x256xbf16>, vector<8x256xf32> -> vector<8x256xf32>
    %50 = vector.broadcast %14 : vector<8x1xf32> to vector<8x256xf32>
    %51 = arith.addf %49, %50 : vector<8x256xf32>
    %cst_30 = arith.constant 0.000000e+00 : f32
    %52 = vector.broadcast %cst_30 : f32 to vector<8x256xf32>
    %53 = arith.maximumf %51, %52 : vector<8x256xf32>
    %c1_31 = arith.constant 1 : index
    %c0_32 = arith.constant 0 : index
    %c0_33 = arith.constant 0 : index
    %54 = vector.load %arg3[%c1_31, %c0_32, %c0_33] : memref<12x8x72xbf16, #tpu.memory_space<vmem>>, vector<1x8x72xbf16>
    %55 = vector.shape_cast %54 : vector<1x8x72xbf16> to vector<8x72xbf16>
    %c1_34 = arith.constant 1 : index
    %c0_35 = arith.constant 0 : index
    %c0_36 = arith.constant 0 : index
    %56 = vector.load %arg4[%c1_34, %c0_35, %c0_36] : memref<12x8x1xf32, #tpu.memory_space<vmem>>, vector<1x8x1xf32>
    %57 = vector.shape_cast %56 : vector<1x8x1xf32> to vector<8x1xf32>
    %c17_i32_37 = arith.constant 17 : i32
    %58 = tpu.dynamic_rotate %53 by %c17_i32_37 dim 1 : vector<8x256xf32>, i32 -> vector<8x256xf32>
    %c0_38 = arith.constant 0 : index
    %c0_39 = arith.constant 0 : index
    %c0_40 = arith.constant 0 : index
    %59 = vector.load %arg5[%c0_38, %c0_39, %c0_40] : memref<9x8x256xf32, #tpu.memory_space<vmem>>, vector<1x8x256xf32>
    %60 = vector.shape_cast %59 : vector<1x8x256xf32> to vector<8x256xf32>
    %61 = arith.mulf %58, %60 : vector<8x256xf32>
    %c16_i32_41 = arith.constant 16 : i32
    %62 = tpu.dynamic_rotate %53 by %c16_i32_41 dim 1 : vector<8x256xf32>, i32 -> vector<8x256xf32>
    %c1_42 = arith.constant 1 : index
    %c0_43 = arith.constant 0 : index
    %c0_44 = arith.constant 0 : index
    %63 = vector.load %arg5[%c1_42, %c0_43, %c0_44] : memref<9x8x256xf32, #tpu.memory_space<vmem>>, vector<1x8x256xf32>
    %64 = vector.shape_cast %63 : vector<1x8x256xf32> to vector<8x256xf32>
    %65 = arith.mulf %62, %64 : vector<8x256xf32>
    %c15_i32_45 = arith.constant 15 : i32
    %66 = tpu.dynamic_rotate %53 by %c15_i32_45 dim 1 : vector<8x256xf32>, i32 -> vector<8x256xf32>
    %c2_46 = arith.constant 2 : index
    %c0_47 = arith.constant 0 : index
    %c0_48 = arith.constant 0 : index
    %67 = vector.load %arg5[%c2_46, %c0_47, %c0_48] : memref<9x8x256xf32, #tpu.memory_space<vmem>>, vector<1x8x256xf32>
    %68 = vector.shape_cast %67 : vector<1x8x256xf32> to vector<8x256xf32>
    %69 = arith.mulf %66, %68 : vector<8x256xf32>
    %c1_i32_49 = arith.constant 1 : i32
    %70 = tpu.dynamic_rotate %53 by %c1_i32_49 dim 1 : vector<8x256xf32>, i32 -> vector<8x256xf32>
    %c3_50 = arith.constant 3 : index
    %c0_51 = arith.constant 0 : index
    %c0_52 = arith.constant 0 : index
    %71 = vector.load %arg5[%c3_50, %c0_51, %c0_52] : memref<9x8x256xf32, #tpu.memory_space<vmem>>, vector<1x8x256xf32>
    %72 = vector.shape_cast %71 : vector<1x8x256xf32> to vector<8x256xf32>
    %73 = arith.mulf %70, %72 : vector<8x256xf32>
    %c255_i32_53 = arith.constant 255 : i32
    %74 = tpu.dynamic_rotate %53 by %c255_i32_53 dim 1 : vector<8x256xf32>, i32 -> vector<8x256xf32>
    %c5_54 = arith.constant 5 : index
    %c0_55 = arith.constant 0 : index
    %c0_56 = arith.constant 0 : index
    %75 = vector.load %arg5[%c5_54, %c0_55, %c0_56] : memref<9x8x256xf32, #tpu.memory_space<vmem>>, vector<1x8x256xf32>
    %76 = vector.shape_cast %75 : vector<1x8x256xf32> to vector<8x256xf32>
    %77 = arith.mulf %74, %76 : vector<8x256xf32>
    %c241_i32_57 = arith.constant 241 : i32
    %78 = tpu.dynamic_rotate %53 by %c241_i32_57 dim 1 : vector<8x256xf32>, i32 -> vector<8x256xf32>
    %c6_58 = arith.constant 6 : index
    %c0_59 = arith.constant 0 : index
    %c0_60 = arith.constant 0 : index
    %79 = vector.load %arg5[%c6_58, %c0_59, %c0_60] : memref<9x8x256xf32, #tpu.memory_space<vmem>>, vector<1x8x256xf32>
    %80 = vector.shape_cast %79 : vector<1x8x256xf32> to vector<8x256xf32>
    %81 = arith.mulf %78, %80 : vector<8x256xf32>
    %c240_i32_61 = arith.constant 240 : i32
    %82 = tpu.dynamic_rotate %53 by %c240_i32_61 dim 1 : vector<8x256xf32>, i32 -> vector<8x256xf32>
    %c7_62 = arith.constant 7 : index
    %c0_63 = arith.constant 0 : index
    %c0_64 = arith.constant 0 : index
    %83 = vector.load %arg5[%c7_62, %c0_63, %c0_64] : memref<9x8x256xf32, #tpu.memory_space<vmem>>, vector<1x8x256xf32>
    %84 = vector.shape_cast %83 : vector<1x8x256xf32> to vector<8x256xf32>
    %85 = arith.mulf %82, %84 : vector<8x256xf32>
    %c239_i32_65 = arith.constant 239 : i32
    %86 = tpu.dynamic_rotate %53 by %c239_i32_65 dim 1 : vector<8x256xf32>, i32 -> vector<8x256xf32>
    %c8_66 = arith.constant 8 : index
    %c0_67 = arith.constant 0 : index
    %c0_68 = arith.constant 0 : index
    %87 = vector.load %arg5[%c8_66, %c0_67, %c0_68] : memref<9x8x256xf32, #tpu.memory_space<vmem>>, vector<1x8x256xf32>
    %88 = vector.shape_cast %87 : vector<1x8x256xf32> to vector<8x256xf32>
    %89 = arith.mulf %86, %88 : vector<8x256xf32>
    %90 = tpu.concatenate %61, %65, %69, %73, %53, %77, %81, %85, %89 in 0 : vector<8x256xf32>, vector<8x256xf32>, vector<8x256xf32>, vector<8x256xf32>, vector<8x256xf32>, vector<8x256xf32>, vector<8x256xf32>, vector<8x256xf32>, vector<8x256xf32> -> vector<72x256xf32>
    %91 = arith.truncf %90 : vector<72x256xf32> to vector<72x256xbf16>
    %cst_69 = arith.constant dense<0.000000e+00> : vector<8x256xf32>
    %92 = tpu.matmul %55, %91, %cst_69 {dimension_numbers = #tpu.dot_dimension_numbers<[1], [0], [0], [1], [0, 0, 1, 1], [], []>} : vector<8x72xbf16>, vector<72x256xbf16>, vector<8x256xf32> -> vector<8x256xf32>
    %93 = vector.broadcast %57 : vector<8x1xf32> to vector<8x256xf32>
    %94 = arith.addf %92, %93 : vector<8x256xf32>
    %cst_70 = arith.constant 0.000000e+00 : f32
    %95 = vector.broadcast %cst_70 : f32 to vector<8x256xf32>
    %96 = arith.maximumf %94, %95 : vector<8x256xf32>
    %c2_71 = arith.constant 2 : index
    %c0_72 = arith.constant 0 : index
    %c0_73 = arith.constant 0 : index
    %97 = vector.load %arg3[%c2_71, %c0_72, %c0_73] : memref<12x8x72xbf16, #tpu.memory_space<vmem>>, vector<1x8x72xbf16>
    %98 = vector.shape_cast %97 : vector<1x8x72xbf16> to vector<8x72xbf16>
    %c2_74 = arith.constant 2 : index
    %c0_75 = arith.constant 0 : index
    %c0_76 = arith.constant 0 : index
    %99 = vector.load %arg4[%c2_74, %c0_75, %c0_76] : memref<12x8x1xf32, #tpu.memory_space<vmem>>, vector<1x8x1xf32>
    %100 = vector.shape_cast %99 : vector<1x8x1xf32> to vector<8x1xf32>
    %c17_i32_77 = arith.constant 17 : i32
    %101 = tpu.dynamic_rotate %96 by %c17_i32_77 dim 1 : vector<8x256xf32>, i32 -> vector<8x256xf32>
    %c0_78 = arith.constant 0 : index
    %c0_79 = arith.constant 0 : index
    %c0_80 = arith.constant 0 : index
    %102 = vector.load %arg5[%c0_78, %c0_79, %c0_80] : memref<9x8x256xf32, #tpu.memory_space<vmem>>, vector<1x8x256xf32>
    %103 = vector.shape_cast %102 : vector<1x8x256xf32> to vector<8x256xf32>
    %104 = arith.mulf %101, %103 : vector<8x256xf32>
    %c16_i32_81 = arith.constant 16 : i32
    %105 = tpu.dynamic_rotate %96 by %c16_i32_81 dim 1 : vector<8x256xf32>, i32 -> vector<8x256xf32>
    %c1_82 = arith.constant 1 : index
    %c0_83 = arith.constant 0 : index
    %c0_84 = arith.constant 0 : index
    %106 = vector.load %arg5[%c1_82, %c0_83, %c0_84] : memref<9x8x256xf32, #tpu.memory_space<vmem>>, vector<1x8x256xf32>
    %107 = vector.shape_cast %106 : vector<1x8x256xf32> to vector<8x256xf32>
    %108 = arith.mulf %105, %107 : vector<8x256xf32>
    %c15_i32_85 = arith.constant 15 : i32
    %109 = tpu.dynamic_rotate %96 by %c15_i32_85 dim 1 : vector<8x256xf32>, i32 -> vector<8x256xf32>
    %c2_86 = arith.constant 2 : index
    %c0_87 = arith.constant 0 : index
    %c0_88 = arith.constant 0 : index
    %110 = vector.load %arg5[%c2_86, %c0_87, %c0_88] : memref<9x8x256xf32, #tpu.memory_space<vmem>>, vector<1x8x256xf32>
    %111 = vector.shape_cast %110 : vector<1x8x256xf32> to vector<8x256xf32>
    %112 = arith.mulf %109, %111 : vector<8x256xf32>
    %c1_i32_89 = arith.constant 1 : i32
    %113 = tpu.dynamic_rotate %96 by %c1_i32_89 dim 1 : vector<8x256xf32>, i32 -> vector<8x256xf32>
    %c3_90 = arith.constant 3 : index
    %c0_91 = arith.constant 0 : index
    %c0_92 = arith.constant 0 : index
    %114 = vector.load %arg5[%c3_90, %c0_91, %c0_92] : memref<9x8x256xf32, #tpu.memory_space<vmem>>, vector<1x8x256xf32>
    %115 = vector.shape_cast %114 : vector<1x8x256xf32> to vector<8x256xf32>
    %116 = arith.mulf %113, %115 : vector<8x256xf32>
    %c255_i32_93 = arith.constant 255 : i32
    %117 = tpu.dynamic_rotate %96 by %c255_i32_93 dim 1 : vector<8x256xf32>, i32 -> vector<8x256xf32>
    %c5_94 = arith.constant 5 : index
    %c0_95 = arith.constant 0 : index
    %c0_96 = arith.constant 0 : index
    %118 = vector.load %arg5[%c5_94, %c0_95, %c0_96] : memref<9x8x256xf32, #tpu.memory_space<vmem>>, vector<1x8x256xf32>
    %119 = vector.shape_cast %118 : vector<1x8x256xf32> to vector<8x256xf32>
    %120 = arith.mulf %117, %119 : vector<8x256xf32>
    %c241_i32_97 = arith.constant 241 : i32
    %121 = tpu.dynamic_rotate %96 by %c241_i32_97 dim 1 : vector<8x256xf32>, i32 -> vector<8x256xf32>
    %c6_98 = arith.constant 6 : index
    %c0_99 = arith.constant 0 : index
    %c0_100 = arith.constant 0 : index
    %122 = vector.load %arg5[%c6_98, %c0_99, %c0_100] : memref<9x8x256xf32, #tpu.memory_space<vmem>>, vector<1x8x256xf32>
    %123 = vector.shape_cast %122 : vector<1x8x256xf32> to vector<8x256xf32>
    %124 = arith.mulf %121, %123 : vector<8x256xf32>
    %c240_i32_101 = arith.constant 240 : i32
    %125 = tpu.dynamic_rotate %96 by %c240_i32_101 dim 1 : vector<8x256xf32>, i32 -> vector<8x256xf32>
    %c7_102 = arith.constant 7 : index
    %c0_103 = arith.constant 0 : index
    %c0_104 = arith.constant 0 : index
    %126 = vector.load %arg5[%c7_102, %c0_103, %c0_104] : memref<9x8x256xf32, #tpu.memory_space<vmem>>, vector<1x8x256xf32>
    %127 = vector.shape_cast %126 : vector<1x8x256xf32> to vector<8x256xf32>
    %128 = arith.mulf %125, %127 : vector<8x256xf32>
    %c239_i32_105 = arith.constant 239 : i32
    %129 = tpu.dynamic_rotate %96 by %c239_i32_105 dim 1 : vector<8x256xf32>, i32 -> vector<8x256xf32>
    %c8_106 = arith.constant 8 : index
    %c0_107 = arith.constant 0 : index
    %c0_108 = arith.constant 0 : index
    %130 = vector.load %arg5[%c8_106, %c0_107, %c0_108] : memref<9x8x256xf32, #tpu.memory_space<vmem>>, vector<1x8x256xf32>
    %131 = vector.shape_cast %130 : vector<1x8x256xf32> to vector<8x256xf32>
    %132 = arith.mulf %129, %131 : vector<8x256xf32>
    %133 = tpu.concatenate %104, %108, %112, %116, %96, %120, %124, %128, %132 in 0 : vector<8x256xf32>, vector<8x256xf32>, vector<8x256xf32>, vector<8x256xf32>, vector<8x256xf32>, vector<8x256xf32>, vector<8x256xf32>, vector<8x256xf32>, vector<8x256xf32> -> vector<72x256xf32>
    %134 = arith.truncf %133 : vector<72x256xf32> to vector<72x256xbf16>
    %cst_109 = arith.constant dense<0.000000e+00> : vector<8x256xf32>
    %135 = tpu.matmul %98, %134, %cst_109 {dimension_numbers = #tpu.dot_dimension_numbers<[1], [0], [0], [1], [0, 0, 1, 1], [], []>} : vector<8x72xbf16>, vector<72x256xbf16>, vector<8x256xf32> -> vector<8x256xf32>
    %136 = vector.broadcast %100 : vector<8x1xf32> to vector<8x256xf32>
    %137 = arith.addf %135, %136 : vector<8x256xf32>
    %cst_110 = arith.constant 0.000000e+00 : f32
    %138 = vector.broadcast %cst_110 : f32 to vector<8x256xf32>
    %139 = arith.maximumf %137, %138 : vector<8x256xf32>
    %c3_111 = arith.constant 3 : index
    %c0_112 = arith.constant 0 : index
    %c0_113 = arith.constant 0 : index
    %140 = vector.load %arg3[%c3_111, %c0_112, %c0_113] : memref<12x8x72xbf16, #tpu.memory_space<vmem>>, vector<1x8x72xbf16>
    %141 = vector.shape_cast %140 : vector<1x8x72xbf16> to vector<8x72xbf16>
    %c3_114 = arith.constant 3 : index
    %c0_115 = arith.constant 0 : index
    %c0_116 = arith.constant 0 : index
    %142 = vector.load %arg4[%c3_114, %c0_115, %c0_116] : memref<12x8x1xf32, #tpu.memory_space<vmem>>, vector<1x8x1xf32>
    %143 = vector.shape_cast %142 : vector<1x8x1xf32> to vector<8x1xf32>
    %c17_i32_117 = arith.constant 17 : i32
    %144 = tpu.dynamic_rotate %139 by %c17_i32_117 dim 1 : vector<8x256xf32>, i32 -> vector<8x256xf32>
    %c0_118 = arith.constant 0 : index
    %c0_119 = arith.constant 0 : index
    %c0_120 = arith.constant 0 : index
    %145 = vector.load %arg5[%c0_118, %c0_119, %c0_120] : memref<9x8x256xf32, #tpu.memory_space<vmem>>, vector<1x8x256xf32>
    %146 = vector.shape_cast %145 : vector<1x8x256xf32> to vector<8x256xf32>
    %147 = arith.mulf %144, %146 : vector<8x256xf32>
    %c16_i32_121 = arith.constant 16 : i32
    %148 = tpu.dynamic_rotate %139 by %c16_i32_121 dim 1 : vector<8x256xf32>, i32 -> vector<8x256xf32>
    %c1_122 = arith.constant 1 : index
    %c0_123 = arith.constant 0 : index
    %c0_124 = arith.constant 0 : index
    %149 = vector.load %arg5[%c1_122, %c0_123, %c0_124] : memref<9x8x256xf32, #tpu.memory_space<vmem>>, vector<1x8x256xf32>
    %150 = vector.shape_cast %149 : vector<1x8x256xf32> to vector<8x256xf32>
    %151 = arith.mulf %148, %150 : vector<8x256xf32>
    %c15_i32_125 = arith.constant 15 : i32
    %152 = tpu.dynamic_rotate %139 by %c15_i32_125 dim 1 : vector<8x256xf32>, i32 -> vector<8x256xf32>
    %c2_126 = arith.constant 2 : index
    %c0_127 = arith.constant 0 : index
    %c0_128 = arith.constant 0 : index
    %153 = vector.load %arg5[%c2_126, %c0_127, %c0_128] : memref<9x8x256xf32, #tpu.memory_space<vmem>>, vector<1x8x256xf32>
    %154 = vector.shape_cast %153 : vector<1x8x256xf32> to vector<8x256xf32>
    %155 = arith.mulf %152, %154 : vector<8x256xf32>
    %c1_i32_129 = arith.constant 1 : i32
    %156 = tpu.dynamic_rotate %139 by %c1_i32_129 dim 1 : vector<8x256xf32>, i32 -> vector<8x256xf32>
    %c3_130 = arith.constant 3 : index
    %c0_131 = arith.constant 0 : index
    %c0_132 = arith.constant 0 : index
    %157 = vector.load %arg5[%c3_130, %c0_131, %c0_132] : memref<9x8x256xf32, #tpu.memory_space<vmem>>, vector<1x8x256xf32>
    %158 = vector.shape_cast %157 : vector<1x8x256xf32> to vector<8x256xf32>
    %159 = arith.mulf %156, %158 : vector<8x256xf32>
    %c255_i32_133 = arith.constant 255 : i32
    %160 = tpu.dynamic_rotate %139 by %c255_i32_133 dim 1 : vector<8x256xf32>, i32 -> vector<8x256xf32>
    %c5_134 = arith.constant 5 : index
    %c0_135 = arith.constant 0 : index
    %c0_136 = arith.constant 0 : index
    %161 = vector.load %arg5[%c5_134, %c0_135, %c0_136] : memref<9x8x256xf32, #tpu.memory_space<vmem>>, vector<1x8x256xf32>
    %162 = vector.shape_cast %161 : vector<1x8x256xf32> to vector<8x256xf32>
    %163 = arith.mulf %160, %162 : vector<8x256xf32>
    %c241_i32_137 = arith.constant 241 : i32
    %164 = tpu.dynamic_rotate %139 by %c241_i32_137 dim 1 : vector<8x256xf32>, i32 -> vector<8x256xf32>
    %c6_138 = arith.constant 6 : index
    %c0_139 = arith.constant 0 : index
    %c0_140 = arith.constant 0 : index
    %165 = vector.load %arg5[%c6_138, %c0_139, %c0_140] : memref<9x8x256xf32, #tpu.memory_space<vmem>>, vector<1x8x256xf32>
    %166 = vector.shape_cast %165 : vector<1x8x256xf32> to vector<8x256xf32>
    %167 = arith.mulf %164, %166 : vector<8x256xf32>
    %c240_i32_141 = arith.constant 240 : i32
    %168 = tpu.dynamic_rotate %139 by %c240_i32_141 dim 1 : vector<8x256xf32>, i32 -> vector<8x256xf32>
    %c7_142 = arith.constant 7 : index
    %c0_143 = arith.constant 0 : index
    %c0_144 = arith.constant 0 : index
    %169 = vector.load %arg5[%c7_142, %c0_143, %c0_144] : memref<9x8x256xf32, #tpu.memory_space<vmem>>, vector<1x8x256xf32>
    %170 = vector.shape_cast %169 : vector<1x8x256xf32> to vector<8x256xf32>
    %171 = arith.mulf %168, %170 : vector<8x256xf32>
    %c239_i32_145 = arith.constant 239 : i32
    %172 = tpu.dynamic_rotate %139 by %c239_i32_145 dim 1 : vector<8x256xf32>, i32 -> vector<8x256xf32>
    %c8_146 = arith.constant 8 : index
    %c0_147 = arith.constant 0 : index
    %c0_148 = arith.constant 0 : index
    %173 = vector.load %arg5[%c8_146, %c0_147, %c0_148] : memref<9x8x256xf32, #tpu.memory_space<vmem>>, vector<1x8x256xf32>
    %174 = vector.shape_cast %173 : vector<1x8x256xf32> to vector<8x256xf32>
    %175 = arith.mulf %172, %174 : vector<8x256xf32>
    %176 = tpu.concatenate %147, %151, %155, %159, %139, %163, %167, %171, %175 in 0 : vector<8x256xf32>, vector<8x256xf32>, vector<8x256xf32>, vector<8x256xf32>, vector<8x256xf32>, vector<8x256xf32>, vector<8x256xf32>, vector<8x256xf32>, vector<8x256xf32> -> vector<72x256xf32>
    %177 = arith.truncf %176 : vector<72x256xf32> to vector<72x256xbf16>
    %cst_149 = arith.constant dense<0.000000e+00> : vector<8x256xf32>
    %178 = tpu.matmul %141, %177, %cst_149 {dimension_numbers = #tpu.dot_dimension_numbers<[1], [0], [0], [1], [0, 0, 1, 1], [], []>} : vector<8x72xbf16>, vector<72x256xbf16>, vector<8x256xf32> -> vector<8x256xf32>
    %179 = vector.broadcast %143 : vector<8x1xf32> to vector<8x256xf32>
    %180 = arith.addf %178, %179 : vector<8x256xf32>
    %181 = vector.extract_strided_slice %180 {offsets = [0, 0], sizes = [1, 256], strides = [1, 1]} : vector<8x256xf32> to vector<1x256xf32>
    %182 = arith.addf %181, %8 : vector<1x256xf32>
    %183 = arith.mulf %182, %3 : vector<1x256xf32>
    %cst_150 = arith.constant 9.99999997E-7 : f32
    %184 = vector.broadcast %cst_150 : f32 to vector<1x256xf32>
    %185 = arith.addf %182, %184 : vector<1x256xf32>
    %186 = tpu.reciprocal %185 {approx = true} : vector<1x256xf32> -> vector<1x256xf32>
    %187 = arith.mulf %183, %186 : vector<1x256xf32>
    %cst_151 = arith.constant 0.000000e+00 : f32
    %188 = vector.broadcast %cst_151 : f32 to vector<6x256xf32>
    %189 = tpu.concatenate %8, %187, %188 in 0 : vector<1x256xf32>, vector<1x256xf32>, vector<6x256xf32> -> vector<8x256xf32>
    %c4 = arith.constant 4 : index
    %c0_152 = arith.constant 0 : index
    %c0_153 = arith.constant 0 : index
    %190 = vector.load %arg3[%c4, %c0_152, %c0_153] : memref<12x8x72xbf16, #tpu.memory_space<vmem>>, vector<1x8x72xbf16>
    %191 = vector.shape_cast %190 : vector<1x8x72xbf16> to vector<8x72xbf16>
    %c4_154 = arith.constant 4 : index
    %c0_155 = arith.constant 0 : index
    %c0_156 = arith.constant 0 : index
    %192 = vector.load %arg4[%c4_154, %c0_155, %c0_156] : memref<12x8x1xf32, #tpu.memory_space<vmem>>, vector<1x8x1xf32>
    %193 = vector.shape_cast %192 : vector<1x8x1xf32> to vector<8x1xf32>
    %c17_i32_157 = arith.constant 17 : i32
    %194 = tpu.dynamic_rotate %189 by %c17_i32_157 dim 1 : vector<8x256xf32>, i32 -> vector<8x256xf32>
    %c0_158 = arith.constant 0 : index
    %c0_159 = arith.constant 0 : index
    %c0_160 = arith.constant 0 : index
    %195 = vector.load %arg5[%c0_158, %c0_159, %c0_160] : memref<9x8x256xf32, #tpu.memory_space<vmem>>, vector<1x8x256xf32>
    %196 = vector.shape_cast %195 : vector<1x8x256xf32> to vector<8x256xf32>
    %197 = arith.mulf %194, %196 : vector<8x256xf32>
    %c16_i32_161 = arith.constant 16 : i32
    %198 = tpu.dynamic_rotate %189 by %c16_i32_161 dim 1 : vector<8x256xf32>, i32 -> vector<8x256xf32>
    %c1_162 = arith.constant 1 : index
    %c0_163 = arith.constant 0 : index
    %c0_164 = arith.constant 0 : index
    %199 = vector.load %arg5[%c1_162, %c0_163, %c0_164] : memref<9x8x256xf32, #tpu.memory_space<vmem>>, vector<1x8x256xf32>
    %200 = vector.shape_cast %199 : vector<1x8x256xf32> to vector<8x256xf32>
    %201 = arith.mulf %198, %200 : vector<8x256xf32>
    %c15_i32_165 = arith.constant 15 : i32
    %202 = tpu.dynamic_rotate %189 by %c15_i32_165 dim 1 : vector<8x256xf32>, i32 -> vector<8x256xf32>
    %c2_166 = arith.constant 2 : index
    %c0_167 = arith.constant 0 : index
    %c0_168 = arith.constant 0 : index
    %203 = vector.load %arg5[%c2_166, %c0_167, %c0_168] : memref<9x8x256xf32, #tpu.memory_space<vmem>>, vector<1x8x256xf32>
    %204 = vector.shape_cast %203 : vector<1x8x256xf32> to vector<8x256xf32>
    %205 = arith.mulf %202, %204 : vector<8x256xf32>
    %c1_i32_169 = arith.constant 1 : i32
    %206 = tpu.dynamic_rotate %189 by %c1_i32_169 dim 1 : vector<8x256xf32>, i32 -> vector<8x256xf32>
    %c3_170 = arith.constant 3 : index
    %c0_171 = arith.constant 0 : index
    %c0_172 = arith.constant 0 : index
    %207 = vector.load %arg5[%c3_170, %c0_171, %c0_172] : memref<9x8x256xf32, #tpu.memory_space<vmem>>, vector<1x8x256xf32>
    %208 = vector.shape_cast %207 : vector<1x8x256xf32> to vector<8x256xf32>
    %209 = arith.mulf %206, %208 : vector<8x256xf32>
    %c255_i32_173 = arith.constant 255 : i32
    %210 = tpu.dynamic_rotate %189 by %c255_i32_173 dim 1 : vector<8x256xf32>, i32 -> vector<8x256xf32>
    %c5_174 = arith.constant 5 : index
    %c0_175 = arith.constant 0 : index
    %c0_176 = arith.constant 0 : index
    %211 = vector.load %arg5[%c5_174, %c0_175, %c0_176] : memref<9x8x256xf32, #tpu.memory_space<vmem>>, vector<1x8x256xf32>
    %212 = vector.shape_cast %211 : vector<1x8x256xf32> to vector<8x256xf32>
    %213 = arith.mulf %210, %212 : vector<8x256xf32>
    %c241_i32_177 = arith.constant 241 : i32
    %214 = tpu.dynamic_rotate %189 by %c241_i32_177 dim 1 : vector<8x256xf32>, i32 -> vector<8x256xf32>
    %c6_178 = arith.constant 6 : index
    %c0_179 = arith.constant 0 : index
    %c0_180 = arith.constant 0 : index
    %215 = vector.load %arg5[%c6_178, %c0_179, %c0_180] : memref<9x8x256xf32, #tpu.memory_space<vmem>>, vector<1x8x256xf32>
    %216 = vector.shape_cast %215 : vector<1x8x256xf32> to vector<8x256xf32>
    %217 = arith.mulf %214, %216 : vector<8x256xf32>
    %c240_i32_181 = arith.constant 240 : i32
    %218 = tpu.dynamic_rotate %189 by %c240_i32_181 dim 1 : vector<8x256xf32>, i32 -> vector<8x256xf32>
    %c7_182 = arith.constant 7 : index
    %c0_183 = arith.constant 0 : index
    %c0_184 = arith.constant 0 : index
    %219 = vector.load %arg5[%c7_182, %c0_183, %c0_184] : memref<9x8x256xf32, #tpu.memory_space<vmem>>, vector<1x8x256xf32>
    %220 = vector.shape_cast %219 : vector<1x8x256xf32> to vector<8x256xf32>
    %221 = arith.mulf %218, %220 : vector<8x256xf32>
    %c239_i32_185 = arith.constant 239 : i32
    %222 = tpu.dynamic_rotate %189 by %c239_i32_185 dim 1 : vector<8x256xf32>, i32 -> vector<8x256xf32>
    %c8_186 = arith.constant 8 : index
    %c0_187 = arith.constant 0 : index
    %c0_188 = arith.constant 0 : index
    %223 = vector.load %arg5[%c8_186, %c0_187, %c0_188] : memref<9x8x256xf32, #tpu.memory_space<vmem>>, vector<1x8x256xf32>
    %224 = vector.shape_cast %223 : vector<1x8x256xf32> to vector<8x256xf32>
    %225 = arith.mulf %222, %224 : vector<8x256xf32>
    %226 = tpu.concatenate %197, %201, %205, %209, %189, %213, %217, %221, %225 in 0 : vector<8x256xf32>, vector<8x256xf32>, vector<8x256xf32>, vector<8x256xf32>, vector<8x256xf32>, vector<8x256xf32>, vector<8x256xf32>, vector<8x256xf32>, vector<8x256xf32> -> vector<72x256xf32>
    %227 = arith.truncf %226 : vector<72x256xf32> to vector<72x256xbf16>
    %cst_189 = arith.constant dense<0.000000e+00> : vector<8x256xf32>
    %228 = tpu.matmul %191, %227, %cst_189 {dimension_numbers = #tpu.dot_dimension_numbers<[1], [0], [0], [1], [0, 0, 1, 1], [], []>} : vector<8x72xbf16>, vector<72x256xbf16>, vector<8x256xf32> -> vector<8x256xf32>
    %229 = vector.broadcast %193 : vector<8x1xf32> to vector<8x256xf32>
    %230 = arith.addf %228, %229 : vector<8x256xf32>
    %cst_190 = arith.constant 0.000000e+00 : f32
    %231 = vector.broadcast %cst_190 : f32 to vector<8x256xf32>
    %232 = arith.maximumf %230, %231 : vector<8x256xf32>
    %c5_191 = arith.constant 5 : index
    %c0_192 = arith.constant 0 : index
    %c0_193 = arith.constant 0 : index
    %233 = vector.load %arg3[%c5_191, %c0_192, %c0_193] : memref<12x8x72xbf16, #tpu.memory_space<vmem>>, vector<1x8x72xbf16>
    %234 = vector.shape_cast %233 : vector<1x8x72xbf16> to vector<8x72xbf16>
    %c5_194 = arith.constant 5 : index
    %c0_195 = arith.constant 0 : index
    %c0_196 = arith.constant 0 : index
    %235 = vector.load %arg4[%c5_194, %c0_195, %c0_196] : memref<12x8x1xf32, #tpu.memory_space<vmem>>, vector<1x8x1xf32>
    %236 = vector.shape_cast %235 : vector<1x8x1xf32> to vector<8x1xf32>
    %c17_i32_197 = arith.constant 17 : i32
    %237 = tpu.dynamic_rotate %232 by %c17_i32_197 dim 1 : vector<8x256xf32>, i32 -> vector<8x256xf32>
    %c0_198 = arith.constant 0 : index
    %c0_199 = arith.constant 0 : index
    %c0_200 = arith.constant 0 : index
    %238 = vector.load %arg5[%c0_198, %c0_199, %c0_200] : memref<9x8x256xf32, #tpu.memory_space<vmem>>, vector<1x8x256xf32>
    %239 = vector.shape_cast %238 : vector<1x8x256xf32> to vector<8x256xf32>
    %240 = arith.mulf %237, %239 : vector<8x256xf32>
    %c16_i32_201 = arith.constant 16 : i32
    %241 = tpu.dynamic_rotate %232 by %c16_i32_201 dim 1 : vector<8x256xf32>, i32 -> vector<8x256xf32>
    %c1_202 = arith.constant 1 : index
    %c0_203 = arith.constant 0 : index
    %c0_204 = arith.constant 0 : index
    %242 = vector.load %arg5[%c1_202, %c0_203, %c0_204] : memref<9x8x256xf32, #tpu.memory_space<vmem>>, vector<1x8x256xf32>
    %243 = vector.shape_cast %242 : vector<1x8x256xf32> to vector<8x256xf32>
    %244 = arith.mulf %241, %243 : vector<8x256xf32>
    %c15_i32_205 = arith.constant 15 : i32
    %245 = tpu.dynamic_rotate %232 by %c15_i32_205 dim 1 : vector<8x256xf32>, i32 -> vector<8x256xf32>
    %c2_206 = arith.constant 2 : index
    %c0_207 = arith.constant 0 : index
    %c0_208 = arith.constant 0 : index
    %246 = vector.load %arg5[%c2_206, %c0_207, %c0_208] : memref<9x8x256xf32, #tpu.memory_space<vmem>>, vector<1x8x256xf32>
    %247 = vector.shape_cast %246 : vector<1x8x256xf32> to vector<8x256xf32>
    %248 = arith.mulf %245, %247 : vector<8x256xf32>
    %c1_i32_209 = arith.constant 1 : i32
    %249 = tpu.dynamic_rotate %232 by %c1_i32_209 dim 1 : vector<8x256xf32>, i32 -> vector<8x256xf32>
    %c3_210 = arith.constant 3 : index
    %c0_211 = arith.constant 0 : index
    %c0_212 = arith.constant 0 : index
    %250 = vector.load %arg5[%c3_210, %c0_211, %c0_212] : memref<9x8x256xf32, #tpu.memory_space<vmem>>, vector<1x8x256xf32>
    %251 = vector.shape_cast %250 : vector<1x8x256xf32> to vector<8x256xf32>
    %252 = arith.mulf %249, %251 : vector<8x256xf32>
    %c255_i32_213 = arith.constant 255 : i32
    %253 = tpu.dynamic_rotate %232 by %c255_i32_213 dim 1 : vector<8x256xf32>, i32 -> vector<8x256xf32>
    %c5_214 = arith.constant 5 : index
    %c0_215 = arith.constant 0 : index
    %c0_216 = arith.constant 0 : index
    %254 = vector.load %arg5[%c5_214, %c0_215, %c0_216] : memref<9x8x256xf32, #tpu.memory_space<vmem>>, vector<1x8x256xf32>
    %255 = vector.shape_cast %254 : vector<1x8x256xf32> to vector<8x256xf32>
    %256 = arith.mulf %253, %255 : vector<8x256xf32>
    %c241_i32_217 = arith.constant 241 : i32
    %257 = tpu.dynamic_rotate %232 by %c241_i32_217 dim 1 : vector<8x256xf32>, i32 -> vector<8x256xf32>
    %c6_218 = arith.constant 6 : index
    %c0_219 = arith.constant 0 : index
    %c0_220 = arith.constant 0 : index
    %258 = vector.load %arg5[%c6_218, %c0_219, %c0_220] : memref<9x8x256xf32, #tpu.memory_space<vmem>>, vector<1x8x256xf32>
    %259 = vector.shape_cast %258 : vector<1x8x256xf32> to vector<8x256xf32>
    %260 = arith.mulf %257, %259 : vector<8x256xf32>
    %c240_i32_221 = arith.constant 240 : i32
    %261 = tpu.dynamic_rotate %232 by %c240_i32_221 dim 1 : vector<8x256xf32>, i32 -> vector<8x256xf32>
    %c7_222 = arith.constant 7 : index
    %c0_223 = arith.constant 0 : index
    %c0_224 = arith.constant 0 : index
    %262 = vector.load %arg5[%c7_222, %c0_223, %c0_224] : memref<9x8x256xf32, #tpu.memory_space<vmem>>, vector<1x8x256xf32>
    %263 = vector.shape_cast %262 : vector<1x8x256xf32> to vector<8x256xf32>
    %264 = arith.mulf %261, %263 : vector<8x256xf32>
    %c239_i32_225 = arith.constant 239 : i32
    %265 = tpu.dynamic_rotate %232 by %c239_i32_225 dim 1 : vector<8x256xf32>, i32 -> vector<8x256xf32>
    %c8_226 = arith.constant 8 : index
    %c0_227 = arith.constant 0 : index
    %c0_228 = arith.constant 0 : index
    %266 = vector.load %arg5[%c8_226, %c0_227, %c0_228] : memref<9x8x256xf32, #tpu.memory_space<vmem>>, vector<1x8x256xf32>
    %267 = vector.shape_cast %266 : vector<1x8x256xf32> to vector<8x256xf32>
    %268 = arith.mulf %265, %267 : vector<8x256xf32>
    %269 = tpu.concatenate %240, %244, %248, %252, %232, %256, %260, %264, %268 in 0 : vector<8x256xf32>, vector<8x256xf32>, vector<8x256xf32>, vector<8x256xf32>, vector<8x256xf32>, vector<8x256xf32>, vector<8x256xf32>, vector<8x256xf32>, vector<8x256xf32> -> vector<72x256xf32>
    %270 = arith.truncf %269 : vector<72x256xf32> to vector<72x256xbf16>
    %cst_229 = arith.constant dense<0.000000e+00> : vector<8x256xf32>
    %271 = tpu.matmul %234, %270, %cst_229 {dimension_numbers = #tpu.dot_dimension_numbers<[1], [0], [0], [1], [0, 0, 1, 1], [], []>} : vector<8x72xbf16>, vector<72x256xbf16>, vector<8x256xf32> -> vector<8x256xf32>
    %272 = vector.broadcast %236 : vector<8x1xf32> to vector<8x256xf32>
    %273 = arith.addf %271, %272 : vector<8x256xf32>
    %cst_230 = arith.constant 0.000000e+00 : f32
    %274 = vector.broadcast %cst_230 : f32 to vector<8x256xf32>
    %275 = arith.maximumf %273, %274 : vector<8x256xf32>
    %c6_231 = arith.constant 6 : index
    %c0_232 = arith.constant 0 : index
    %c0_233 = arith.constant 0 : index
    %276 = vector.load %arg3[%c6_231, %c0_232, %c0_233] : memref<12x8x72xbf16, #tpu.memory_space<vmem>>, vector<1x8x72xbf16>
    %277 = vector.shape_cast %276 : vector<1x8x72xbf16> to vector<8x72xbf16>
    %c6_234 = arith.constant 6 : index
    %c0_235 = arith.constant 0 : index
    %c0_236 = arith.constant 0 : index
    %278 = vector.load %arg4[%c6_234, %c0_235, %c0_236] : memref<12x8x1xf32, #tpu.memory_space<vmem>>, vector<1x8x1xf32>
    %279 = vector.shape_cast %278 : vector<1x8x1xf32> to vector<8x1xf32>
    %c17_i32_237 = arith.constant 17 : i32
    %280 = tpu.dynamic_rotate %275 by %c17_i32_237 dim 1 : vector<8x256xf32>, i32 -> vector<8x256xf32>
    %c0_238 = arith.constant 0 : index
    %c0_239 = arith.constant 0 : index
    %c0_240 = arith.constant 0 : index
    %281 = vector.load %arg5[%c0_238, %c0_239, %c0_240] : memref<9x8x256xf32, #tpu.memory_space<vmem>>, vector<1x8x256xf32>
    %282 = vector.shape_cast %281 : vector<1x8x256xf32> to vector<8x256xf32>
    %283 = arith.mulf %280, %282 : vector<8x256xf32>
    %c16_i32_241 = arith.constant 16 : i32
    %284 = tpu.dynamic_rotate %275 by %c16_i32_241 dim 1 : vector<8x256xf32>, i32 -> vector<8x256xf32>
    %c1_242 = arith.constant 1 : index
    %c0_243 = arith.constant 0 : index
    %c0_244 = arith.constant 0 : index
    %285 = vector.load %arg5[%c1_242, %c0_243, %c0_244] : memref<9x8x256xf32, #tpu.memory_space<vmem>>, vector<1x8x256xf32>
    %286 = vector.shape_cast %285 : vector<1x8x256xf32> to vector<8x256xf32>
    %287 = arith.mulf %284, %286 : vector<8x256xf32>
    %c15_i32_245 = arith.constant 15 : i32
    %288 = tpu.dynamic_rotate %275 by %c15_i32_245 dim 1 : vector<8x256xf32>, i32 -> vector<8x256xf32>
    %c2_246 = arith.constant 2 : index
    %c0_247 = arith.constant 0 : index
    %c0_248 = arith.constant 0 : index
    %289 = vector.load %arg5[%c2_246, %c0_247, %c0_248] : memref<9x8x256xf32, #tpu.memory_space<vmem>>, vector<1x8x256xf32>
    %290 = vector.shape_cast %289 : vector<1x8x256xf32> to vector<8x256xf32>
    %291 = arith.mulf %288, %290 : vector<8x256xf32>
    %c1_i32_249 = arith.constant 1 : i32
    %292 = tpu.dynamic_rotate %275 by %c1_i32_249 dim 1 : vector<8x256xf32>, i32 -> vector<8x256xf32>
    %c3_250 = arith.constant 3 : index
    %c0_251 = arith.constant 0 : index
    %c0_252 = arith.constant 0 : index
    %293 = vector.load %arg5[%c3_250, %c0_251, %c0_252] : memref<9x8x256xf32, #tpu.memory_space<vmem>>, vector<1x8x256xf32>
    %294 = vector.shape_cast %293 : vector<1x8x256xf32> to vector<8x256xf32>
    %295 = arith.mulf %292, %294 : vector<8x256xf32>
    %c255_i32_253 = arith.constant 255 : i32
    %296 = tpu.dynamic_rotate %275 by %c255_i32_253 dim 1 : vector<8x256xf32>, i32 -> vector<8x256xf32>
    %c5_254 = arith.constant 5 : index
    %c0_255 = arith.constant 0 : index
    %c0_256 = arith.constant 0 : index
    %297 = vector.load %arg5[%c5_254, %c0_255, %c0_256] : memref<9x8x256xf32, #tpu.memory_space<vmem>>, vector<1x8x256xf32>
    %298 = vector.shape_cast %297 : vector<1x8x256xf32> to vector<8x256xf32>
    %299 = arith.mulf %296, %298 : vector<8x256xf32>
    %c241_i32_257 = arith.constant 241 : i32
    %300 = tpu.dynamic_rotate %275 by %c241_i32_257 dim 1 : vector<8x256xf32>, i32 -> vector<8x256xf32>
    %c6_258 = arith.constant 6 : index
    %c0_259 = arith.constant 0 : index
    %c0_260 = arith.constant 0 : index
    %301 = vector.load %arg5[%c6_258, %c0_259, %c0_260] : memref<9x8x256xf32, #tpu.memory_space<vmem>>, vector<1x8x256xf32>
    %302 = vector.shape_cast %301 : vector<1x8x256xf32> to vector<8x256xf32>
    %303 = arith.mulf %300, %302 : vector<8x256xf32>
    %c240_i32_261 = arith.constant 240 : i32
    %304 = tpu.dynamic_rotate %275 by %c240_i32_261 dim 1 : vector<8x256xf32>, i32 -> vector<8x256xf32>
    %c7_262 = arith.constant 7 : index
    %c0_263 = arith.constant 0 : index
    %c0_264 = arith.constant 0 : index
    %305 = vector.load %arg5[%c7_262, %c0_263, %c0_264] : memref<9x8x256xf32, #tpu.memory_space<vmem>>, vector<1x8x256xf32>
    %306 = vector.shape_cast %305 : vector<1x8x256xf32> to vector<8x256xf32>
    %307 = arith.mulf %304, %306 : vector<8x256xf32>
    %c239_i32_265 = arith.constant 239 : i32
    %308 = tpu.dynamic_rotate %275 by %c239_i32_265 dim 1 : vector<8x256xf32>, i32 -> vector<8x256xf32>
    %c8_266 = arith.constant 8 : index
    %c0_267 = arith.constant 0 : index
    %c0_268 = arith.constant 0 : index
    %309 = vector.load %arg5[%c8_266, %c0_267, %c0_268] : memref<9x8x256xf32, #tpu.memory_space<vmem>>, vector<1x8x256xf32>
    %310 = vector.shape_cast %309 : vector<1x8x256xf32> to vector<8x256xf32>
    %311 = arith.mulf %308, %310 : vector<8x256xf32>
    %312 = tpu.concatenate %283, %287, %291, %295, %275, %299, %303, %307, %311 in 0 : vector<8x256xf32>, vector<8x256xf32>, vector<8x256xf32>, vector<8x256xf32>, vector<8x256xf32>, vector<8x256xf32>, vector<8x256xf32>, vector<8x256xf32>, vector<8x256xf32> -> vector<72x256xf32>
    %313 = arith.truncf %312 : vector<72x256xf32> to vector<72x256xbf16>
    %cst_269 = arith.constant dense<0.000000e+00> : vector<8x256xf32>
    %314 = tpu.matmul %277, %313, %cst_269 {dimension_numbers = #tpu.dot_dimension_numbers<[1], [0], [0], [1], [0, 0, 1, 1], [], []>} : vector<8x72xbf16>, vector<72x256xbf16>, vector<8x256xf32> -> vector<8x256xf32>
    %315 = vector.broadcast %279 : vector<8x1xf32> to vector<8x256xf32>
    %316 = arith.addf %314, %315 : vector<8x256xf32>
    %cst_270 = arith.constant 0.000000e+00 : f32
    %317 = vector.broadcast %cst_270 : f32 to vector<8x256xf32>
    %318 = arith.maximumf %316, %317 : vector<8x256xf32>
    %c7_271 = arith.constant 7 : index
    %c0_272 = arith.constant 0 : index
    %c0_273 = arith.constant 0 : index
    %319 = vector.load %arg3[%c7_271, %c0_272, %c0_273] : memref<12x8x72xbf16, #tpu.memory_space<vmem>>, vector<1x8x72xbf16>
    %320 = vector.shape_cast %319 : vector<1x8x72xbf16> to vector<8x72xbf16>
    %c7_274 = arith.constant 7 : index
    %c0_275 = arith.constant 0 : index
    %c0_276 = arith.constant 0 : index
    %321 = vector.load %arg4[%c7_274, %c0_275, %c0_276] : memref<12x8x1xf32, #tpu.memory_space<vmem>>, vector<1x8x1xf32>
    %322 = vector.shape_cast %321 : vector<1x8x1xf32> to vector<8x1xf32>
    %c17_i32_277 = arith.constant 17 : i32
    %323 = tpu.dynamic_rotate %318 by %c17_i32_277 dim 1 : vector<8x256xf32>, i32 -> vector<8x256xf32>
    %c0_278 = arith.constant 0 : index
    %c0_279 = arith.constant 0 : index
    %c0_280 = arith.constant 0 : index
    %324 = vector.load %arg5[%c0_278, %c0_279, %c0_280] : memref<9x8x256xf32, #tpu.memory_space<vmem>>, vector<1x8x256xf32>
    %325 = vector.shape_cast %324 : vector<1x8x256xf32> to vector<8x256xf32>
    %326 = arith.mulf %323, %325 : vector<8x256xf32>
    %c16_i32_281 = arith.constant 16 : i32
    %327 = tpu.dynamic_rotate %318 by %c16_i32_281 dim 1 : vector<8x256xf32>, i32 -> vector<8x256xf32>
    %c1_282 = arith.constant 1 : index
    %c0_283 = arith.constant 0 : index
    %c0_284 = arith.constant 0 : index
    %328 = vector.load %arg5[%c1_282, %c0_283, %c0_284] : memref<9x8x256xf32, #tpu.memory_space<vmem>>, vector<1x8x256xf32>
    %329 = vector.shape_cast %328 : vector<1x8x256xf32> to vector<8x256xf32>
    %330 = arith.mulf %327, %329 : vector<8x256xf32>
    %c15_i32_285 = arith.constant 15 : i32
    %331 = tpu.dynamic_rotate %318 by %c15_i32_285 dim 1 : vector<8x256xf32>, i32 -> vector<8x256xf32>
    %c2_286 = arith.constant 2 : index
    %c0_287 = arith.constant 0 : index
    %c0_288 = arith.constant 0 : index
    %332 = vector.load %arg5[%c2_286, %c0_287, %c0_288] : memref<9x8x256xf32, #tpu.memory_space<vmem>>, vector<1x8x256xf32>
    %333 = vector.shape_cast %332 : vector<1x8x256xf32> to vector<8x256xf32>
    %334 = arith.mulf %331, %333 : vector<8x256xf32>
    %c1_i32_289 = arith.constant 1 : i32
    %335 = tpu.dynamic_rotate %318 by %c1_i32_289 dim 1 : vector<8x256xf32>, i32 -> vector<8x256xf32>
    %c3_290 = arith.constant 3 : index
    %c0_291 = arith.constant 0 : index
    %c0_292 = arith.constant 0 : index
    %336 = vector.load %arg5[%c3_290, %c0_291, %c0_292] : memref<9x8x256xf32, #tpu.memory_space<vmem>>, vector<1x8x256xf32>
    %337 = vector.shape_cast %336 : vector<1x8x256xf32> to vector<8x256xf32>
    %338 = arith.mulf %335, %337 : vector<8x256xf32>
    %c255_i32_293 = arith.constant 255 : i32
    %339 = tpu.dynamic_rotate %318 by %c255_i32_293 dim 1 : vector<8x256xf32>, i32 -> vector<8x256xf32>
    %c5_294 = arith.constant 5 : index
    %c0_295 = arith.constant 0 : index
    %c0_296 = arith.constant 0 : index
    %340 = vector.load %arg5[%c5_294, %c0_295, %c0_296] : memref<9x8x256xf32, #tpu.memory_space<vmem>>, vector<1x8x256xf32>
    %341 = vector.shape_cast %340 : vector<1x8x256xf32> to vector<8x256xf32>
    %342 = arith.mulf %339, %341 : vector<8x256xf32>
    %c241_i32_297 = arith.constant 241 : i32
    %343 = tpu.dynamic_rotate %318 by %c241_i32_297 dim 1 : vector<8x256xf32>, i32 -> vector<8x256xf32>
    %c6_298 = arith.constant 6 : index
    %c0_299 = arith.constant 0 : index
    %c0_300 = arith.constant 0 : index
    %344 = vector.load %arg5[%c6_298, %c0_299, %c0_300] : memref<9x8x256xf32, #tpu.memory_space<vmem>>, vector<1x8x256xf32>
    %345 = vector.shape_cast %344 : vector<1x8x256xf32> to vector<8x256xf32>
    %346 = arith.mulf %343, %345 : vector<8x256xf32>
    %c240_i32_301 = arith.constant 240 : i32
    %347 = tpu.dynamic_rotate %318 by %c240_i32_301 dim 1 : vector<8x256xf32>, i32 -> vector<8x256xf32>
    %c7_302 = arith.constant 7 : index
    %c0_303 = arith.constant 0 : index
    %c0_304 = arith.constant 0 : index
    %348 = vector.load %arg5[%c7_302, %c0_303, %c0_304] : memref<9x8x256xf32, #tpu.memory_space<vmem>>, vector<1x8x256xf32>
    %349 = vector.shape_cast %348 : vector<1x8x256xf32> to vector<8x256xf32>
    %350 = arith.mulf %347, %349 : vector<8x256xf32>
    %c239_i32_305 = arith.constant 239 : i32
    %351 = tpu.dynamic_rotate %318 by %c239_i32_305 dim 1 : vector<8x256xf32>, i32 -> vector<8x256xf32>
    %c8_306 = arith.constant 8 : index
    %c0_307 = arith.constant 0 : index
    %c0_308 = arith.constant 0 : index
    %352 = vector.load %arg5[%c8_306, %c0_307, %c0_308] : memref<9x8x256xf32, #tpu.memory_space<vmem>>, vector<1x8x256xf32>
    %353 = vector.shape_cast %352 : vector<1x8x256xf32> to vector<8x256xf32>
    %354 = arith.mulf %351, %353 : vector<8x256xf32>
    %355 = tpu.concatenate %326, %330, %334, %338, %318, %342, %346, %350, %354 in 0 : vector<8x256xf32>, vector<8x256xf32>, vector<8x256xf32>, vector<8x256xf32>, vector<8x256xf32>, vector<8x256xf32>, vector<8x256xf32>, vector<8x256xf32>, vector<8x256xf32> -> vector<72x256xf32>
    %356 = arith.truncf %355 : vector<72x256xf32> to vector<72x256xbf16>
    %cst_309 = arith.constant dense<0.000000e+00> : vector<8x256xf32>
    %357 = tpu.matmul %320, %356, %cst_309 {dimension_numbers = #tpu.dot_dimension_numbers<[1], [0], [0], [1], [0, 0, 1, 1], [], []>} : vector<8x72xbf16>, vector<72x256xbf16>, vector<8x256xf32> -> vector<8x256xf32>
    %358 = vector.broadcast %322 : vector<8x1xf32> to vector<8x256xf32>
    %359 = arith.addf %357, %358 : vector<8x256xf32>
    %360 = vector.extract_strided_slice %359 {offsets = [0, 0], sizes = [1, 256], strides = [1, 1]} : vector<8x256xf32> to vector<1x256xf32>
    %361 = arith.addf %360, %187 : vector<1x256xf32>
    %362 = arith.mulf %361, %3 : vector<1x256xf32>
    %cst_310 = arith.constant 9.99999997E-7 : f32
    %363 = vector.broadcast %cst_310 : f32 to vector<1x256xf32>
    %364 = arith.addf %361, %363 : vector<1x256xf32>
    %365 = tpu.reciprocal %364 {approx = true} : vector<1x256xf32> -> vector<1x256xf32>
    %366 = arith.mulf %362, %365 : vector<1x256xf32>
    %cst_311 = arith.constant 0.000000e+00 : f32
    %367 = vector.broadcast %cst_311 : f32 to vector<5x256xf32>
    %368 = tpu.concatenate %8, %187, %366, %367 in 0 : vector<1x256xf32>, vector<1x256xf32>, vector<1x256xf32>, vector<5x256xf32> -> vector<8x256xf32>
    %c8_312 = arith.constant 8 : index
    %c0_313 = arith.constant 0 : index
    %c0_314 = arith.constant 0 : index
    %369 = vector.load %arg3[%c8_312, %c0_313, %c0_314] : memref<12x8x72xbf16, #tpu.memory_space<vmem>>, vector<1x8x72xbf16>
    %370 = vector.shape_cast %369 : vector<1x8x72xbf16> to vector<8x72xbf16>
    %c8_315 = arith.constant 8 : index
    %c0_316 = arith.constant 0 : index
    %c0_317 = arith.constant 0 : index
    %371 = vector.load %arg4[%c8_315, %c0_316, %c0_317] : memref<12x8x1xf32, #tpu.memory_space<vmem>>, vector<1x8x1xf32>
    %372 = vector.shape_cast %371 : vector<1x8x1xf32> to vector<8x1xf32>
    %c17_i32_318 = arith.constant 17 : i32
    %373 = tpu.dynamic_rotate %368 by %c17_i32_318 dim 1 : vector<8x256xf32>, i32 -> vector<8x256xf32>
    %c0_319 = arith.constant 0 : index
    %c0_320 = arith.constant 0 : index
    %c0_321 = arith.constant 0 : index
    %374 = vector.load %arg5[%c0_319, %c0_320, %c0_321] : memref<9x8x256xf32, #tpu.memory_space<vmem>>, vector<1x8x256xf32>
    %375 = vector.shape_cast %374 : vector<1x8x256xf32> to vector<8x256xf32>
    %376 = arith.mulf %373, %375 : vector<8x256xf32>
    %c16_i32_322 = arith.constant 16 : i32
    %377 = tpu.dynamic_rotate %368 by %c16_i32_322 dim 1 : vector<8x256xf32>, i32 -> vector<8x256xf32>
    %c1_323 = arith.constant 1 : index
    %c0_324 = arith.constant 0 : index
    %c0_325 = arith.constant 0 : index
    %378 = vector.load %arg5[%c1_323, %c0_324, %c0_325] : memref<9x8x256xf32, #tpu.memory_space<vmem>>, vector<1x8x256xf32>
    %379 = vector.shape_cast %378 : vector<1x8x256xf32> to vector<8x256xf32>
    %380 = arith.mulf %377, %379 : vector<8x256xf32>
    %c15_i32_326 = arith.constant 15 : i32
    %381 = tpu.dynamic_rotate %368 by %c15_i32_326 dim 1 : vector<8x256xf32>, i32 -> vector<8x256xf32>
    %c2_327 = arith.constant 2 : index
    %c0_328 = arith.constant 0 : index
    %c0_329 = arith.constant 0 : index
    %382 = vector.load %arg5[%c2_327, %c0_328, %c0_329] : memref<9x8x256xf32, #tpu.memory_space<vmem>>, vector<1x8x256xf32>
    %383 = vector.shape_cast %382 : vector<1x8x256xf32> to vector<8x256xf32>
    %384 = arith.mulf %381, %383 : vector<8x256xf32>
    %c1_i32_330 = arith.constant 1 : i32
    %385 = tpu.dynamic_rotate %368 by %c1_i32_330 dim 1 : vector<8x256xf32>, i32 -> vector<8x256xf32>
    %c3_331 = arith.constant 3 : index
    %c0_332 = arith.constant 0 : index
    %c0_333 = arith.constant 0 : index
    %386 = vector.load %arg5[%c3_331, %c0_332, %c0_333] : memref<9x8x256xf32, #tpu.memory_space<vmem>>, vector<1x8x256xf32>
    %387 = vector.shape_cast %386 : vector<1x8x256xf32> to vector<8x256xf32>
    %388 = arith.mulf %385, %387 : vector<8x256xf32>
    %c255_i32_334 = arith.constant 255 : i32
    %389 = tpu.dynamic_rotate %368 by %c255_i32_334 dim 1 : vector<8x256xf32>, i32 -> vector<8x256xf32>
    %c5_335 = arith.constant 5 : index
    %c0_336 = arith.constant 0 : index
    %c0_337 = arith.constant 0 : index
    %390 = vector.load %arg5[%c5_335, %c0_336, %c0_337] : memref<9x8x256xf32, #tpu.memory_space<vmem>>, vector<1x8x256xf32>
    %391 = vector.shape_cast %390 : vector<1x8x256xf32> to vector<8x256xf32>
    %392 = arith.mulf %389, %391 : vector<8x256xf32>
    %c241_i32_338 = arith.constant 241 : i32
    %393 = tpu.dynamic_rotate %368 by %c241_i32_338 dim 1 : vector<8x256xf32>, i32 -> vector<8x256xf32>
    %c6_339 = arith.constant 6 : index
    %c0_340 = arith.constant 0 : index
    %c0_341 = arith.constant 0 : index
    %394 = vector.load %arg5[%c6_339, %c0_340, %c0_341] : memref<9x8x256xf32, #tpu.memory_space<vmem>>, vector<1x8x256xf32>
    %395 = vector.shape_cast %394 : vector<1x8x256xf32> to vector<8x256xf32>
    %396 = arith.mulf %393, %395 : vector<8x256xf32>
    %c240_i32_342 = arith.constant 240 : i32
    %397 = tpu.dynamic_rotate %368 by %c240_i32_342 dim 1 : vector<8x256xf32>, i32 -> vector<8x256xf32>
    %c7_343 = arith.constant 7 : index
    %c0_344 = arith.constant 0 : index
    %c0_345 = arith.constant 0 : index
    %398 = vector.load %arg5[%c7_343, %c0_344, %c0_345] : memref<9x8x256xf32, #tpu.memory_space<vmem>>, vector<1x8x256xf32>
    %399 = vector.shape_cast %398 : vector<1x8x256xf32> to vector<8x256xf32>
    %400 = arith.mulf %397, %399 : vector<8x256xf32>
    %c239_i32_346 = arith.constant 239 : i32
    %401 = tpu.dynamic_rotate %368 by %c239_i32_346 dim 1 : vector<8x256xf32>, i32 -> vector<8x256xf32>
    %c8_347 = arith.constant 8 : index
    %c0_348 = arith.constant 0 : index
    %c0_349 = arith.constant 0 : index
    %402 = vector.load %arg5[%c8_347, %c0_348, %c0_349] : memref<9x8x256xf32, #tpu.memory_space<vmem>>, vector<1x8x256xf32>
    %403 = vector.shape_cast %402 : vector<1x8x256xf32> to vector<8x256xf32>
    %404 = arith.mulf %401, %403 : vector<8x256xf32>
    %405 = tpu.concatenate %376, %380, %384, %388, %368, %392, %396, %400, %404 in 0 : vector<8x256xf32>, vector<8x256xf32>, vector<8x256xf32>, vector<8x256xf32>, vector<8x256xf32>, vector<8x256xf32>, vector<8x256xf32>, vector<8x256xf32>, vector<8x256xf32> -> vector<72x256xf32>
    %406 = arith.truncf %405 : vector<72x256xf32> to vector<72x256xbf16>
    %cst_350 = arith.constant dense<0.000000e+00> : vector<8x256xf32>
    %407 = tpu.matmul %370, %406, %cst_350 {dimension_numbers = #tpu.dot_dimension_numbers<[1], [0], [0], [1], [0, 0, 1, 1], [], []>} : vector<8x72xbf16>, vector<72x256xbf16>, vector<8x256xf32> -> vector<8x256xf32>
    %408 = vector.broadcast %372 : vector<8x1xf32> to vector<8x256xf32>
    %409 = arith.addf %407, %408 : vector<8x256xf32>
    %cst_351 = arith.constant 0.000000e+00 : f32
    %410 = vector.broadcast %cst_351 : f32 to vector<8x256xf32>
    %411 = arith.maximumf %409, %410 : vector<8x256xf32>
    %c9 = arith.constant 9 : index
    %c0_352 = arith.constant 0 : index
    %c0_353 = arith.constant 0 : index
    %412 = vector.load %arg3[%c9, %c0_352, %c0_353] : memref<12x8x72xbf16, #tpu.memory_space<vmem>>, vector<1x8x72xbf16>
    %413 = vector.shape_cast %412 : vector<1x8x72xbf16> to vector<8x72xbf16>
    %c9_354 = arith.constant 9 : index
    %c0_355 = arith.constant 0 : index
    %c0_356 = arith.constant 0 : index
    %414 = vector.load %arg4[%c9_354, %c0_355, %c0_356] : memref<12x8x1xf32, #tpu.memory_space<vmem>>, vector<1x8x1xf32>
    %415 = vector.shape_cast %414 : vector<1x8x1xf32> to vector<8x1xf32>
    %c17_i32_357 = arith.constant 17 : i32
    %416 = tpu.dynamic_rotate %411 by %c17_i32_357 dim 1 : vector<8x256xf32>, i32 -> vector<8x256xf32>
    %c0_358 = arith.constant 0 : index
    %c0_359 = arith.constant 0 : index
    %c0_360 = arith.constant 0 : index
    %417 = vector.load %arg5[%c0_358, %c0_359, %c0_360] : memref<9x8x256xf32, #tpu.memory_space<vmem>>, vector<1x8x256xf32>
    %418 = vector.shape_cast %417 : vector<1x8x256xf32> to vector<8x256xf32>
    %419 = arith.mulf %416, %418 : vector<8x256xf32>
    %c16_i32_361 = arith.constant 16 : i32
    %420 = tpu.dynamic_rotate %411 by %c16_i32_361 dim 1 : vector<8x256xf32>, i32 -> vector<8x256xf32>
    %c1_362 = arith.constant 1 : index
    %c0_363 = arith.constant 0 : index
    %c0_364 = arith.constant 0 : index
    %421 = vector.load %arg5[%c1_362, %c0_363, %c0_364] : memref<9x8x256xf32, #tpu.memory_space<vmem>>, vector<1x8x256xf32>
    %422 = vector.shape_cast %421 : vector<1x8x256xf32> to vector<8x256xf32>
    %423 = arith.mulf %420, %422 : vector<8x256xf32>
    %c15_i32_365 = arith.constant 15 : i32
    %424 = tpu.dynamic_rotate %411 by %c15_i32_365 dim 1 : vector<8x256xf32>, i32 -> vector<8x256xf32>
    %c2_366 = arith.constant 2 : index
    %c0_367 = arith.constant 0 : index
    %c0_368 = arith.constant 0 : index
    %425 = vector.load %arg5[%c2_366, %c0_367, %c0_368] : memref<9x8x256xf32, #tpu.memory_space<vmem>>, vector<1x8x256xf32>
    %426 = vector.shape_cast %425 : vector<1x8x256xf32> to vector<8x256xf32>
    %427 = arith.mulf %424, %426 : vector<8x256xf32>
    %c1_i32_369 = arith.constant 1 : i32
    %428 = tpu.dynamic_rotate %411 by %c1_i32_369 dim 1 : vector<8x256xf32>, i32 -> vector<8x256xf32>
    %c3_370 = arith.constant 3 : index
    %c0_371 = arith.constant 0 : index
    %c0_372 = arith.constant 0 : index
    %429 = vector.load %arg5[%c3_370, %c0_371, %c0_372] : memref<9x8x256xf32, #tpu.memory_space<vmem>>, vector<1x8x256xf32>
    %430 = vector.shape_cast %429 : vector<1x8x256xf32> to vector<8x256xf32>
    %431 = arith.mulf %428, %430 : vector<8x256xf32>
    %c255_i32_373 = arith.constant 255 : i32
    %432 = tpu.dynamic_rotate %411 by %c255_i32_373 dim 1 : vector<8x256xf32>, i32 -> vector<8x256xf32>
    %c5_374 = arith.constant 5 : index
    %c0_375 = arith.constant 0 : index
    %c0_376 = arith.constant 0 : index
    %433 = vector.load %arg5[%c5_374, %c0_375, %c0_376] : memref<9x8x256xf32, #tpu.memory_space<vmem>>, vector<1x8x256xf32>
    %434 = vector.shape_cast %433 : vector<1x8x256xf32> to vector<8x256xf32>
    %435 = arith.mulf %432, %434 : vector<8x256xf32>
    %c241_i32_377 = arith.constant 241 : i32
    %436 = tpu.dynamic_rotate %411 by %c241_i32_377 dim 1 : vector<8x256xf32>, i32 -> vector<8x256xf32>
    %c6_378 = arith.constant 6 : index
    %c0_379 = arith.constant 0 : index
    %c0_380 = arith.constant 0 : index
    %437 = vector.load %arg5[%c6_378, %c0_379, %c0_380] : memref<9x8x256xf32, #tpu.memory_space<vmem>>, vector<1x8x256xf32>
    %438 = vector.shape_cast %437 : vector<1x8x256xf32> to vector<8x256xf32>
    %439 = arith.mulf %436, %438 : vector<8x256xf32>
    %c240_i32_381 = arith.constant 240 : i32
    %440 = tpu.dynamic_rotate %411 by %c240_i32_381 dim 1 : vector<8x256xf32>, i32 -> vector<8x256xf32>
    %c7_382 = arith.constant 7 : index
    %c0_383 = arith.constant 0 : index
    %c0_384 = arith.constant 0 : index
    %441 = vector.load %arg5[%c7_382, %c0_383, %c0_384] : memref<9x8x256xf32, #tpu.memory_space<vmem>>, vector<1x8x256xf32>
    %442 = vector.shape_cast %441 : vector<1x8x256xf32> to vector<8x256xf32>
    %443 = arith.mulf %440, %442 : vector<8x256xf32>
    %c239_i32_385 = arith.constant 239 : i32
    %444 = tpu.dynamic_rotate %411 by %c239_i32_385 dim 1 : vector<8x256xf32>, i32 -> vector<8x256xf32>
    %c8_386 = arith.constant 8 : index
    %c0_387 = arith.constant 0 : index
    %c0_388 = arith.constant 0 : index
    %445 = vector.load %arg5[%c8_386, %c0_387, %c0_388] : memref<9x8x256xf32, #tpu.memory_space<vmem>>, vector<1x8x256xf32>
    %446 = vector.shape_cast %445 : vector<1x8x256xf32> to vector<8x256xf32>
    %447 = arith.mulf %444, %446 : vector<8x256xf32>
    %448 = tpu.concatenate %419, %423, %427, %431, %411, %435, %439, %443, %447 in 0 : vector<8x256xf32>, vector<8x256xf32>, vector<8x256xf32>, vector<8x256xf32>, vector<8x256xf32>, vector<8x256xf32>, vector<8x256xf32>, vector<8x256xf32>, vector<8x256xf32> -> vector<72x256xf32>
    %449 = arith.truncf %448 : vector<72x256xf32> to vector<72x256xbf16>
    %cst_389 = arith.constant dense<0.000000e+00> : vector<8x256xf32>
    %450 = tpu.matmul %413, %449, %cst_389 {dimension_numbers = #tpu.dot_dimension_numbers<[1], [0], [0], [1], [0, 0, 1, 1], [], []>} : vector<8x72xbf16>, vector<72x256xbf16>, vector<8x256xf32> -> vector<8x256xf32>
    %451 = vector.broadcast %415 : vector<8x1xf32> to vector<8x256xf32>
    %452 = arith.addf %450, %451 : vector<8x256xf32>
    %cst_390 = arith.constant 0.000000e+00 : f32
    %453 = vector.broadcast %cst_390 : f32 to vector<8x256xf32>
    %454 = arith.maximumf %452, %453 : vector<8x256xf32>
    %c10 = arith.constant 10 : index
    %c0_391 = arith.constant 0 : index
    %c0_392 = arith.constant 0 : index
    %455 = vector.load %arg3[%c10, %c0_391, %c0_392] : memref<12x8x72xbf16, #tpu.memory_space<vmem>>, vector<1x8x72xbf16>
    %456 = vector.shape_cast %455 : vector<1x8x72xbf16> to vector<8x72xbf16>
    %c10_393 = arith.constant 10 : index
    %c0_394 = arith.constant 0 : index
    %c0_395 = arith.constant 0 : index
    %457 = vector.load %arg4[%c10_393, %c0_394, %c0_395] : memref<12x8x1xf32, #tpu.memory_space<vmem>>, vector<1x8x1xf32>
    %458 = vector.shape_cast %457 : vector<1x8x1xf32> to vector<8x1xf32>
    %c17_i32_396 = arith.constant 17 : i32
    %459 = tpu.dynamic_rotate %454 by %c17_i32_396 dim 1 : vector<8x256xf32>, i32 -> vector<8x256xf32>
    %c0_397 = arith.constant 0 : index
    %c0_398 = arith.constant 0 : index
    %c0_399 = arith.constant 0 : index
    %460 = vector.load %arg5[%c0_397, %c0_398, %c0_399] : memref<9x8x256xf32, #tpu.memory_space<vmem>>, vector<1x8x256xf32>
    %461 = vector.shape_cast %460 : vector<1x8x256xf32> to vector<8x256xf32>
    %462 = arith.mulf %459, %461 : vector<8x256xf32>
    %c16_i32_400 = arith.constant 16 : i32
    %463 = tpu.dynamic_rotate %454 by %c16_i32_400 dim 1 : vector<8x256xf32>, i32 -> vector<8x256xf32>
    %c1_401 = arith.constant 1 : index
    %c0_402 = arith.constant 0 : index
    %c0_403 = arith.constant 0 : index
    %464 = vector.load %arg5[%c1_401, %c0_402, %c0_403] : memref<9x8x256xf32, #tpu.memory_space<vmem>>, vector<1x8x256xf32>
    %465 = vector.shape_cast %464 : vector<1x8x256xf32> to vector<8x256xf32>
    %466 = arith.mulf %463, %465 : vector<8x256xf32>
    %c15_i32_404 = arith.constant 15 : i32
    %467 = tpu.dynamic_rotate %454 by %c15_i32_404 dim 1 : vector<8x256xf32>, i32 -> vector<8x256xf32>
    %c2_405 = arith.constant 2 : index
    %c0_406 = arith.constant 0 : index
    %c0_407 = arith.constant 0 : index
    %468 = vector.load %arg5[%c2_405, %c0_406, %c0_407] : memref<9x8x256xf32, #tpu.memory_space<vmem>>, vector<1x8x256xf32>
    %469 = vector.shape_cast %468 : vector<1x8x256xf32> to vector<8x256xf32>
    %470 = arith.mulf %467, %469 : vector<8x256xf32>
    %c1_i32_408 = arith.constant 1 : i32
    %471 = tpu.dynamic_rotate %454 by %c1_i32_408 dim 1 : vector<8x256xf32>, i32 -> vector<8x256xf32>
    %c3_409 = arith.constant 3 : index
    %c0_410 = arith.constant 0 : index
    %c0_411 = arith.constant 0 : index
    %472 = vector.load %arg5[%c3_409, %c0_410, %c0_411] : memref<9x8x256xf32, #tpu.memory_space<vmem>>, vector<1x8x256xf32>
    %473 = vector.shape_cast %472 : vector<1x8x256xf32> to vector<8x256xf32>
    %474 = arith.mulf %471, %473 : vector<8x256xf32>
    %c255_i32_412 = arith.constant 255 : i32
    %475 = tpu.dynamic_rotate %454 by %c255_i32_412 dim 1 : vector<8x256xf32>, i32 -> vector<8x256xf32>
    %c5_413 = arith.constant 5 : index
    %c0_414 = arith.constant 0 : index
    %c0_415 = arith.constant 0 : index
    %476 = vector.load %arg5[%c5_413, %c0_414, %c0_415] : memref<9x8x256xf32, #tpu.memory_space<vmem>>, vector<1x8x256xf32>
    %477 = vector.shape_cast %476 : vector<1x8x256xf32> to vector<8x256xf32>
    %478 = arith.mulf %475, %477 : vector<8x256xf32>
    %c241_i32_416 = arith.constant 241 : i32
    %479 = tpu.dynamic_rotate %454 by %c241_i32_416 dim 1 : vector<8x256xf32>, i32 -> vector<8x256xf32>
    %c6_417 = arith.constant 6 : index
    %c0_418 = arith.constant 0 : index
    %c0_419 = arith.constant 0 : index
    %480 = vector.load %arg5[%c6_417, %c0_418, %c0_419] : memref<9x8x256xf32, #tpu.memory_space<vmem>>, vector<1x8x256xf32>
    %481 = vector.shape_cast %480 : vector<1x8x256xf32> to vector<8x256xf32>
    %482 = arith.mulf %479, %481 : vector<8x256xf32>
    %c240_i32_420 = arith.constant 240 : i32
    %483 = tpu.dynamic_rotate %454 by %c240_i32_420 dim 1 : vector<8x256xf32>, i32 -> vector<8x256xf32>
    %c7_421 = arith.constant 7 : index
    %c0_422 = arith.constant 0 : index
    %c0_423 = arith.constant 0 : index
    %484 = vector.load %arg5[%c7_421, %c0_422, %c0_423] : memref<9x8x256xf32, #tpu.memory_space<vmem>>, vector<1x8x256xf32>
    %485 = vector.shape_cast %484 : vector<1x8x256xf32> to vector<8x256xf32>
    %486 = arith.mulf %483, %485 : vector<8x256xf32>
    %c239_i32_424 = arith.constant 239 : i32
    %487 = tpu.dynamic_rotate %454 by %c239_i32_424 dim 1 : vector<8x256xf32>, i32 -> vector<8x256xf32>
    %c8_425 = arith.constant 8 : index
    %c0_426 = arith.constant 0 : index
    %c0_427 = arith.constant 0 : index
    %488 = vector.load %arg5[%c8_425, %c0_426, %c0_427] : memref<9x8x256xf32, #tpu.memory_space<vmem>>, vector<1x8x256xf32>
    %489 = vector.shape_cast %488 : vector<1x8x256xf32> to vector<8x256xf32>
    %490 = arith.mulf %487, %489 : vector<8x256xf32>
    %491 = tpu.concatenate %462, %466, %470, %474, %454, %478, %482, %486, %490 in 0 : vector<8x256xf32>, vector<8x256xf32>, vector<8x256xf32>, vector<8x256xf32>, vector<8x256xf32>, vector<8x256xf32>, vector<8x256xf32>, vector<8x256xf32>, vector<8x256xf32> -> vector<72x256xf32>
    %492 = arith.truncf %491 : vector<72x256xf32> to vector<72x256xbf16>
    %cst_428 = arith.constant dense<0.000000e+00> : vector<8x256xf32>
    %493 = tpu.matmul %456, %492, %cst_428 {dimension_numbers = #tpu.dot_dimension_numbers<[1], [0], [0], [1], [0, 0, 1, 1], [], []>} : vector<8x72xbf16>, vector<72x256xbf16>, vector<8x256xf32> -> vector<8x256xf32>
    %494 = vector.broadcast %458 : vector<8x1xf32> to vector<8x256xf32>
    %495 = arith.addf %493, %494 : vector<8x256xf32>
    %cst_429 = arith.constant 0.000000e+00 : f32
    %496 = vector.broadcast %cst_429 : f32 to vector<8x256xf32>
    %497 = arith.maximumf %495, %496 : vector<8x256xf32>
    %c11 = arith.constant 11 : index
    %c0_430 = arith.constant 0 : index
    %c0_431 = arith.constant 0 : index
    %498 = vector.load %arg3[%c11, %c0_430, %c0_431] : memref<12x8x72xbf16, #tpu.memory_space<vmem>>, vector<1x8x72xbf16>
    %499 = vector.shape_cast %498 : vector<1x8x72xbf16> to vector<8x72xbf16>
    %c11_432 = arith.constant 11 : index
    %c0_433 = arith.constant 0 : index
    %c0_434 = arith.constant 0 : index
    %500 = vector.load %arg4[%c11_432, %c0_433, %c0_434] : memref<12x8x1xf32, #tpu.memory_space<vmem>>, vector<1x8x1xf32>
    %501 = vector.shape_cast %500 : vector<1x8x1xf32> to vector<8x1xf32>
    %c17_i32_435 = arith.constant 17 : i32
    %502 = tpu.dynamic_rotate %497 by %c17_i32_435 dim 1 : vector<8x256xf32>, i32 -> vector<8x256xf32>
    %c0_436 = arith.constant 0 : index
    %c0_437 = arith.constant 0 : index
    %c0_438 = arith.constant 0 : index
    %503 = vector.load %arg5[%c0_436, %c0_437, %c0_438] : memref<9x8x256xf32, #tpu.memory_space<vmem>>, vector<1x8x256xf32>
    %504 = vector.shape_cast %503 : vector<1x8x256xf32> to vector<8x256xf32>
    %505 = arith.mulf %502, %504 : vector<8x256xf32>
    %c16_i32_439 = arith.constant 16 : i32
    %506 = tpu.dynamic_rotate %497 by %c16_i32_439 dim 1 : vector<8x256xf32>, i32 -> vector<8x256xf32>
    %c1_440 = arith.constant 1 : index
    %c0_441 = arith.constant 0 : index
    %c0_442 = arith.constant 0 : index
    %507 = vector.load %arg5[%c1_440, %c0_441, %c0_442] : memref<9x8x256xf32, #tpu.memory_space<vmem>>, vector<1x8x256xf32>
    %508 = vector.shape_cast %507 : vector<1x8x256xf32> to vector<8x256xf32>
    %509 = arith.mulf %506, %508 : vector<8x256xf32>
    %c15_i32_443 = arith.constant 15 : i32
    %510 = tpu.dynamic_rotate %497 by %c15_i32_443 dim 1 : vector<8x256xf32>, i32 -> vector<8x256xf32>
    %c2_444 = arith.constant 2 : index
    %c0_445 = arith.constant 0 : index
    %c0_446 = arith.constant 0 : index
    %511 = vector.load %arg5[%c2_444, %c0_445, %c0_446] : memref<9x8x256xf32, #tpu.memory_space<vmem>>, vector<1x8x256xf32>
    %512 = vector.shape_cast %511 : vector<1x8x256xf32> to vector<8x256xf32>
    %513 = arith.mulf %510, %512 : vector<8x256xf32>
    %c1_i32_447 = arith.constant 1 : i32
    %514 = tpu.dynamic_rotate %497 by %c1_i32_447 dim 1 : vector<8x256xf32>, i32 -> vector<8x256xf32>
    %c3_448 = arith.constant 3 : index
    %c0_449 = arith.constant 0 : index
    %c0_450 = arith.constant 0 : index
    %515 = vector.load %arg5[%c3_448, %c0_449, %c0_450] : memref<9x8x256xf32, #tpu.memory_space<vmem>>, vector<1x8x256xf32>
    %516 = vector.shape_cast %515 : vector<1x8x256xf32> to vector<8x256xf32>
    %517 = arith.mulf %514, %516 : vector<8x256xf32>
    %c255_i32_451 = arith.constant 255 : i32
    %518 = tpu.dynamic_rotate %497 by %c255_i32_451 dim 1 : vector<8x256xf32>, i32 -> vector<8x256xf32>
    %c5_452 = arith.constant 5 : index
    %c0_453 = arith.constant 0 : index
    %c0_454 = arith.constant 0 : index
    %519 = vector.load %arg5[%c5_452, %c0_453, %c0_454] : memref<9x8x256xf32, #tpu.memory_space<vmem>>, vector<1x8x256xf32>
    %520 = vector.shape_cast %519 : vector<1x8x256xf32> to vector<8x256xf32>
    %521 = arith.mulf %518, %520 : vector<8x256xf32>
    %c241_i32_455 = arith.constant 241 : i32
    %522 = tpu.dynamic_rotate %497 by %c241_i32_455 dim 1 : vector<8x256xf32>, i32 -> vector<8x256xf32>
    %c6_456 = arith.constant 6 : index
    %c0_457 = arith.constant 0 : index
    %c0_458 = arith.constant 0 : index
    %523 = vector.load %arg5[%c6_456, %c0_457, %c0_458] : memref<9x8x256xf32, #tpu.memory_space<vmem>>, vector<1x8x256xf32>
    %524 = vector.shape_cast %523 : vector<1x8x256xf32> to vector<8x256xf32>
    %525 = arith.mulf %522, %524 : vector<8x256xf32>
    %c240_i32_459 = arith.constant 240 : i32
    %526 = tpu.dynamic_rotate %497 by %c240_i32_459 dim 1 : vector<8x256xf32>, i32 -> vector<8x256xf32>
    %c7_460 = arith.constant 7 : index
    %c0_461 = arith.constant 0 : index
    %c0_462 = arith.constant 0 : index
    %527 = vector.load %arg5[%c7_460, %c0_461, %c0_462] : memref<9x8x256xf32, #tpu.memory_space<vmem>>, vector<1x8x256xf32>
    %528 = vector.shape_cast %527 : vector<1x8x256xf32> to vector<8x256xf32>
    %529 = arith.mulf %526, %528 : vector<8x256xf32>
    %c239_i32_463 = arith.constant 239 : i32
    %530 = tpu.dynamic_rotate %497 by %c239_i32_463 dim 1 : vector<8x256xf32>, i32 -> vector<8x256xf32>
    %c8_464 = arith.constant 8 : index
    %c0_465 = arith.constant 0 : index
    %c0_466 = arith.constant 0 : index
    %531 = vector.load %arg5[%c8_464, %c0_465, %c0_466] : memref<9x8x256xf32, #tpu.memory_space<vmem>>, vector<1x8x256xf32>
    %532 = vector.shape_cast %531 : vector<1x8x256xf32> to vector<8x256xf32>
    %533 = arith.mulf %530, %532 : vector<8x256xf32>
    %534 = tpu.concatenate %505, %509, %513, %517, %497, %521, %525, %529, %533 in 0 : vector<8x256xf32>, vector<8x256xf32>, vector<8x256xf32>, vector<8x256xf32>, vector<8x256xf32>, vector<8x256xf32>, vector<8x256xf32>, vector<8x256xf32>, vector<8x256xf32> -> vector<72x256xf32>
    %535 = arith.truncf %534 : vector<72x256xf32> to vector<72x256xbf16>
    %cst_467 = arith.constant dense<0.000000e+00> : vector<8x256xf32>
    %536 = tpu.matmul %499, %535, %cst_467 {dimension_numbers = #tpu.dot_dimension_numbers<[1], [0], [0], [1], [0, 0, 1, 1], [], []>} : vector<8x72xbf16>, vector<72x256xbf16>, vector<8x256xf32> -> vector<8x256xf32>
    %537 = vector.broadcast %501 : vector<8x1xf32> to vector<8x256xf32>
    %538 = arith.addf %536, %537 : vector<8x256xf32>
    %539 = vector.extract_strided_slice %538 {offsets = [0, 0], sizes = [1, 256], strides = [1, 1]} : vector<8x256xf32> to vector<1x256xf32>
    %540 = arith.addf %539, %366 : vector<1x256xf32>
    %c0_468 = arith.constant 0 : index
    %c0_469 = arith.constant 0 : index
    %c0_470 = arith.constant 0 : index
    %541 = vector.load %arg6[%c0_468, %c0_469, %c0_470] : memref<1x1x256xf32, #tpu.memory_space<vmem>>, vector<1x1x256xf32>
    %542 = vector.shape_cast %541 : vector<1x1x256xf32> to vector<1x256xf32>
    %543 = vector.shape_cast %540 : vector<1x256xf32> to vector<1x1x256xf32>
    tpu.vector_store %arg6[%c0_468, %c0_469, %c0_470], %543 {strides = array<i32>} : memref<1x1x256xf32, #tpu.memory_space<vmem>>, vector<1x1x256xf32>,
    %c0_471 = arith.constant 0 : index
    %c0_472 = arith.constant 0 : index
    %c0_473 = arith.constant 0 : index
    %544 = vector.load %arg7[%c0_471, %c0_472, %c0_473] : memref<1x1x256xf32, #tpu.memory_space<vmem>>, vector<1x1x256xf32>
    %545 = vector.shape_cast %544 : vector<1x1x256xf32> to vector<1x256xf32>
    %546 = vector.shape_cast %361 : vector<1x256xf32> to vector<1x1x256xf32>
    tpu.vector_store %arg7[%c0_471, %c0_472, %c0_473], %546 {strides = array<i32>} : memref<1x1x256xf32, #tpu.memory_space<vmem>>, vector<1x1x256xf32>,
    return
  }
  func.func @transform_0(%arg0: i32) -> (i32, i32, i32) {
    %c0_i32 = arith.constant 0 : i32
    %c0_i32_0 = arith.constant 0 : i32
    %c0_i32_1 = arith.constant 0 : i32
    return %arg0, %c0_i32, %c0_i32_0 : i32, i32, i32
  }
  func.func @transform_1(%arg0: i32) -> (i32, i32, i32) {
    %c0_i32 = arith.constant 0 : i32
    %c0_i32_0 = arith.constant 0 : i32
    %c0_i32_1 = arith.constant 0 : i32
    return %arg0, %c0_i32, %c0_i32_0 : i32, i32, i32
  }
  func.func @transform_2(%arg0: i32) -> (i32, i32, i32) {
    %c0_i32 = arith.constant 0 : i32
    %c0_i32_0 = arith.constant 0 : i32
    %c0_i32_1 = arith.constant 0 : i32
    %c0_i32_2 = arith.constant 0 : i32
    return %c0_i32, %c0_i32_0, %c0_i32_1 : i32, i32, i32
  }
  func.func @transform_3(%arg0: i32) -> (i32, i32, i32) {
    %c0_i32 = arith.constant 0 : i32
    %c0_i32_0 = arith.constant 0 : i32
    %c0_i32_1 = arith.constant 0 : i32
    %c0_i32_2 = arith.constant 0 : i32
    return %c0_i32, %c0_i32_0, %c0_i32_1 : i32, i32, i32
  }
  func.func @transform_4(%arg0: i32) -> (i32, i32, i32) {
    %c0_i32 = arith.constant 0 : i32
    %c0_i32_0 = arith.constant 0 : i32
    %c0_i32_1 = arith.constant 0 : i32
    %c0_i32_2 = arith.constant 0 : i32
    return %c0_i32, %c0_i32_0, %c0_i32_1 : i32, i32, i32
  }
  func.func @transform_5(%arg0: i32) -> (i32, i32, i32) {
    %c0_i32 = arith.constant 0 : i32
    %c0_i32_0 = arith.constant 0 : i32
    %c0_i32_1 = arith.constant 0 : i32
    return %arg0, %c0_i32, %c0_i32_0 : i32, i32, i32
  }
  func.func @transform_6(%arg0: i32) -> (i32, i32, i32) {
    %c0_i32 = arith.constant 0 : i32
    %c0_i32_0 = arith.constant 0 : i32
    %c0_i32_1 = arith.constant 0 : i32
    return %arg0, %c0_i32, %c0_i32_0 : i32, i32, i32
  }
}

</mosaic_0001>

<bundles_post_ra>
// kernel: _lambda_.1
= control target key start
LH: loop header
LB: loop body
LE: loop exit
PB: predicated region body
PF: predicated region fallthrough
CT: control target
= control target key end

     0   :  { %12 = vsyncpa [#allocation3], 0  ;;  %s3759_s0 = inlined_call_operand.vmem [shape: f32[2,1,256], index: 0, kind: input, shape index: {}]   ;;  %s3760_s1 = inlined_call_operand.vmem [shape: f32[2,1,256], index: 1, kind: input, shape index: {}]   ;;  %s3761_s2 = inlined_call_operand.vmem [shape: bf16[12,8,72], index: 2, kind: input, shape index: {}]   ;;  %s3762_s3 = inlined_call_operand.hbm [shape: f32[12,8,1], index: 3, kind: input, shape index: {}]   ;;  %s3763_s4 = inlined_call_operand.hbm [shape: f32[9,8,256], index: 4, kind: input, shape index: {}]   ;;  %s3764_s5 = inlined_call_operand.vmem [shape: f32[2,1,256], index: 5, kind: output, shape index: {0}]   ;;  %s3765_s6 = inlined_call_operand.vmem [shape: f32[2,1,256], index: 6, kind: output, shape index: {1}]  }
   0x1   :  { %13 = vsyncpa [#allocation5], 0  ;;  %s2468_s21 = smov 0  }
   0x2 LB: > { %s2416_s22 = smov [#allocation2]   ;;  %s2474_s24 = sadd.s32 4294967295, %s2414_s21   ;;  %s2414_s21 = sphi %s2468_s21, %s19_s21  }
   0x3   : > { %s206_s23 = sshll.u32 %s2416_s22, 4  ;;  %p2190_p0 = scmp.ge.s32.totalorder %s2414_s21, 1  ;;  %s207_s23 = int_to_ptr.vmem [resolvable:$true] %s206_s23 }
   0x4   : > { %p191_p1 = scmp.lt.s32.totalorder %s2414_s21, 3  ;;  %p3766_p3 = scmp.eq.s32.totalorder %s2474_s24, 0 }
   0x5   : > { %s2417_s26 = smov [#allocation4]   ;;  %s2344_s7 = scalar_lea.hbm %s3762_s3, 1536 }
   0x6   : > { %p2478_p2 = pnand %p2190_p0, %p191_p1  ;;  %s219_s27 = sshll.u32 %s2417_s26, 4  ;;  %s2491_s27 = int_to_ptr.vmem [resolvable:$true] %s219_s27 }
   0x7   : > { %p2345_p6 = scmp.ne.s32.totalorder %s3762_s3, %s2344_s7  ;;  %p2351_p10 = scmp.lt.u32.totalorder %s2344_s7, %s3762_s3 }
   0x8   : > { %s3768_s25 = scalar_select %p2478_p2, 1, 0 }
   0x9   : > { %p2264_p4 = pneg %p2478_p2 }
   0xb   : > { %p2487_p5 = pnand %p3766_p3, %p2264_p4 }
   0xd   : > { %p2346_p7 = pneg %p2487_p5 }
   0xf   : > { %p2347_p8 = pnand %p2346_p7, %p2345_p6 }
  0x11   : > { %p2348_p9 = pneg %p2347_p8 }
  0x13   : > { %p2353_p11 = pnand %p2351_p10, %p2348_p9 }
  0x15   : > { %2356 = shalt.err (!%p2353_p11)
}
  0x16   : > { %s2357_s12 = scalar_lea.vmem %s207_s23, 1536  ;;  %p2365_p1 = scmp.lt.s32.totalorder %s207_s23, %s207_s23 }
  0x17   : > { %p2358_p12 = scmp.ne.s32.totalorder %s207_s23, %s2357_s12  ;;  %p2366_p4 = scmp.lt.s32.totalorder %s2357_s12, %s2357_s12 }
  0x19   : > { %p2360_p13 = pnand %p2358_p12, %p2346_p7  ;;  %p2367_p3 = por %p2366_p4, %p2365_p1 }
  0x1b   : > { %p2361_p0 = pneg %p2360_p13 }
  0x1d   : > { %p2368_p2 = pnand %p2367_p3, %p2361_p0 }
  0x1f   : > { %2371 = shalt.err (!%p2368_p2)
}
  0x20   : > { %s2418_s13 = smov 128   ;;  %s2419_s14 = smov 8  }
  0x21   : > { %2267 = dma.hbm_to_vmem [thread:$0]  (!%p2487_p5), %s3762_s3, 1536, %s207_s23, [#allocation3], %s2418_s13, %s2418_s13, %s2419_s14  }
  0x22   : > { %s2372_s19 = scalar_lea.hbm %s3763_s4, 2304 }
  0x23   : > { %p2373_p6 = scmp.ne.s32.totalorder %s3763_s4, %s2372_s19  ;;  %p2379_p8 = scmp.lt.u32.totalorder %s2372_s19, %s3763_s4 }
  0x25   : > { %p2375_p2 = pnand %p2373_p6, %p2346_p7 }
  0x27   : > { %p2376_p3 = pneg %p2375_p2 }
  0x29   : > { %p2381_p9 = pnand %p2379_p8, %p2376_p3 }
  0x2b   : > { %2384 = shalt.err (!%p2381_p9)
}
  0x2c   : > { %s2385_s23 = scalar_lea.vmem %s2491_s27, 2304  ;;  %p2393_p13 = scmp.lt.s32.totalorder %s2491_s27, %s2491_s27 }
  0x2d   : > { %p2386_p10 = scmp.ne.s32.totalorder %s2491_s27, %s2385_s23  ;;  %p2394_p0 = scmp.lt.s32.totalorder %s2385_s23, %s2385_s23 }
  0x2f   : > { %p2388_p11 = pnand %p2386_p10, %p2346_p7  ;;  %p2395_p1 = por %p2394_p0, %p2393_p13 }
  0x31   : > { %p2389_p12 = pneg %p2388_p11 }
  0x33   : > { %p2396_p4 = pnand %p2395_p1, %p2389_p12 }
  0x35   : > { %2399 = shalt.err (!%p2396_p4)
}
  0x36   : > { %s2420_s30 = smov 256   ;;  %s2421_s7 = smov 16  }
  0x37   : > { %2270 = dma.hbm_to_vmem [thread:$0]  (!%p2487_p5), %s3763_s4, 2304, %s2491_s27, [#allocation5], %s2420_s30, %s2420_s30, %s2421_s7  }
  0x38   : > { %p3770_p6 = scmp.ne.s32.totalorder %s3768_s25, 0 }
  0x39   : > { %p3771_p7 = scmp.eq.s32.totalorder (!%p3770_p6), %s2474_s24, 0 }
  0x3a   : > { %249 = sbr.rel (%p3770_p6) target bundleno = 4570 (0x11da), region = 40 }
  0x41   : > { %2405 = dma.done.wait (%p3771_p7), [#allocation3], 1536   ;;  %p3772_p2 = pmov %p3771_p7 }
  0x43   : > { %2407 = vsyncadd (%p3772_p2), [#allocation3], 4294965760  ;;  %p3773_p3 = pmov %p3772_p2 }
  0x44   : > { %p3774_p8 = pmov %p3772_p2 }
  0x45   : > { %2409 = dma.done.wait (%p3773_p3), [#allocation5], 2304  }
  0x46   : > { %2411 = vsyncadd (%p3774_p8), [#allocation5], 4294964992  ;;  %p289_p9 = scmp.lt.s32.totalorder %s2474_s24, 1  ;;  %v313_v2 = vlaneseq  ;;  %vm323_vm0 = vcmask 1040384   ;;  %s2423_s14 = smov 17   ;;  %v2428_v14 = vmov 0  }
  0x47   : > { %s2424_s15 = smov 15   ;;  %s2425_s16 = smov 1   ;;  %483 = vmatprep.mubr.bf16.mxu0 %v2428_v14  ;;  %2300 = vset.pattern.permute.xlu0 %v2428_v14  ;;  %v327_v15 = vld [vmem:[#allocation2] sm:$0xff]  ;;  %v2607_v19 = vld [vmem:[#allocation4 + $0x8] sm:$0xff]  ;;  %v2609_v20 = vld [vmem:[#allocation4 + $0x18] sm:$0xff]  ;;  %vm2431_vm6 = vmmov 1  }
  0x48   : > { %s3778_s24 = smov (!%p289_p9, %s2474_s24), 1  ;;  %v2565_v4 = vshrl.u32 %v313_v2, 7  ;;  %s2426_s17 = smov 127   ;;  %618 = vmatprep.mubr.bf16.mxu1 %v2428_v14  ;;  %2301 = vset.pattern.permute.xlu1 %v2428_v14  ;;  %v2603_v16 = vand.u32 127, %v313_v2  ;;  %v2611_v21 = vld [vmem:[#allocation4] sm:$0xff]  ;;  %v2613_v22 = vld [vmem:[#allocation4 + $0x10] sm:$0xff]  ;;  %vm2201_vm7 = vmpackc.low %vm2431_vm6, %vm323_vm0 }
  0x49   : > { %s2552_s27 = sshll.u32 %s3778_s24, 1  ;;  %s2422_s24 = smov 16   ;;  %v2629_v37 = vld [vmem:[#allocation4 + $0x20] sm:$0xff]  ;;  %v2631_v38 = vld [vmem:[#allocation4 + $0x28] sm:$0xff]  ;;  %v2637_v41 = vld [vmem:[#allocation4 + $0x30] sm:$0xff]  ;;  %vm444_vm11 = vcmask 1043456  }
  0x4a   : > { %s292_s10 = scalar_lea.vmem %s3759_s0, %s2552_s27  ;;  %s296_s13 = scalar_lea.vmem %s3760_s1, %s2552_s27  ;;  %v315_v6 = vsub.s32 0, %v2565_v4  ;;  %v319_v7 = vsub.s32 1, %v2565_v4  ;;  %vm334_vm1 = vcmp.lt.s32.totalorder %v2603_v16, 17  ;;  %vm345_vm2 = vcmp.lt.s32.totalorder %v2603_v16, 16  ;;  %v2639_v42 = vld [vmem:[#allocation4 + $0x38] sm:$0xff]  ;;  %v2650_v51 = vld [vmem:[#allocation4 + $0x50] sm:$0xff] }
  0x4b   : > { %v306_v0 = vld [vmem:[%s292_s10] sm:$0x3]  ;;  %s2427_s18 = smov 113   ;;  %s2429_s19 = smov 112   ;;  %vm357_vm3 = vcmp.lt.s32.totalorder %v2603_v16, 15  ;;  %vm369_vm4 = vcmp.lt.s32.totalorder %v2603_v16, 1 }
  0x4c   : > { %v309_v1 = vadd.f32 1e-06, %v306_v0  ;;  %v2562_v3 = vld [vmem:[%s296_s13] sm:$0x3]  ;;  %s2430_s20 = smov 111   ;;  %vm381_vm5 = vcmp.lt.s32.totalorder %v2603_v16, 127  ;;  %s304_s30 = scalar_lea.vmem %s3765_s6, %s2552_s27 }
  0x4d   : > { %v308_v5 = vmul.f32 %v2562_v3, %v306_v0  ;;  %v2652_v52 = vld [vmem:[#allocation4 + $0x58] sm:$0xff]  ;;  %vm393_vm8 = vcmp.lt.s32.totalorder %v2603_v16, 113  ;;  %vm405_vm9 = vcmp.lt.s32.totalorder %v2603_v16, 112  ;;  %vm417_vm10 = vcmp.lt.s32.totalorder %v2603_v16, 111 }
  0x4e   : > { %2302 = vrcp.f32 %v309_v1  ;;  %v2666_v1 = vld [vmem:[#allocation4 + $0x60] sm:$0xff]  ;;  %vm440_vm12 = vcmask 588800   ;;  %vm926_vm13 = vcmask 1041408   ;;  %vm3357_vm15 = vcmp.lt.s32.totalorder %v313_v2, 256 }
  0x4f   : > { %vm2219_vm14 = vmpackc.low %vm2431_vm6, %vm926_vm13 }
  0x58   : > { %v2303_v8 = vpop.eup %2302 }
  0x59   : > { %v311_v9 = vmul.f32 %v2303_v8, %v308_v5  ;;  %v2668_v5 = vld [vmem:[#allocation4 + $0x68] sm:$0xff] }
  0x5b   : > { %v2572_v10 = vrot.slane %v311_v9, %v315_v6  ;;  %v2576_v11 = vrot.slane %v311_v9, %v319_v7 }
  0x5d   : > { %v324_v12 = vsel %vm323_vm0, %v2572_v10, 0.0  ;;  %v325_v13 = vsel %vm323_vm0, %v2576_v11, 0.0 }
  0x5e   : > { %341 = vrot.lane.b32.xlu1 %v324_v12, %s2422_s24  ;;  %328 = vrot.lane.b32.xlu0 %v324_v12, %s2423_s14 }
  0x62   : > { %343 = vrot.lane.b32.xlu1 %v325_v13, %s2422_s24  ;;  %330 = vrot.lane.b32.xlu0 %v325_v13, %s2423_s14 }
  0x66   : > { %355 = vrot.lane.b32.xlu1 %v325_v13, %s2424_s15  ;;  %353 = vrot.lane.b32.xlu0 %v324_v12, %s2424_s15 }
  0x6a   : > { %367 = vrot.lane.b32.xlu1 %v325_v13, %s2425_s16  ;;  %365 = vrot.lane.b32.xlu0 %v324_v12, %s2425_s16 }
  0x6e   : > { %379 = vrot.lane.b32.xlu1 %v325_v13, %s2426_s17  ;;  %377 = vrot.lane.b32.xlu0 %v324_v12, %s2426_s17 }
  0x72   : > { %391 = vrot.lane.b32.xlu1 %v325_v13, %s2427_s18  ;;  %389 = vrot.lane.b32.xlu0 %v324_v12, %s2427_s18 }
  0x76   : > { %403 = vrot.lane.b32.xlu1 %v325_v13, %s2429_s19  ;;  %401 = vrot.lane.b32.xlu0 %v324_v12, %s2429_s19 }
  0x7a   : > { %415 = vrot.lane.b32.xlu1 %v325_v13, %s2430_s20  ;;  %413 = vrot.lane.b32.xlu0 %v324_v12, %s2430_s20  ;;  %v2674_v12 = vld [vmem:[#allocation4 + $0x70] sm:$0xff]  ;;  %v2676_v13 = vld [vmem:[#allocation4 + $0x78] sm:$0xff] }
  0x7e   : > { %437 = vperm.xlu0 %2300, %v327_v15  }
  0xd0   : > { %v342_v17 = vpop.permute.xlu1 %341  ;;  %v329_v18 = vpop.permute.xlu0 %328 }
  0xd4   : > { %v344_v23 = vpop.permute.xlu1 %343  ;;  %v331_v24 = vpop.permute.xlu0 %330 }
  0xd5   : > { %v347_v25 = vsel %vm345_vm2, %v344_v23, %v342_v17  ;;  %v336_v26 = vsel %vm334_vm1, %v331_v24, %v329_v18  ;;  %v335_v27 = vsel %vm334_vm1, %v329_v18, %v331_v24  ;;  %v346_v28 = vsel %vm345_vm2, %v342_v17, %v344_v23 }
  0xd6   : > { %v340_v29 = vmul.f32 %v2607_v19, %v335_v27  ;;  %v352_v30 = vmul.f32 %v2609_v20, %v346_v28  ;;  %v339_v31 = vmul.f32 %v2611_v21, %v336_v26  ;;  %v351_v32 = vmul.f32 %v2613_v22, %v347_v25  ;;  %v2687_v28 = vld [vmem:[#allocation4 + $0x88] sm:$0xff] }
  0xd8   : > { %v356_v33 = vpop.permute.xlu1 %355  ;;  %v354_v34 = vpop.permute.xlu0 %353  ;;  %v426_v35 = vpack.c.bf16 %v352_v30, %v340_v29  ;;  %v425_v36 = vpack.c.bf16 %v351_v32, %v339_v31  ;;  %v2689_v29 = vld [vmem:[#allocation4 + $0x80] sm:$0xff] }
  0xd9   : > { %v358_v39 = vsel %vm357_vm3, %v354_v34, %v356_v33  ;;  %v359_v40 = vsel %vm357_vm3, %v356_v33, %v354_v34 }
  0xda   : > { %451 = vmatprep.subr.bf16.mxu0 %v426_v35  ;;  %v363_v47 = vmul.f32 %v2629_v37, %v359_v40  ;;  %v364_v48 = vmul.f32 %v2631_v38, %v358_v39 }
  0xdb   : > { %452 = vmatpush1.bf16.msra.mxu0 %v425_v36 }
  0xdc   : > { %v368_v43 = vpop.permute.xlu1 %367  ;;  %v366_v44 = vpop.permute.xlu0 %365 }
  0xdd   : > { %v370_v45 = vsel %vm369_vm4, %v366_v44, %v368_v43  ;;  %v371_v46 = vsel %vm369_vm4, %v368_v43, %v366_v44 }
  0xde   : > { %v375_v49 = vmul.f32 %v2637_v41, %v371_v46  ;;  %v376_v50 = vmul.f32 %v2639_v42, %v370_v45  ;;  %v326_v45 = vld [vmem:[%s3761_s2] sm:$0xf] }
  0xe0   : > { %v380_v53 = vpop.permute.xlu1 %379  ;;  %v378_v54 = vpop.permute.xlu0 %377  ;;  %v428_v55 = vpack.c.bf16 %v376_v50, %v364_v48  ;;  %v427_v56 = vpack.c.bf16 %v375_v49, %v363_v47 }
  0xe1   : > { %v382_v57 = vsel %vm381_vm5, %v378_v54, %v380_v53  ;;  %v383_v58 = vsel %vm381_vm5, %v380_v53, %v378_v54 }
  0xe2   : > { %v387_v59 = vmul.f32 %v2650_v51, %v382_v57  ;;  %v388_v60 = vmul.f32 %v2652_v52, %v383_v58  ;;  %453 = vmatprep.subr.bf16.mxu0 %v428_v55  ;;  %v497_v57 = vld [vmem:[#allocation2 + $0x8] sm:$0xff] }
  0xe3   : > { %454 = vmatpush1.bf16.msra.mxu0 %v427_v56 }
  0xe4   : > { %v2202_v61 = vpack.c.bf16 %v388_v60, %v2576_v11  ;;  %v2205_v62 = vpack.c.bf16 %v387_v59, %v2572_v10  ;;  %v392_v63 = vpop.permute.xlu1 %391  ;;  %v390_v0 = vpop.permute.xlu0 %389 }
  0xe5   : > { %v394_v8 = vsel %vm393_vm8, %v390_v0, %v392_v63  ;;  %v395_v9 = vsel %vm393_vm8, %v392_v63, %v390_v0 }
  0xe6   : > { %2203 = vmatprep.subr.msk.bf16.mxu0 %vm2201_vm7, %v2202_v61  ;;  %v399_v24 = vmul.f32 %v2666_v1, %v394_v8  ;;  %v400_v25 = vmul.f32 %v2668_v5, %v395_v9 }
  0xe7   : > { %2206 = vmatpush1.bf16.msk.msra.mxu0 %vm2201_vm7, %v2205_v62 }
  0xe8   : > { %v404_v15 = vpop.permute.xlu1 %403  ;;  %v402_v17 = vpop.permute.xlu0 %401 }
  0xe9   : > { %v406_v18 = vsel %vm405_vm9, %v402_v17, %v404_v15  ;;  %v407_v23 = vsel %vm405_vm9, %v404_v15, %v402_v17 }
  0xea   : > { %v411_v26 = vmul.f32 %v2674_v12, %v406_v18  ;;  %v412_v27 = vmul.f32 %v2676_v13, %v407_v23 }
  0xec   : > { %v416_v30 = vpop.permute.xlu1 %415  ;;  %v414_v31 = vpop.permute.xlu0 %413  ;;  %v432_v32 = vpack.c.bf16 %v412_v27, %v400_v25  ;;  %v431_v33 = vpack.c.bf16 %v411_v26, %v399_v24 }
  0xed   : > { %v418_v34 = vsel %vm417_vm10, %v414_v31, %v416_v30  ;;  %v419_v35 = vsel %vm417_vm10, %v416_v30, %v414_v31 }
  0xee   : > { %v424_v36 = vmul.f32 %v2687_v28, %v419_v35  ;;  %457 = vmatprep.subr.bf16.mxu0 %v432_v32  ;;  %v423_v39 = vmul.f32 %v2689_v29, %v418_v34 }
  0xef   : > { %458 = vmatpush1.bf16.msra.mxu0 %v431_v33 }
  0xf0   : > { %v434_v40 = vpack.c.bf16 %v424_v36, %v424_v36  ;;  %v433_v43 = vpack.c.bf16 %v423_v39, %v423_v39 }
  0xf2   : > { %2207 = vmatprep.subr.msk.bf16.mxu0 %vm444_vm11, %v434_v40  ;;  %v446_v44 = vsel %vm444_vm11, %v433_v43, 0 }
  0xf3   : > { %460 = vmatpush1.bf16.msra.mxu0 %v446_v44 }
  0xf6   : > { %2208 = vmatmul.mubr.msk.bf16.vlgmr.msra.gmra.mrb[0].mxu0 %vm440_vm12, %v326_v45 }
  0xf7   : > { %753 = vmatprep.mubr.bf16.mxu0 %v2428_v14 }
  0xfd   : > { %v438_v46 = vpop.permute.xlu0 %437 }
 0x1c9   : > { %v485_v47 = vpop.f32.mrb[0].mxu0 }
 0x1ca   : > { %v486_v48 = vadd.f32 %v485_v47, %v438_v46  ;;  %v487_v49 = vpop.f32.mrb[1].mxu0 }
 0x1cb   : > { %v489_v50 = vpop.f32.mrb[2].mxu0  ;;  %v488_v54 = vadd.f32 %v487_v49, %v438_v46 }
 0x1cc   : > { %v2704_v53 = vmax.f32 %v486_v48, 0.0  ;;  %v490_v55 = vpop.f32.mrb[3].mxu0 }
 0x1cd   : > { %v493_v56 = vmax.f32 %v488_v54, 0.0 }
 0x1ce   : > { %506 = vrot.lane.b32.xlu0 %v2704_v53, %s2422_s24  ;;  %498 = vrot.lane.b32.xlu1 %v2704_v53, %s2423_s14 }
 0x1d2   : > { %514 = vrot.lane.b32.xlu0 %v2704_v53, %s2424_s15  ;;  %500 = vrot.lane.b32.xlu1 %v493_v56, %s2423_s14 }
 0x1d6   : > { %522 = vrot.lane.b32.xlu0 %v2704_v53, %s2425_s16  ;;  %508 = vrot.lane.b32.xlu1 %v493_v56, %s2422_s24 }
 0x1da   : > { %530 = vrot.lane.b32.xlu0 %v2704_v53, %s2426_s17  ;;  %516 = vrot.lane.b32.xlu1 %v493_v56, %s2424_s15 }
 0x1de   : > { %538 = vrot.lane.b32.xlu0 %v2704_v53, %s2427_s18  ;;  %524 = vrot.lane.b32.xlu1 %v493_v56, %s2425_s16 }
 0x1e2   : > { %546 = vrot.lane.b32.xlu0 %v2704_v53, %s2429_s19  ;;  %532 = vrot.lane.b32.xlu1 %v493_v56, %s2426_s17 }
 0x1e6   : > { %554 = vrot.lane.b32.xlu0 %v2704_v53, %s2430_s20  ;;  %540 = vrot.lane.b32.xlu1 %v493_v56, %s2427_s18 }
 0x1ea   : > { %574 = vperm.xlu0 %2300, %v497_v57   ;;  %548 = vrot.lane.b32.xlu1 %v493_v56, %s2429_s19 }
 0x1ee   : > { %556 = vrot.lane.b32.xlu1 %v493_v56, %s2430_s20 }
 0x240   : > { %v507_v58 = vpop.permute.xlu0 %506  ;;  %v499_v59 = vpop.permute.xlu1 %498 }
 0x244   : > { %v515_v60 = vpop.permute.xlu0 %514  ;;  %v501_v61 = vpop.permute.xlu1 %500 }
 0x245   : > { %v503_v62 = vsel %vm334_vm1, %v501_v61, %v499_v59  ;;  %v502_v63 = vsel %vm334_vm1, %v499_v59, %v501_v61 }
 0x246   : > { %v505_v17 = vmul.f32 %v502_v63, %v2607_v19  ;;  %v504_v23 = vmul.f32 %v503_v62, %v2611_v21 }
 0x248   : > { %v523_v0 = vpop.permute.xlu0 %522  ;;  %v509_v8 = vpop.permute.xlu1 %508 }
 0x249   : > { %v511_v9 = vsel %vm345_vm2, %v509_v8, %v507_v58  ;;  %v510_v15 = vsel %vm345_vm2, %v507_v58, %v509_v8 }
 0x24a   : > { %v513_v18 = vmul.f32 %v510_v15, %v2609_v20  ;;  %v512_v24 = vmul.f32 %v511_v9, %v2613_v22 }
 0x24c   : > { %v517_v25 = vpop.permute.xlu1 %516  ;;  %v563_v26 = vpack.c.bf16 %v513_v18, %v505_v17  ;;  %v562_v27 = vpack.c.bf16 %v512_v24, %v504_v23  ;;  %v531_v30 = vpop.permute.xlu0 %530 }
 0x24d   : > { %v518_v31 = vsel %vm357_vm3, %v515_v60, %v517_v25  ;;  %v519_v32 = vsel %vm357_vm3, %v517_v25, %v515_v60 }
 0x24e   : > { %586 = vmatprep.subr.bf16.mxu1 %v563_v26  ;;  %v520_v36 = vmul.f32 %v519_v32, %v2629_v37  ;;  %v521_v39 = vmul.f32 %v518_v31, %v2631_v38 }
 0x24f   : > { %587 = vmatpush1.bf16.msra.mxu1 %v562_v27 }
 0x250   : > { %v525_v33 = vpop.permute.xlu1 %524  ;;  %v539_v44 = vpop.permute.xlu0 %538 }
 0x251   : > { %v526_v34 = vsel %vm369_vm4, %v523_v0, %v525_v33  ;;  %v527_v35 = vsel %vm369_vm4, %v525_v33, %v523_v0  ;;  %v2209_v33 = vld [vmem:[%s3761_s2 + $0x4] sm:$0xf] }
 0x252   : > { %v528_v40 = vmul.f32 %v527_v35, %v2637_v41  ;;  %v529_v43 = vmul.f32 %v526_v34, %v2639_v42 }
 0x254   : > { %v533_v45 = vpop.permute.xlu1 %532  ;;  %v565_v46 = vpack.c.bf16 %v529_v43, %v521_v39  ;;  %v564_v47 = vpack.c.bf16 %v528_v40, %v520_v36  ;;  %v547_v59 = vpop.permute.xlu0 %546 }
 0x255   : > { %v534_v48 = vsel %vm381_vm5, %v531_v30, %v533_v45  ;;  %v535_v49 = vsel %vm381_vm5, %v533_v45, %v531_v30 }
 0x256   : > { %v536_v50 = vmul.f32 %v534_v48, %v2650_v51  ;;  %v537_v54 = vmul.f32 %v535_v49, %v2652_v52  ;;  %588 = vmatprep.subr.bf16.mxu1 %v565_v46 }
 0x257   : > { %589 = vmatpush1.bf16.msra.mxu1 %v564_v47  ;;  %v632_v47 = vld [vmem:[#allocation2 + $0x10] sm:$0xff] }
 0x258   : > { %v541_v55 = vpop.permute.xlu1 %540  ;;  %v567_v57 = vpack.c.bf16 %v537_v54, %v493_v56  ;;  %v566_v58 = vpack.c.bf16 %v536_v50, %v2704_v53  ;;  %v555_v15 = vpop.permute.xlu0 %554 }
 0x259   : > { %v542_v60 = vsel %vm393_vm8, %v539_v44, %v541_v55  ;;  %v543_v61 = vsel %vm393_vm8, %v541_v55, %v539_v44 }
 0x25a   : > { %590 = vmatprep.subr.bf16.mxu1 %v567_v57  ;;  %v544_v56 = vmul.f32 %v542_v60, %v2666_v1  ;;  %v545_v53 = vmul.f32 %v543_v61, %v2668_v5 }
 0x25b   : > { %591 = vmatpush1.bf16.msra.mxu1 %v566_v58 }
 0x25c   : > { %v549_v62 = vpop.permute.xlu1 %548 }
 0x25d   : > { %v550_v63 = vsel %vm405_vm9, %v547_v59, %v549_v62  ;;  %v551_v0 = vsel %vm405_vm9, %v549_v62, %v547_v59 }
 0x25e   : > { %v552_v8 = vmul.f32 %v550_v63, %v2674_v12  ;;  %v553_v9 = vmul.f32 %v551_v0, %v2676_v13 }
 0x260   : > { %v557_v17 = vpop.permute.xlu1 %556  ;;  %v569_v18 = vpack.c.bf16 %v553_v9, %v545_v53  ;;  %v568_v23 = vpack.c.bf16 %v552_v8, %v544_v56 }
 0x261   : > { %v558_v24 = vsel %vm417_vm10, %v555_v15, %v557_v17  ;;  %v559_v25 = vsel %vm417_vm10, %v557_v17, %v555_v15 }
 0x262   : > { %v561_v26 = vmul.f32 %v559_v25, %v2687_v28  ;;  %592 = vmatprep.subr.bf16.mxu1 %v569_v18  ;;  %v560_v27 = vmul.f32 %v558_v24, %v2689_v29 }
 0x263   : > { %593 = vmatpush1.bf16.msra.mxu1 %v568_v23 }
 0x264   : > { %v571_v30 = vpack.c.bf16 %v561_v26, %v561_v26  ;;  %v570_v31 = vpack.c.bf16 %v560_v27, %v560_v27 }
 0x266   : > { %2210 = vmatprep.subr.msk.bf16.mxu1 %vm444_vm11, %v571_v30  ;;  %v581_v32 = vsel %vm444_vm11, %v570_v31, 0 }
 0x267   : > { %595 = vmatpush1.bf16.msra.mxu1 %v581_v32 }
 0x269   : > { %v575_v34 = vpop.permute.xlu0 %574 }
 0x26a   : > { %2211 = vmatmul.mubr.msk.bf16.vlgmr.msra.gmra.mrb[0].mxu1 %vm440_vm12, %v2209_v33 }
 0x26b   : > { %888 = vmatprep.mubr.bf16.mxu1 %v2428_v14 }
 0x33d   : > { %v620_v35 = vpop.f32.mrb[0].mxu1 }
 0x33e   : > { %v621_v36 = vadd.f32 %v620_v35, %v575_v34  ;;  %v622_v39 = vpop.f32.mrb[1].mxu1 }
 0x33f   : > { %v623_v40 = vadd.f32 %v622_v39, %v575_v34  ;;  %v624_v43 = vpop.f32.mrb[2].mxu1 }
 0x340   : > { %v2786_v44 = vmax.f32 %v621_v36, 0.0  ;;  %v625_v45 = vpop.f32.mrb[3].mxu1 }
 0x341   : > { %v628_v46 = vmax.f32 %v623_v40, 0.0 }
 0x342   : > { %633 = vrot.lane.b32.xlu1 %v2786_v44, %s2423_s14 }
 0x343   : > { %635 = vrot.lane.b32.xlu0 %v628_v46, %s2423_s14 }
 0x346   : > { %641 = vrot.lane.b32.xlu1 %v2786_v44, %s2422_s24 }
 0x347   : > { %643 = vrot.lane.b32.xlu0 %v628_v46, %s2422_s24 }
 0x34a   : > { %649 = vrot.lane.b32.xlu1 %v2786_v44, %s2424_s15 }
 0x34b   : > { %651 = vrot.lane.b32.xlu0 %v628_v46, %s2424_s15 }
 0x34e   : > { %657 = vrot.lane.b32.xlu1 %v2786_v44, %s2425_s16 }
 0x34f   : > { %659 = vrot.lane.b32.xlu0 %v628_v46, %s2425_s16 }
 0x352   : > { %665 = vrot.lane.b32.xlu1 %v2786_v44, %s2426_s17 }
 0x353   : > { %667 = vrot.lane.b32.xlu0 %v628_v46, %s2426_s17 }
 0x356   : > { %673 = vrot.lane.b32.xlu1 %v2786_v44, %s2427_s18 }
 0x357   : > { %675 = vrot.lane.b32.xlu0 %v628_v46, %s2427_s18 }
 0x35a   : > { %681 = vrot.lane.b32.xlu1 %v2786_v44, %s2429_s19 }
 0x35b   : > { %683 = vrot.lane.b32.xlu0 %v628_v46, %s2429_s19 }
 0x35e   : > { %689 = vrot.lane.b32.xlu1 %v2786_v44, %s2430_s20 }
 0x35f   : > { %691 = vrot.lane.b32.xlu0 %v628_v46, %s2430_s20 }
 0x362   : > { %709 = vperm.xlu1 %2301, %v632_v47  }
 0x3b4   : > { %v634_v48 = vpop.permute.xlu1 %633 }
 0x3b5   : > { %v636_v49 = vpop.permute.xlu0 %635 }
 0x3b6   : > { %v637_v50 = vsel %vm334_vm1, %v634_v48, %v636_v49  ;;  %v638_v54 = vsel %vm334_vm1, %v636_v49, %v634_v48 }
 0x3b7   : > { %v639_v60 = vmul.f32 %v638_v54, %v2611_v21  ;;  %v640_v61 = vmul.f32 %v637_v50, %v2607_v19 }
 0x3b8   : > { %v642_v55 = vpop.permute.xlu1 %641 }
 0x3b9   : > { %v644_v57 = vpop.permute.xlu0 %643 }
 0x3ba   : > { %v645_v58 = vsel %vm345_vm2, %v642_v55, %v644_v57  ;;  %v646_v59 = vsel %vm345_vm2, %v644_v57, %v642_v55 }
 0x3bb   : > { %v647_v62 = vmul.f32 %v646_v59, %v2613_v22  ;;  %v648_v63 = vmul.f32 %v645_v58, %v2609_v20 }
 0x3bc   : > { %v650_v0 = vpop.permute.xlu1 %649 }
 0x3bd   : > { %v697_v56 = vpack.c.bf16 %v647_v62, %v639_v60  ;;  %v652_v53 = vpop.permute.xlu0 %651  ;;  %v698_v8 = vpack.c.bf16 %v648_v63, %v640_v61 }
 0x3be   : > { %v653_v9 = vsel %vm357_vm3, %v650_v0, %v652_v53  ;;  %v654_v15 = vsel %vm357_vm3, %v652_v53, %v650_v0 }
 0x3bf   : > { %721 = vmatprep.subr.bf16.mxu0 %v698_v8  ;;  %v655_v25 = vmul.f32 %v654_v15, %v2629_v37  ;;  %v656_v26 = vmul.f32 %v653_v9, %v2631_v38 }
 0x3c0   : > { %722 = vmatpush1.bf16.msra.mxu0 %v697_v56  ;;  %v658_v17 = vpop.permute.xlu1 %657 }
 0x3c1   : > { %v660_v18 = vpop.permute.xlu0 %659 }
 0x3c2   : > { %v661_v23 = vsel %vm369_vm4, %v658_v17, %v660_v18  ;;  %v662_v24 = vsel %vm369_vm4, %v660_v18, %v658_v17 }
 0x3c3   : > { %v663_v27 = vmul.f32 %v662_v24, %v2637_v41  ;;  %v664_v30 = vmul.f32 %v661_v23, %v2639_v42  ;;  %v2212_v23 = vld [vmem:[%s3761_s2 + $0x8] sm:$0xf] }
 0x3c4   : > { %v666_v31 = vpop.permute.xlu1 %665 }
 0x3c5   : > { %v699_v32 = vpack.c.bf16 %v663_v27, %v655_v25  ;;  %v668_v33 = vpop.permute.xlu0 %667  ;;  %v700_v34 = vpack.c.bf16 %v664_v30, %v656_v26 }
 0x3c6   : > { %v669_v35 = vsel %vm381_vm5, %v666_v31, %v668_v33  ;;  %v670_v36 = vsel %vm381_vm5, %v668_v33, %v666_v31 }
 0x3c7   : > { %v671_v39 = vmul.f32 %v669_v35, %v2650_v51  ;;  %v672_v40 = vmul.f32 %v670_v36, %v2652_v52  ;;  %723 = vmatprep.subr.bf16.mxu0 %v700_v34  ;;  %v767_v35 = vld [vmem:[#allocation2 + $0x18] sm:$0xff] }
 0x3c8   : > { %724 = vmatpush1.bf16.msra.mxu0 %v699_v32  ;;  %v674_v43 = vpop.permute.xlu1 %673 }
 0x3c9   : > { %v701_v45 = vpack.c.bf16 %v671_v39, %v2786_v44  ;;  %v676_v47 = vpop.permute.xlu0 %675  ;;  %v702_v48 = vpack.c.bf16 %v672_v40, %v628_v46 }
 0x3ca   : > { %v677_v49 = vsel %vm393_vm8, %v674_v43, %v676_v47  ;;  %v678_v50 = vsel %vm393_vm8, %v676_v47, %v674_v43 }
 0x3cb   : > { %725 = vmatprep.subr.bf16.mxu0 %v702_v48  ;;  %v679_v44 = vmul.f32 %v677_v49, %v2666_v1  ;;  %v680_v46 = vmul.f32 %v678_v50, %v2668_v5 }
 0x3cc   : > { %726 = vmatpush1.bf16.msra.mxu0 %v701_v45  ;;  %v682_v54 = vpop.permute.xlu1 %681 }
 0x3cd   : > { %v684_v55 = vpop.permute.xlu0 %683 }
 0x3ce   : > { %v685_v57 = vsel %vm405_vm9, %v682_v54, %v684_v55  ;;  %v686_v58 = vsel %vm405_vm9, %v684_v55, %v682_v54 }
 0x3cf   : > { %v687_v59 = vmul.f32 %v685_v57, %v2674_v12  ;;  %v688_v60 = vmul.f32 %v686_v58, %v2676_v13 }
 0x3d0   : > { %v690_v61 = vpop.permute.xlu1 %689 }
 0x3d1   : > { %v703_v62 = vpack.c.bf16 %v687_v59, %v679_v44  ;;  %v692_v63 = vpop.permute.xlu0 %691  ;;  %v704_v0 = vpack.c.bf16 %v688_v60, %v680_v46 }
 0x3d2   : > { %v693_v56 = vsel %vm417_vm10, %v690_v61, %v692_v63  ;;  %v694_v53 = vsel %vm417_vm10, %v692_v63, %v690_v61 }
 0x3d3   : > { %v695_v8 = vmul.f32 %v693_v56, %v2689_v29  ;;  %v696_v9 = vmul.f32 %v694_v53, %v2687_v28  ;;  %727 = vmatprep.subr.bf16.mxu0 %v704_v0 }
 0x3d4   : > { %728 = vmatpush1.bf16.msra.mxu0 %v703_v62 }
 0x3d5   : > { %v705_v15 = vpack.c.bf16 %v695_v8, %v695_v8  ;;  %v706_v17 = vpack.c.bf16 %v696_v9, %v696_v9 }
 0x3d7   : > { %2213 = vmatprep.subr.msk.bf16.mxu0 %vm444_vm11, %v706_v17  ;;  %v716_v18 = vsel %vm444_vm11, %v705_v15, 0 }
 0x3d8   : > { %730 = vmatpush1.bf16.msra.mxu0 %v716_v18 }
 0x3db   : > { %2214 = vmatmul.mubr.msk.bf16.vlgmr.msra.gmra.mrb[4].mxu0 %vm440_vm12, %v2212_v23 }
 0x3dc   : > { %1053 = vmatprep.mubr.bf16.mxu0 %v2428_v14 }
 0x3e1   : > { %v710_v24 = vpop.permute.xlu1 %709 }
 0x4ae   : > { %v755_v25 = vpop.f32.mrb[4].mxu0 }
 0x4af   : > { %v756_v26 = vadd.f32 %v755_v25, %v710_v24  ;;  %v757_v27 = vpop.f32.mrb[5].mxu0 }
 0x4b0   : > { %v758_v30 = vadd.f32 %v757_v27, %v710_v24  ;;  %v759_v31 = vpop.f32.mrb[6].mxu0 }
 0x4b1   : > { %v2868_v32 = vmax.f32 %v756_v26, 0.0  ;;  %v760_v33 = vpop.f32.mrb[7].mxu0 }
 0x4b2   : > { %v763_v34 = vmax.f32 %v758_v30, 0.0 }
 0x4b3   : > { %768 = vrot.lane.b32.xlu0 %v2868_v32, %s2423_s14 }
 0x4b4   : > { %770 = vrot.lane.b32.xlu1 %v763_v34, %s2423_s14 }
 0x4b7   : > { %776 = vrot.lane.b32.xlu0 %v2868_v32, %s2422_s24 }
 0x4b8   : > { %778 = vrot.lane.b32.xlu1 %v763_v34, %s2422_s24 }
 0x4bb   : > { %784 = vrot.lane.b32.xlu0 %v2868_v32, %s2424_s15 }
 0x4bc   : > { %786 = vrot.lane.b32.xlu1 %v763_v34, %s2424_s15 }
 0x4bf   : > { %792 = vrot.lane.b32.xlu0 %v2868_v32, %s2425_s16 }
 0x4c0   : > { %794 = vrot.lane.b32.xlu1 %v763_v34, %s2425_s16 }
 0x4c3   : > { %800 = vrot.lane.b32.xlu0 %v2868_v32, %s2426_s17 }
 0x4c4   : > { %802 = vrot.lane.b32.xlu1 %v763_v34, %s2426_s17 }
 0x4c7   : > { %808 = vrot.lane.b32.xlu0 %v2868_v32, %s2427_s18 }
 0x4c8   : > { %810 = vrot.lane.b32.xlu1 %v763_v34, %s2427_s18 }
 0x4cb   : > { %816 = vrot.lane.b32.xlu0 %v2868_v32, %s2429_s19 }
 0x4cc   : > { %818 = vrot.lane.b32.xlu1 %v763_v34, %s2429_s19 }
 0x4cf   : > { %824 = vrot.lane.b32.xlu0 %v2868_v32, %s2430_s20 }
 0x4d0   : > { %826 = vrot.lane.b32.xlu1 %v763_v34, %s2430_s20 }
 0x4d3   : > { %844 = vperm.xlu0 %2300, %v767_v35  }
 0x525   : > { %v769_v36 = vpop.permute.xlu0 %768 }
 0x526   : > { %v771_v39 = vpop.permute.xlu1 %770 }
 0x527   : > { %v772_v40 = vsel %vm334_vm1, %v769_v36, %v771_v39  ;;  %v773_v43 = vsel %vm334_vm1, %v771_v39, %v769_v36 }
 0x528   : > { %v774_v50 = vmul.f32 %v773_v43, %v2611_v21  ;;  %v775_v54 = vmul.f32 %v772_v40, %v2607_v19 }
 0x529   : > { %v777_v45 = vpop.permute.xlu0 %776 }
 0x52a   : > { %v779_v47 = vpop.permute.xlu1 %778 }
 0x52b   : > { %v780_v48 = vsel %vm345_vm2, %v777_v45, %v779_v47  ;;  %v781_v49 = vsel %vm345_vm2, %v779_v47, %v777_v45 }
 0x52c   : > { %v782_v55 = vmul.f32 %v781_v49, %v2613_v22  ;;  %v783_v57 = vmul.f32 %v780_v48, %v2609_v20 }
 0x52d   : > { %v785_v58 = vpop.permute.xlu0 %784 }
 0x52e   : > { %v832_v44 = vpack.c.bf16 %v782_v55, %v774_v50  ;;  %v787_v46 = vpop.permute.xlu1 %786  ;;  %v833_v59 = vpack.c.bf16 %v783_v57, %v775_v54 }
 0x52f   : > { %v788_v60 = vsel %vm357_vm3, %v785_v58, %v787_v46  ;;  %v789_v61 = vsel %vm357_vm3, %v787_v46, %v785_v58 }
 0x530   : > { %856 = vmatprep.subr.bf16.mxu1 %v833_v59  ;;  %v790_v53 = vmul.f32 %v789_v61, %v2629_v37  ;;  %v791_v8 = vmul.f32 %v788_v60, %v2631_v38 }
 0x531   : > { %857 = vmatpush1.bf16.msra.mxu1 %v832_v44  ;;  %v793_v62 = vpop.permute.xlu0 %792 }
 0x532   : > { %v795_v63 = vpop.permute.xlu1 %794 }
 0x533   : > { %v796_v0 = vsel %vm369_vm4, %v793_v62, %v795_v63  ;;  %v797_v56 = vsel %vm369_vm4, %v795_v63, %v793_v62 }
 0x534   : > { %v798_v9 = vmul.f32 %v797_v56, %v2637_v41  ;;  %v799_v15 = vmul.f32 %v796_v0, %v2639_v42  ;;  %v2215_v0 = vld [vmem:[%s3761_s2 + $0xc] sm:$0xf] }
 0x535   : > { %v801_v17 = vpop.permute.xlu0 %800 }
 0x536   : > { %v834_v18 = vpack.c.bf16 %v798_v9, %v790_v53  ;;  %v803_v23 = vpop.permute.xlu1 %802  ;;  %v835_v24 = vpack.c.bf16 %v799_v15, %v791_v8 }
 0x537   : > { %v804_v25 = vsel %vm381_vm5, %v801_v17, %v803_v23  ;;  %v805_v26 = vsel %vm381_vm5, %v803_v23, %v801_v17 }
 0x538   : > { %v806_v27 = vmul.f32 %v804_v25, %v2650_v51  ;;  %v807_v30 = vmul.f32 %v805_v26, %v2652_v52  ;;  %858 = vmatprep.subr.bf16.mxu1 %v835_v24 }
 0x539   : > { %859 = vmatpush1.bf16.msra.mxu1 %v834_v18  ;;  %v809_v31 = vpop.permute.xlu0 %808 }
 0x53a   : > { %v836_v33 = vpack.c.bf16 %v806_v27, %v2868_v32  ;;  %v811_v35 = vpop.permute.xlu1 %810  ;;  %v837_v36 = vpack.c.bf16 %v807_v30, %v763_v34  ;;  %v2955_v27 = vrot.slane %v2562_v3, %v315_v6  ;;  %v2960_v30 = vrot.slane %v2562_v3, %v319_v7 }
 0x53b   : > { %v812_v39 = vsel %vm393_vm8, %v809_v31, %v811_v35  ;;  %v813_v40 = vsel %vm393_vm8, %v811_v35, %v809_v31 }
 0x53c   : > { %860 = vmatprep.subr.bf16.mxu1 %v837_v36  ;;  %v814_v32 = vmul.f32 %v812_v39, %v2666_v1  ;;  %v815_v34 = vmul.f32 %v813_v40, %v2668_v5 }
 0x53d   : > { %861 = vmatpush1.bf16.msra.mxu1 %v836_v33  ;;  %v817_v43 = vpop.permute.xlu0 %816 }
 0x53e   : > { %v819_v45 = vpop.permute.xlu1 %818 }
 0x53f   : > { %v820_v47 = vsel %vm405_vm9, %v817_v43, %v819_v45  ;;  %v821_v48 = vsel %vm405_vm9, %v819_v45, %v817_v43 }
 0x540   : > { %v822_v49 = vmul.f32 %v820_v47, %v2674_v12  ;;  %v823_v50 = vmul.f32 %v821_v48, %v2676_v13 }
 0x541   : > { %v825_v54 = vpop.permute.xlu0 %824 }
 0x542   : > { %v838_v55 = vpack.c.bf16 %v822_v49, %v814_v32  ;;  %v827_v57 = vpop.permute.xlu1 %826  ;;  %v839_v58 = vpack.c.bf16 %v823_v50, %v815_v34 }
 0x543   : > { %v828_v44 = vsel %vm417_vm10, %v825_v54, %v827_v57  ;;  %v829_v46 = vsel %vm417_vm10, %v827_v57, %v825_v54 }
 0x544   : > { %v830_v59 = vmul.f32 %v828_v44, %v2689_v29  ;;  %v831_v60 = vmul.f32 %v829_v46, %v2687_v28  ;;  %862 = vmatprep.subr.bf16.mxu1 %v839_v58 }
 0x545   : > { %863 = vmatpush1.bf16.msra.mxu1 %v838_v55 }
 0x546   : > { %v840_v61 = vpack.c.bf16 %v830_v59, %v830_v59  ;;  %v841_v62 = vpack.c.bf16 %v831_v60, %v831_v60 }
 0x548   : > { %2216 = vmatprep.subr.msk.bf16.mxu1 %vm444_vm11, %v841_v62  ;;  %v851_v63 = vsel %vm444_vm11, %v840_v61, 0 }
 0x549   : > { %865 = vmatpush1.bf16.msra.mxu1 %v851_v63 }
 0x54c   : > { %2217 = vmatmul.mubr.msk.bf16.vlgmr.msra.gmra.mrb[4].mxu1 %vm440_vm12, %v2215_v0 }
 0x54d   : > { %1188 = vmatprep.mubr.bf16.mxu1 %v2428_v14 }
 0x552   : > { %v845_v56 = vpop.permute.xlu0 %844 }
 0x61f   : > { %v890_v53 = vpop.f32.mrb[4].mxu1 }
 0x620   : > { %v891_v8 = vadd.f32 %v890_v53, %v845_v56  ;;  %v892_v9 = vpop.f32.mrb[5].mxu1 }
 0x621   : > { %v893_v15 = vadd.f32 %v892_v9, %v845_v56  ;;  %v894_v17 = vpop.f32.mrb[6].mxu1 }
 0x622   : > { %v897_v18 = vadd.f32 %v891_v8, %v2572_v10  ;;  %v895_v23 = vpop.f32.mrb[7].mxu1 }
 0x623   : > { %v898_v24 = vadd.f32 %v893_v15, %v2576_v11 }
 0x624   : > { %v912_v25 = vadd.f32 1e-06, %v897_v18  ;;  %v910_v31 = vmul.f32 %v2955_v27, %v897_v18 }
 0x625   : > { %v913_v26 = vadd.f32 1e-06, %v898_v24  ;;  %v911_v35 = vmul.f32 %v2960_v30, %v898_v24 }
 0x626   : > { %2304 = vrcp.f32 %v912_v25 }
 0x627   : > { %2306 = vrcp.f32 %v913_v26 }
 0x630   : > { %v2305_v33 = vpop.eup %2304 }
 0x631   : > { %v2307_v36 = vpop.eup %2306  ;;  %v2964_v39 = vmul.f32 %v2305_v33, %v910_v31 }
 0x632   : > { %v2966_v40 = vmul.f32 %v2307_v36, %v911_v35 }
 0x633   : > { %v920_v43 = vrot.slane %v2964_v39, 7 }
 0x634   : > { %v921_v6 = vrot.slane %v2966_v40, 7 }
 0x635   : > { %v2972_v45 = vsel %vm323_vm0, %v2572_v10, %v920_v43  ;;  %v932_v10 = vld [vmem:[#allocation2 + $0x20] sm:$0xff] }
 0x636   : > { %v927_v3 = vsel %vm926_vm13, %v2972_v45, 0.0  ;;  %v2978_v7 = vsel %vm323_vm0, %v2576_v11, %v921_v6  ;;  %vm1485_vm0 = vcmask 1042432  }
 0x637   : > { %v928_v47 = vsel %vm926_vm13, %v2978_v7, 0.0  ;;  %933 = vrot.lane.b32.xlu1 %v927_v3, %s2423_s14  ;;  %vm2237_vm7 = vmpackc.low %vm2431_vm6, %vm1485_vm0 }
 0x638   : > { %935 = vrot.lane.b32.xlu0 %v928_v47, %s2423_s14 }
 0x63b   : > { %941 = vrot.lane.b32.xlu1 %v927_v3, %s2422_s24 }
 0x63c   : > { %943 = vrot.lane.b32.xlu0 %v928_v47, %s2422_s24 }
 0x63f   : > { %949 = vrot.lane.b32.xlu1 %v927_v3, %s2424_s15 }
 0x640   : > { %951 = vrot.lane.b32.xlu0 %v928_v47, %s2424_s15 }
 0x643   : > { %957 = vrot.lane.b32.xlu1 %v927_v3, %s2425_s16 }
 0x644   : > { %959 = vrot.lane.b32.xlu0 %v928_v47, %s2425_s16 }
 0x647   : > { %965 = vrot.lane.b32.xlu1 %v927_v3, %s2426_s17 }
 0x648   : > { %967 = vrot.lane.b32.xlu0 %v928_v47, %s2426_s17 }
 0x64b   : > { %973 = vrot.lane.b32.xlu1 %v927_v3, %s2427_s18 }
 0x64c   : > { %975 = vrot.lane.b32.xlu0 %v928_v47, %s2427_s18 }
 0x64f   : > { %981 = vrot.lane.b32.xlu1 %v927_v3, %s2429_s19 }
 0x650   : > { %983 = vrot.lane.b32.xlu0 %v928_v47, %s2429_s19 }
 0x653   : > { %989 = vrot.lane.b32.xlu1 %v927_v3, %s2430_s20 }
 0x654   : > { %991 = vrot.lane.b32.xlu0 %v928_v47, %s2430_s20 }
 0x657   : > { %1009 = vperm.xlu1 %2301, %v932_v10  }
 0x6a9   : > { %v934_v11 = vpop.permute.xlu1 %933 }
 0x6aa   : > { %v936_v48 = vpop.permute.xlu0 %935 }
 0x6ab   : > { %v937_v32 = vsel %vm334_vm1, %v934_v11, %v936_v48  ;;  %v938_v34 = vsel %vm334_vm1, %v936_v48, %v934_v11 }
 0x6ac   : > { %v939_v57 = vmul.f32 %v938_v34, %v2611_v21  ;;  %v940_v58 = vmul.f32 %v937_v32, %v2607_v19 }
 0x6ad   : > { %v942_v49 = vpop.permute.xlu1 %941 }
 0x6ae   : > { %v944_v50 = vpop.permute.xlu0 %943 }
 0x6af   : > { %v945_v54 = vsel %vm345_vm2, %v942_v49, %v944_v50  ;;  %v946_v55 = vsel %vm345_vm2, %v944_v50, %v942_v49 }
 0x6b0   : > { %v947_v44 = vmul.f32 %v946_v55, %v2613_v22  ;;  %v948_v46 = vmul.f32 %v945_v54, %v2609_v20  ;;  %v2218_v55 = vld [vmem:[%s3761_s2 + $0x10] sm:$0xf] }
 0x6b1   : > { %v950_v59 = vpop.permute.xlu1 %949 }
 0x6b2   : > { %v997_v60 = vpack.c.bf16 %v947_v44, %v939_v57  ;;  %v952_v61 = vpop.permute.xlu0 %951  ;;  %v998_v62 = vpack.c.bf16 %v948_v46, %v940_v58 }
 0x6b3   : > { %v953_v63 = vsel %vm357_vm3, %v950_v59, %v952_v61  ;;  %v954_v0 = vsel %vm357_vm3, %v952_v61, %v950_v59 }
 0x6b4   : > { %1021 = vmatprep.subr.bf16.mxu0 %v998_v62  ;;  %v955_v22 = vmul.f32 %v954_v0, %v2629_v37  ;;  %v956_v53 = vmul.f32 %v953_v63, %v2631_v38  ;;  %v1067_v62 = vld [vmem:[#allocation2 + $0x28] sm:$0xff] }
 0x6b5   : > { %1022 = vmatpush1.bf16.msra.mxu0 %v997_v60  ;;  %v958_v56 = vpop.permute.xlu1 %957 }
 0x6b6   : > { %v960_v21 = vpop.permute.xlu0 %959 }
 0x6b7   : > { %v961_v19 = vsel %vm369_vm4, %v958_v56, %v960_v21  ;;  %v962_v20 = vsel %vm369_vm4, %v960_v21, %v958_v56 }
 0x6b8   : > { %v963_v8 = vmul.f32 %v962_v20, %v2637_v41  ;;  %v964_v9 = vmul.f32 %v961_v19, %v2639_v42 }
 0x6b9   : > { %v966_v15 = vpop.permute.xlu1 %965 }
 0x6ba   : > { %v999_v17 = vpack.c.bf16 %v963_v8, %v955_v22  ;;  %v968_v18 = vpop.permute.xlu0 %967  ;;  %v1000_v23 = vpack.c.bf16 %v964_v9, %v956_v53  ;;  %v3101_v8 = vld [vmem:[#allocation4] sm:$0xff] }
 0x6bb   : > { %v969_v24 = vsel %vm381_vm5, %v966_v15, %v968_v18  ;;  %v970_v25 = vsel %vm381_vm5, %v968_v18, %v966_v15  ;;  %v3104_v15 = vld [vmem:[#allocation4 + $0x8] sm:$0xff]  ;;  %v3107_v18 = vld [vmem:[#allocation4 + $0x10] sm:$0xff] }
 0x6bc   : > { %v971_v26 = vmul.f32 %v969_v24, %v2650_v51  ;;  %v972_v37 = vmul.f32 %v970_v25, %v2652_v52  ;;  %1023 = vmatprep.subr.bf16.mxu0 %v1000_v23  ;;  %v3110_v24 = vld [vmem:[#allocation4 + $0x18] sm:$0xff] }
 0x6bd   : > { %1024 = vmatpush1.bf16.msra.mxu0 %v999_v17  ;;  %v974_v38 = vpop.permute.xlu1 %973 }
 0x6be   : > { %v2220_v41 = vpack.c.bf16 %v972_v37, %v2978_v7  ;;  %v2223_v42 = vpack.c.bf16 %v971_v26, %v2972_v45  ;;  %v976_v31 = vpop.permute.xlu0 %975 }
 0x6bf   : > { %v977_v33 = vsel %vm393_vm8, %v974_v38, %v976_v31  ;;  %v978_v51 = vsel %vm393_vm8, %v976_v31, %v974_v38 }
 0x6c0   : > { %2221 = vmatprep.subr.msk.bf16.mxu0 %vm2219_vm14, %v2220_v41  ;;  %v979_v6 = vmul.f32 %v977_v33, %v2666_v1  ;;  %v980_v3 = vmul.f32 %v978_v51, %v2668_v5 }
 0x6c1   : > { %2224 = vmatpush1.bf16.msk.msra.mxu0 %vm2219_vm14, %v2223_v42  ;;  %v982_v52 = vpop.permute.xlu1 %981 }
 0x6c2   : > { %v984_v35 = vpop.permute.xlu0 %983 }
 0x6c3   : > { %v985_v36 = vsel %vm405_vm9, %v982_v52, %v984_v35  ;;  %v986_v43 = vsel %vm405_vm9, %v984_v35, %v982_v52 }
 0x6c4   : > { %v987_v47 = vmul.f32 %v985_v36, %v2674_v12  ;;  %v988_v10 = vmul.f32 %v986_v43, %v2676_v13  ;;  %v3121_v36 = vld [vmem:[#allocation4 + $0x20] sm:$0xff] }
 0x6c5   : > { %v990_v11 = vpop.permute.xlu1 %989 }
 0x6c6   : > { %v1003_v48 = vpack.c.bf16 %v987_v47, %v979_v6  ;;  %v992_v32 = vpop.permute.xlu0 %991  ;;  %v1004_v34 = vpack.c.bf16 %v988_v10, %v980_v3  ;;  %v3124_v6 = vld [vmem:[#allocation4 + $0x28] sm:$0xff]  ;;  %v3127_v47 = vld [vmem:[#allocation4 + $0x30] sm:$0xff] }
 0x6c7   : > { %v993_v49 = vsel %vm417_vm10, %v990_v11, %v992_v32  ;;  %v994_v50 = vsel %vm417_vm10, %v992_v32, %v990_v11  ;;  %v3130_v11 = vld [vmem:[#allocation4 + $0x38] sm:$0xff] }
 0x6c8   : > { %v995_v54 = vmul.f32 %v993_v49, %v2689_v29  ;;  %v996_v1 = vmul.f32 %v994_v50, %v2687_v28  ;;  %1027 = vmatprep.subr.bf16.mxu0 %v1004_v34 }
 0x6c9   : > { %1028 = vmatpush1.bf16.msra.mxu0 %v1003_v48 }
 0x6ca   : > { %v1005_v5 = vpack.c.bf16 %v995_v54, %v995_v54  ;;  %v1006_v12 = vpack.c.bf16 %v996_v1, %v996_v1 }
 0x6cc   : > { %2225 = vmatprep.subr.msk.bf16.mxu0 %vm444_vm11, %v1006_v12  ;;  %v1016_v13 = vsel %vm444_vm11, %v1005_v5, 0  ;;  %v3137_v5 = vld [vmem:[#allocation4 + $0x50] sm:$0xff] }
 0x6cd   : > { %1030 = vmatpush1.bf16.msra.mxu0 %v1016_v13  ;;  %v3140_v13 = vld [vmem:[#allocation4 + $0x58] sm:$0xff] }
 0x6d0   : > { %2226 = vmatmul.mubr.msk.bf16.vlgmr.msra.gmra.mrb[8].mxu0 %vm440_vm12, %v2218_v55 }
 0x6d1   : > { %1323 = vmatprep.mubr.bf16.mxu0 %v2428_v14 }
 0x6d6   : > { %v1010_v29 = vpop.permute.xlu1 %1009 }
 0x7a3   : > { %v1055_v57 = vpop.f32.mrb[8].mxu0 }
 0x7a4   : > { %v1056_v28 = vadd.f32 %v1055_v57, %v1010_v29  ;;  %v1057_v58 = vpop.f32.mrb[9].mxu0 }
 0x7a5   : > { %v1058_v44 = vadd.f32 %v1057_v58, %v1010_v29  ;;  %v1059_v46 = vpop.f32.mrb[10].mxu0 }
 0x7a6   : > { %v3057_v59 = vmax.f32 %v1056_v28, 0.0  ;;  %v1060_v60 = vpop.f32.mrb[11].mxu0 }
 0x7a7   : > { %v3059_v61 = vmax.f32 %v1058_v44, 0.0 }
 0x7a8   : > { %1068 = vrot.lane.b32.xlu0 %v3057_v59, %s2423_s14 }
 0x7a9   : > { %1070 = vrot.lane.b32.xlu1 %v3059_v61, %s2423_s14 }
 0x7ac   : > { %1076 = vrot.lane.b32.xlu0 %v3057_v59, %s2422_s24 }
 0x7ad   : > { %1078 = vrot.lane.b32.xlu1 %v3059_v61, %s2422_s24 }
 0x7b0   : > { %1084 = vrot.lane.b32.xlu0 %v3057_v59, %s2424_s15 }
 0x7b1   : > { %1086 = vrot.lane.b32.xlu1 %v3059_v61, %s2424_s15 }
 0x7b4   : > { %1092 = vrot.lane.b32.xlu0 %v3057_v59, %s2425_s16 }
 0x7b5   : > { %1094 = vrot.lane.b32.xlu1 %v3059_v61, %s2425_s16 }
 0x7b8   : > { %1100 = vrot.lane.b32.xlu0 %v3057_v59, %s2426_s17 }
 0x7b9   : > { %1102 = vrot.lane.b32.xlu1 %v3059_v61, %s2426_s17 }
 0x7bc   : > { %1108 = vrot.lane.b32.xlu0 %v3057_v59, %s2427_s18 }
 0x7bd   : > { %1110 = vrot.lane.b32.xlu1 %v3059_v61, %s2427_s18 }
 0x7c0   : > { %1116 = vrot.lane.b32.xlu0 %v3057_v59, %s2429_s19 }
 0x7c1   : > { %1118 = vrot.lane.b32.xlu1 %v3059_v61, %s2429_s19 }
 0x7c4   : > { %1124 = vrot.lane.b32.xlu0 %v3057_v59, %s2430_s20 }
 0x7c5   : > { %1126 = vrot.lane.b32.xlu1 %v3059_v61, %s2430_s20 }
 0x7c8   : > { %1144 = vperm.xlu0 %2300, %v1067_v62  }
 0x81a   : > { %v1069_v63 = vpop.permute.xlu0 %1068 }
 0x81b   : > { %v1071_v0 = vpop.permute.xlu1 %1070 }
 0x81c   : > { %v1072_v56 = vsel %vm334_vm1, %v1069_v63, %v1071_v0  ;;  %v1073_v21 = vsel %vm334_vm1, %v1071_v0, %v1069_v63 }
 0x81d   : > { %v1074_v9 = vmul.f32 %v3101_v8, %v1073_v21  ;;  %v1075_v17 = vmul.f32 %v3104_v15, %v1072_v56  ;;  %v3156_v56 = vld [vmem:[#allocation4 + $0x68] sm:$0xff] }
 0x81e   : > { %v1077_v19 = vpop.permute.xlu0 %1076 }
 0x81f   : > { %v1079_v20 = vpop.permute.xlu1 %1078 }
 0x820   : > { %v1080_v22 = vsel %vm345_vm2, %v1077_v19, %v1079_v20  ;;  %v1081_v53 = vsel %vm345_vm2, %v1079_v20, %v1077_v19  ;;  %v3159_v19 = vld [vmem:[#allocation4 + $0x70] sm:$0xff] }
 0x821   : > { %v1082_v23 = vmul.f32 %v3107_v18, %v1081_v53  ;;  %v1083_v25 = vmul.f32 %v3110_v24, %v1080_v22  ;;  %v3162_v22 = vld [vmem:[#allocation4 + $0x78] sm:$0xff] }
 0x822   : > { %v1085_v26 = vpop.permute.xlu0 %1084 }
 0x823   : > { %v1132_v37 = vpack.c.bf16 %v1082_v23, %v1074_v9  ;;  %v1087_v38 = vpop.permute.xlu1 %1086  ;;  %v1133_v41 = vpack.c.bf16 %v1083_v25, %v1075_v17 }
 0x824   : > { %v1088_v42 = vsel %vm357_vm3, %v1085_v26, %v1087_v38  ;;  %v1089_v31 = vsel %vm357_vm3, %v1087_v38, %v1085_v26  ;;  %v3169_v38 = vld [vmem:[#allocation4 + $0x80] sm:$0xff] }
 0x825   : > { %1156 = vmatprep.subr.bf16.mxu1 %v1133_v41  ;;  %v1090_v43 = vmul.f32 %v3121_v36, %v1089_v31  ;;  %v1091_v3 = vmul.f32 %v3124_v6, %v1088_v42  ;;  %v3172_v42 = vld [vmem:[#allocation4 + $0x88] sm:$0xff] }
 0x826   : > { %1157 = vmatpush1.bf16.msra.mxu1 %v1132_v37  ;;  %v1093_v33 = vpop.permute.xlu0 %1092 }
 0x827   : > { %v1095_v51 = vpop.permute.xlu1 %1094 }
 0x828   : > { %v1096_v52 = vsel %vm369_vm4, %v1093_v33, %v1095_v51  ;;  %v1097_v35 = vsel %vm369_vm4, %v1095_v51, %v1093_v33 }
 0x829   : > { %v1098_v10 = vmul.f32 %v3127_v47, %v1097_v35  ;;  %v1099_v48 = vmul.f32 %v3130_v11, %v1096_v52  ;;  %v2227_v35 = vld [vmem:[%s3761_s2 + $0x14] sm:$0xf] }
 0x82a   : > { %v1101_v32 = vpop.permute.xlu0 %1100 }
 0x82b   : > { %v1134_v34 = vpack.c.bf16 %v1098_v10, %v1090_v43  ;;  %v1103_v49 = vpop.permute.xlu1 %1102  ;;  %v1135_v50 = vpack.c.bf16 %v1099_v48, %v1091_v3 }
 0x82c   : > { %v1104_v54 = vsel %vm381_vm5, %v1101_v32, %v1103_v49  ;;  %v1105_v1 = vsel %vm381_vm5, %v1103_v49, %v1101_v32 }
 0x82d   : > { %v1106_v12 = vmul.f32 %v3137_v5, %v1104_v54  ;;  %v1107_v55 = vmul.f32 %v3140_v13, %v1105_v1  ;;  %1158 = vmatprep.subr.bf16.mxu1 %v1135_v50  ;;  %v1202_v1 = vld [vmem:[#allocation2 + $0x30] sm:$0xff] }
 0x82e   : > { %1159 = vmatpush1.bf16.msra.mxu1 %v1134_v34  ;;  %v1109_v29 = vpop.permute.xlu0 %1108 }
 0x82f   : > { %v1136_v57 = vpack.c.bf16 %v1106_v12, %v3057_v59  ;;  %v1111_v28 = vpop.permute.xlu1 %1110  ;;  %v1137_v58 = vpack.c.bf16 %v1107_v55, %v3059_v61  ;;  %v3153_v59 = vld [vmem:[#allocation4 + $0x60] sm:$0xff] }
 0x830   : > { %v1112_v44 = vsel %vm393_vm8, %v1109_v29, %v1111_v28  ;;  %v1113_v46 = vsel %vm393_vm8, %v1111_v28, %v1109_v29 }
 0x831   : > { %1160 = vmatprep.subr.bf16.mxu1 %v1137_v58  ;;  %v1114_v61 = vmul.f32 %v3153_v59, %v1112_v44  ;;  %v1115_v21 = vmul.f32 %v3156_v56, %v1113_v46 }
 0x832   : > { %1161 = vmatpush1.bf16.msra.mxu1 %v1136_v57  ;;  %v1117_v60 = vpop.permute.xlu0 %1116 }
 0x833   : > { %v1119_v62 = vpop.permute.xlu1 %1118 }
 0x834   : > { %v1120_v63 = vsel %vm405_vm9, %v1117_v60, %v1119_v62  ;;  %v1121_v0 = vsel %vm405_vm9, %v1119_v62, %v1117_v60 }
 0x835   : > { %v1122_v20 = vmul.f32 %v3159_v19, %v1120_v63  ;;  %v1123_v53 = vmul.f32 %v3162_v22, %v1121_v0 }
 0x836   : > { %v1125_v9 = vpop.permute.xlu0 %1124 }
 0x837   : > { %v1138_v17 = vpack.c.bf16 %v1122_v20, %v1114_v61  ;;  %v1127_v23 = vpop.permute.xlu1 %1126  ;;  %v1139_v25 = vpack.c.bf16 %v1123_v53, %v1115_v21 }
 0x838   : > { %v1128_v26 = vsel %vm417_vm10, %v1125_v9, %v1127_v23  ;;  %v1129_v37 = vsel %vm417_vm10, %v1127_v23, %v1125_v9 }
 0x839   : > { %v1130_v41 = vmul.f32 %v3169_v38, %v1128_v26  ;;  %v1131_v31 = vmul.f32 %v3172_v42, %v1129_v37  ;;  %1162 = vmatprep.subr.bf16.mxu1 %v1139_v25 }
 0x83a   : > { %1163 = vmatpush1.bf16.msra.mxu1 %v1138_v17 }
 0x83b   : > { %v1140_v33 = vpack.c.bf16 %v1130_v41, %v1130_v41  ;;  %v1141_v51 = vpack.c.bf16 %v1131_v31, %v1131_v31 }
 0x83d   : > { %2228 = vmatprep.subr.msk.bf16.mxu1 %vm444_vm11, %v1141_v51  ;;  %v1151_v52 = vsel %vm444_vm11, %v1140_v33, 0 }
 0x83e   : > { %1165 = vmatpush1.bf16.msra.mxu1 %v1151_v52 }
 0x841   : > { %2229 = vmatmul.mubr.msk.bf16.vlgmr.msra.gmra.mrb[8].mxu1 %vm440_vm12, %v2227_v35 }
 0x842   : > { %1458 = vmatprep.mubr.bf16.mxu1 %v2428_v14 }
 0x847   : > { %v1145_v43 = vpop.permute.xlu0 %1144 }
 0x914   : > { %v1190_v3 = vpop.f32.mrb[8].mxu1 }
 0x915   : > { %v1191_v10 = vadd.f32 %v1190_v3, %v1145_v43  ;;  %v1192_v48 = vpop.f32.mrb[9].mxu1 }
 0x916   : > { %v1193_v32 = vadd.f32 %v1192_v48, %v1145_v43  ;;  %v1194_v34 = vpop.f32.mrb[10].mxu1 }
 0x917   : > { %v3182_v49 = vmax.f32 %v1191_v10, 0.0  ;;  %v1195_v50 = vpop.f32.mrb[11].mxu1 }
 0x918   : > { %v1198_v54 = vmax.f32 %v1193_v32, 0.0 }
 0x919   : > { %1203 = vrot.lane.b32.xlu1 %v3182_v49, %s2423_s14 }
 0x91a   : > { %1205 = vrot.lane.b32.xlu0 %v1198_v54, %s2423_s14 }
 0x91d   : > { %1211 = vrot.lane.b32.xlu1 %v3182_v49, %s2422_s24 }
 0x91e   : > { %1213 = vrot.lane.b32.xlu0 %v1198_v54, %s2422_s24 }
 0x921   : > { %1219 = vrot.lane.b32.xlu1 %v3182_v49, %s2424_s15 }
 0x922   : > { %1221 = vrot.lane.b32.xlu0 %v1198_v54, %s2424_s15 }
 0x925   : > { %1227 = vrot.lane.b32.xlu1 %v3182_v49, %s2425_s16 }
 0x926   : > { %1229 = vrot.lane.b32.xlu0 %v1198_v54, %s2425_s16 }
 0x929   : > { %1235 = vrot.lane.b32.xlu1 %v3182_v49, %s2426_s17 }
 0x92a   : > { %1237 = vrot.lane.b32.xlu0 %v1198_v54, %s2426_s17 }
 0x92d   : > { %1243 = vrot.lane.b32.xlu1 %v3182_v49, %s2427_s18 }
 0x92e   : > { %1245 = vrot.lane.b32.xlu0 %v1198_v54, %s2427_s18 }
 0x931   : > { %1251 = vrot.lane.b32.xlu1 %v3182_v49, %s2429_s19 }
 0x932   : > { %1253 = vrot.lane.b32.xlu0 %v1198_v54, %s2429_s19 }
 0x935   : > { %1259 = vrot.lane.b32.xlu1 %v3182_v49, %s2430_s20 }
 0x936   : > { %1261 = vrot.lane.b32.xlu0 %v1198_v54, %s2430_s20 }
 0x939   : > { %1279 = vperm.xlu1 %2301, %v1202_v1  }
 0x98b   : > { %v1204_v12 = vpop.permute.xlu1 %1203 }
 0x98c   : > { %v1206_v55 = vpop.permute.xlu0 %1205 }
 0x98d   : > { %v1207_v29 = vsel %vm334_vm1, %v1204_v12, %v1206_v55  ;;  %v1208_v57 = vsel %vm334_vm1, %v1206_v55, %v1204_v12 }
 0x98e   : > { %v1209_v60 = vmul.f32 %v3101_v8, %v1208_v57  ;;  %v1210_v62 = vmul.f32 %v3104_v15, %v1207_v29 }
 0x98f   : > { %v1212_v28 = vpop.permute.xlu1 %1211 }
 0x990   : > { %v1214_v58 = vpop.permute.xlu0 %1213 }
 0x991   : > { %v1215_v44 = vsel %vm345_vm2, %v1212_v28, %v1214_v58  ;;  %v1216_v46 = vsel %vm345_vm2, %v1214_v58, %v1212_v28 }
 0x992   : > { %v1217_v63 = vmul.f32 %v3107_v18, %v1216_v46  ;;  %v1218_v0 = vmul.f32 %v3110_v24, %v1215_v44 }
 0x993   : > { %v1220_v61 = vpop.permute.xlu1 %1219 }
 0x994   : > { %v1267_v21 = vpack.c.bf16 %v1217_v63, %v1209_v60  ;;  %v1222_v20 = vpop.permute.xlu0 %1221  ;;  %v1268_v53 = vpack.c.bf16 %v1218_v0, %v1210_v62 }
 0x995   : > { %v1223_v9 = vsel %vm357_vm3, %v1220_v61, %v1222_v20  ;;  %v1224_v17 = vsel %vm357_vm3, %v1222_v20, %v1220_v61 }
 0x996   : > { %1291 = vmatprep.subr.bf16.mxu0 %v1268_v53  ;;  %v1225_v41 = vmul.f32 %v3121_v36, %v1224_v17  ;;  %v1226_v31 = vmul.f32 %v3124_v6, %v1223_v9 }
 0x997   : > { %1292 = vmatpush1.bf16.msra.mxu0 %v1267_v21  ;;  %v1228_v23 = vpop.permute.xlu1 %1227 }
 0x998   : > { %v1230_v25 = vpop.permute.xlu0 %1229 }
 0x999   : > { %v1231_v26 = vsel %vm369_vm4, %v1228_v23, %v1230_v25  ;;  %v1232_v37 = vsel %vm369_vm4, %v1230_v25, %v1228_v23 }
 0x99a   : > { %v1233_v33 = vmul.f32 %v3127_v47, %v1232_v37  ;;  %v1234_v51 = vmul.f32 %v3130_v11, %v1231_v26  ;;  %v2230_v37 = vld [vmem:[%s3761_s2 + $0x18] sm:$0xf] }
 0x99b   : > { %v1236_v52 = vpop.permute.xlu1 %1235 }
 0x99c   : > { %v1269_v35 = vpack.c.bf16 %v1233_v33, %v1225_v41  ;;  %v1238_v43 = vpop.permute.xlu0 %1237  ;;  %v1270_v3 = vpack.c.bf16 %v1234_v51, %v1226_v31 }
 0x99d   : > { %v1239_v10 = vsel %vm381_vm5, %v1236_v52, %v1238_v43  ;;  %v1240_v48 = vsel %vm381_vm5, %v1238_v43, %v1236_v52 }
 0x99e   : > { %v1241_v32 = vmul.f32 %v3137_v5, %v1239_v10  ;;  %v1242_v34 = vmul.f32 %v3140_v13, %v1240_v48  ;;  %1293 = vmatprep.subr.bf16.mxu0 %v1270_v3  ;;  %v1337_v48 = vld [vmem:[#allocation2 + $0x38] sm:$0xff] }
 0x99f   : > { %1294 = vmatpush1.bf16.msra.mxu0 %v1269_v35  ;;  %v1244_v50 = vpop.permute.xlu1 %1243 }
 0x9a0   : > { %v1271_v1 = vpack.c.bf16 %v1241_v32, %v3182_v49  ;;  %v1246_v12 = vpop.permute.xlu0 %1245  ;;  %v1272_v55 = vpack.c.bf16 %v1242_v34, %v1198_v54 }
 0x9a1   : > { %v1247_v29 = vsel %vm393_vm8, %v1244_v50, %v1246_v12  ;;  %v1248_v57 = vsel %vm393_vm8, %v1246_v12, %v1244_v50 }
 0x9a2   : > { %1295 = vmatprep.subr.bf16.mxu0 %v1272_v55  ;;  %v1249_v49 = vmul.f32 %v3153_v59, %v1247_v29  ;;  %v1250_v54 = vmul.f32 %v3156_v56, %v1248_v57 }
 0x9a3   : > { %1296 = vmatpush1.bf16.msra.mxu0 %v1271_v1  ;;  %v1252_v28 = vpop.permute.xlu1 %1251 }
 0x9a4   : > { %v1254_v58 = vpop.permute.xlu0 %1253 }
 0x9a5   : > { %v1255_v44 = vsel %vm405_vm9, %v1252_v28, %v1254_v58  ;;  %v1256_v46 = vsel %vm405_vm9, %v1254_v58, %v1252_v28 }
 0x9a6   : > { %v1257_v60 = vmul.f32 %v3159_v19, %v1255_v44  ;;  %v1258_v62 = vmul.f32 %v3162_v22, %v1256_v46 }
 0x9a7   : > { %v1260_v63 = vpop.permute.xlu1 %1259 }
 0x9a8   : > { %v1273_v0 = vpack.c.bf16 %v1257_v60, %v1249_v49  ;;  %v1262_v61 = vpop.permute.xlu0 %1261  ;;  %v1274_v21 = vpack.c.bf16 %v1258_v62, %v1250_v54 }
 0x9a9   : > { %v1263_v20 = vsel %vm417_vm10, %v1260_v63, %v1262_v61  ;;  %v1264_v53 = vsel %vm417_vm10, %v1262_v61, %v1260_v63 }
 0x9aa   : > { %v1265_v9 = vmul.f32 %v3169_v38, %v1263_v20  ;;  %v1266_v17 = vmul.f32 %v3172_v42, %v1264_v53  ;;  %1297 = vmatprep.subr.bf16.mxu0 %v1274_v21 }
 0x9ab   : > { %1298 = vmatpush1.bf16.msra.mxu0 %v1273_v0 }
 0x9ac   : > { %v1275_v23 = vpack.c.bf16 %v1265_v9, %v1265_v9  ;;  %v1276_v25 = vpack.c.bf16 %v1266_v17, %v1266_v17 }
 0x9ae   : > { %2231 = vmatprep.subr.msk.bf16.mxu0 %vm444_vm11, %v1276_v25  ;;  %v1286_v26 = vsel %vm444_vm11, %v1275_v23, 0 }
 0x9af   : > { %1300 = vmatpush1.bf16.msra.mxu0 %v1286_v26 }
 0x9b2   : > { %2232 = vmatmul.mubr.msk.bf16.vlgmr.msra.gmra.mrb[12].mxu0 %vm440_vm12, %v2230_v37 }
 0x9b3   : > { %1612 = vmatprep.mubr.bf16.mxu0 %v2428_v14 }
 0x9b8   : > { %v1280_v41 = vpop.permute.xlu1 %1279 }
 0xa85   : > { %v1325_v31 = vpop.f32.mrb[12].mxu0 }
 0xa86   : > { %v1326_v33 = vadd.f32 %v1325_v31, %v1280_v41  ;;  %v1327_v51 = vpop.f32.mrb[13].mxu0 }
 0xa87   : > { %v1328_v52 = vadd.f32 %v1327_v51, %v1280_v41  ;;  %v1329_v35 = vpop.f32.mrb[14].mxu0 }
 0xa88   : > { %v3264_v43 = vmax.f32 %v1326_v33, 0.0  ;;  %v1330_v3 = vpop.f32.mrb[15].mxu0 }
 0xa89   : > { %v1333_v10 = vmax.f32 %v1328_v52, 0.0 }
 0xa8a   : > { %1338 = vrot.lane.b32.xlu0 %v3264_v43, %s2423_s14 }
 0xa8b   : > { %1340 = vrot.lane.b32.xlu1 %v1333_v10, %s2423_s14 }
 0xa8e   : > { %1346 = vrot.lane.b32.xlu0 %v3264_v43, %s2422_s24 }
 0xa8f   : > { %1348 = vrot.lane.b32.xlu1 %v1333_v10, %s2422_s24 }
 0xa92   : > { %1354 = vrot.lane.b32.xlu0 %v3264_v43, %s2424_s15 }
 0xa93   : > { %1356 = vrot.lane.b32.xlu1 %v1333_v10, %s2424_s15 }
 0xa96   : > { %1362 = vrot.lane.b32.xlu0 %v3264_v43, %s2425_s16 }
 0xa97   : > { %1364 = vrot.lane.b32.xlu1 %v1333_v10, %s2425_s16 }
 0xa9a   : > { %1370 = vrot.lane.b32.xlu0 %v3264_v43, %s2426_s17 }
 0xa9b   : > { %1372 = vrot.lane.b32.xlu1 %v1333_v10, %s2426_s17 }
 0xa9e   : > { %1378 = vrot.lane.b32.xlu0 %v3264_v43, %s2427_s18 }
 0xa9f   : > { %1380 = vrot.lane.b32.xlu1 %v1333_v10, %s2427_s18 }
 0xaa2   : > { %1386 = vrot.lane.b32.xlu0 %v3264_v43, %s2429_s19 }
 0xaa3   : > { %1388 = vrot.lane.b32.xlu1 %v1333_v10, %s2429_s19 }
 0xaa6   : > { %1394 = vrot.lane.b32.xlu0 %v3264_v43, %s2430_s20 }
 0xaa7   : > { %1396 = vrot.lane.b32.xlu1 %v1333_v10, %s2430_s20 }
 0xaaa   : > { %1414 = vperm.xlu0 %2300, %v1337_v48  }
 0xafc   : > { %v1339_v32 = vpop.permute.xlu0 %1338 }
 0xafd   : > { %v1341_v34 = vpop.permute.xlu1 %1340 }
 0xafe   : > { %v1342_v50 = vsel %vm334_vm1, %v1339_v32, %v1341_v34  ;;  %v1343_v1 = vsel %vm334_vm1, %v1341_v34, %v1339_v32 }
 0xaff   : > { %v1344_v28 = vmul.f32 %v3101_v8, %v1343_v1  ;;  %v1345_v58 = vmul.f32 %v3104_v15, %v1342_v50 }
 0xb00   : > { %v1347_v12 = vpop.permute.xlu0 %1346 }
 0xb01   : > { %v1349_v55 = vpop.permute.xlu1 %1348 }
 0xb02   : > { %v1350_v29 = vsel %vm345_vm2, %v1347_v12, %v1349_v55  ;;  %v1351_v57 = vsel %vm345_vm2, %v1349_v55, %v1347_v12 }
 0xb03   : > { %v1352_v44 = vmul.f32 %v3107_v18, %v1351_v57  ;;  %v1353_v46 = vmul.f32 %v3110_v24, %v1350_v29 }
 0xb04   : > { %v1355_v49 = vpop.permute.xlu0 %1354 }
 0xb05   : > { %v1402_v54 = vpack.c.bf16 %v1352_v44, %v1344_v28  ;;  %v1357_v60 = vpop.permute.xlu1 %1356  ;;  %v1403_v62 = vpack.c.bf16 %v1353_v46, %v1345_v58 }
 0xb06   : > { %v1358_v63 = vsel %vm357_vm3, %v1355_v49, %v1357_v60  ;;  %v1359_v0 = vsel %vm357_vm3, %v1357_v60, %v1355_v49 }
 0xb07   : > { %1426 = vmatprep.subr.bf16.mxu1 %v1403_v62  ;;  %v1360_v9 = vmul.f32 %v3121_v36, %v1359_v0  ;;  %v1361_v17 = vmul.f32 %v3124_v6, %v1358_v63 }
 0xb08   : > { %1427 = vmatpush1.bf16.msra.mxu1 %v1402_v54  ;;  %v1363_v61 = vpop.permute.xlu0 %1362 }
 0xb09   : > { %v1365_v21 = vpop.permute.xlu1 %1364 }
 0xb0a   : > { %v1366_v20 = vsel %vm369_vm4, %v1363_v61, %v1365_v21  ;;  %v1367_v53 = vsel %vm369_vm4, %v1365_v21, %v1363_v61 }
 0xb0b   : > { %v1368_v23 = vmul.f32 %v3127_v47, %v1367_v53  ;;  %v1369_v25 = vmul.f32 %v3130_v11, %v1366_v20  ;;  %v2233_v53 = vld [vmem:[%s3761_s2 + $0x1c] sm:$0xf] }
 0xb0c   : > { %v1371_v26 = vpop.permute.xlu0 %1370 }
 0xb0d   : > { %v1404_v37 = vpack.c.bf16 %v1368_v23, %v1360_v9  ;;  %v1373_v41 = vpop.permute.xlu1 %1372  ;;  %v1405_v31 = vpack.c.bf16 %v1369_v25, %v1361_v17  ;;  %v2432_v9 = vmov 1966171168  }
 0xb0e   : > { %v1374_v33 = vsel %vm381_vm5, %v1371_v26, %v1373_v41  ;;  %v1375_v51 = vsel %vm381_vm5, %v1373_v41, %v1371_v26  ;;  %v2032_v17 = vunpack.c.l.s4 %v2432_v9 }
 0xb0f   : > { %v1376_v52 = vmul.f32 %v3137_v5, %v1374_v33  ;;  %v1377_v35 = vmul.f32 %v3140_v13, %v1375_v51  ;;  %1428 = vmatprep.subr.bf16.mxu1 %v1405_v31 }
 0xb10   : > { %1429 = vmatpush1.bf16.msra.mxu1 %v1404_v37  ;;  %v1379_v3 = vpop.permute.xlu0 %1378  ;;  %v2033_v26 = vunpack.c.0.s8 %v2032_v17 }
 0xb11   : > { %v1406_v48 = vpack.c.bf16 %v1376_v52, %v3264_v43  ;;  %v1381_v32 = vpop.permute.xlu1 %1380  ;;  %v1407_v34 = vpack.c.bf16 %v1377_v35, %v1333_v10 }
 0xb12   : > { %v1382_v50 = vsel %vm393_vm8, %v1379_v3, %v1381_v32  ;;  %v1383_v1 = vsel %vm393_vm8, %v1381_v32, %v1379_v3  ;;  %v3349_v3 = vsub.s32 %v2033_v26, %v2565_v4 }
 0xb13   : > { %1430 = vmatprep.subr.bf16.mxu1 %v1407_v34  ;;  %v1384_v43 = vmul.f32 %v3153_v59, %v1382_v50  ;;  %v1385_v10 = vmul.f32 %v3156_v56, %v1383_v1 }
 0xb14   : > { %1431 = vmatpush1.bf16.msra.mxu1 %v1406_v48  ;;  %v1387_v12 = vpop.permute.xlu0 %1386 }
 0xb15   : > { %v1389_v55 = vpop.permute.xlu1 %1388 }
 0xb16   : > { %v1390_v29 = vsel %vm405_vm9, %v1387_v12, %v1389_v55  ;;  %v1391_v57 = vsel %vm405_vm9, %v1389_v55, %v1387_v12 }
 0xb17   : > { %v1392_v28 = vmul.f32 %v3159_v19, %v1390_v29  ;;  %v1393_v58 = vmul.f32 %v3162_v22, %v1391_v57 }
 0xb18   : > { %v1395_v44 = vpop.permute.xlu0 %1394 }
 0xb19   : > { %v1408_v46 = vpack.c.bf16 %v1392_v28, %v1384_v43  ;;  %v1397_v49 = vpop.permute.xlu1 %1396  ;;  %v1409_v54 = vpack.c.bf16 %v1393_v58, %v1385_v10 }
 0xb1a   : > { %v1398_v60 = vsel %vm417_vm10, %v1395_v44, %v1397_v49  ;;  %v1399_v62 = vsel %vm417_vm10, %v1397_v49, %v1395_v44 }
 0xb1b   : > { %v1400_v63 = vmul.f32 %v3169_v38, %v1398_v60  ;;  %v1401_v0 = vmul.f32 %v3172_v42, %v1399_v62  ;;  %1432 = vmatprep.subr.bf16.mxu1 %v1409_v54 }
 0xb1c   : > { %1433 = vmatpush1.bf16.msra.mxu1 %v1408_v46 }
 0xb1d   : > { %v1410_v61 = vpack.c.bf16 %v1400_v63, %v1400_v63  ;;  %v1411_v21 = vpack.c.bf16 %v1401_v0, %v1401_v0 }
 0xb1f   : > { %2234 = vmatprep.subr.msk.bf16.mxu1 %vm444_vm11, %v1411_v21  ;;  %v1421_v20 = vsel %vm444_vm11, %v1410_v61, 0 }
 0xb20   : > { %1435 = vmatpush1.bf16.msra.mxu1 %v1421_v20 }
 0xb23   : > { %2235 = vmatmul.mubr.msk.bf16.vlgmr.msra.gmra.mrb[12].mxu1 %vm440_vm12, %v2233_v53 }
 0xb24   : > { %1747 = vmatprep.mubr.bf16.mxu1 %v2428_v14 }
 0xb29   : > { %v1415_v23 = vpop.permute.xlu0 %1414 }
 0xbf6   : > { %v1460_v25 = vpop.f32.mrb[12].mxu1 }
 0xbf7   : > { %v1461_v37 = vadd.f32 %v1460_v25, %v1415_v23  ;;  %v1462_v41 = vpop.f32.mrb[13].mxu1 }
 0xbf8   : > { %v1463_v31 = vadd.f32 %v1462_v41, %v1415_v23  ;;  %v1464_v33 = vpop.f32.mrb[14].mxu1 }
 0xbf9   : > { %v1467_v51 = vadd.f32 %v1461_v37, %v2964_v39  ;;  %v1465_v52 = vpop.f32.mrb[15].mxu1 }
 0xbfa   : > { %v1468_v35 = vadd.f32 %v1463_v31, %v2966_v40 }
 0xbfb   : > { %v1471_v48 = vadd.f32 1e-06, %v1467_v51  ;;  %v1469_v4 = vmul.f32 %v1467_v51, %v2955_v27 }
 0xbfc   : > { %v1472_v32 = vadd.f32 1e-06, %v1468_v35  ;;  %v2053_v34 = vcombine.low %v1467_v51, %v1468_v35  ;;  %v1470_v12 = vmul.f32 %v1468_v35, %v2960_v30 }
 0xbfd   : > { %2308 = vrcp.f32 %v1471_v48 }
 0xbfe   : > { %2310 = vrcp.f32 %v1472_v32  ;;  %v2060_v50 = vrot.slane %v2053_v34, %v3349_v3 }
 0xc00   : > { %v2067_v40 = vrot.slane %v2060_v50, %v3349_v3 }
 0xc02   : > { %2069 = vst.msk [vmem:[%s304_s30] sm:$0x3] %vm3357_vm15, %v2067_v40 }
 0xc07   : > { %v2309_v1 = vpop.eup %2308 }
 0xc08   : > { %v2311_v55 = vpop.eup %2310  ;;  %v3366_v29 = vmul.f32 %v2309_v1, %v1469_v4 }
 0xc09   : > { %v3368_v57 = vmul.f32 %v2311_v55, %v1470_v12 }
 0xc0a   : > { %v1479_v2 = vrot.slane %v3366_v29, 6 }
 0xc0b   : > { %v1480_v43 = vrot.slane %v3368_v57, 6 }
 0xc0c   : > { %v3374_v10 = vsel %vm926_vm13, %v2972_v45, %v1479_v2  ;;  %v1491_v45 = vld [vmem:[#allocation2 + $0x40] sm:$0xff] }
 0xc0d   : > { %v3378_v27 = vsel %vm926_vm13, %v2978_v7, %v1480_v43  ;;  %v1486_v30 = vsel %vm1485_vm0, %v3374_v10, 0.0 }
 0xc0e   : > { %1492 = vrot.lane.b32.xlu1 %v1486_v30, %s2423_s14  ;;  %v1487_v28 = vsel %vm1485_vm0, %v3378_v27, 0.0 }
 0xc0f   : > { %1494 = vrot.lane.b32.xlu0 %v1487_v28, %s2423_s14 }
 0xc12   : > { %1500 = vrot.lane.b32.xlu1 %v1486_v30, %s2422_s24 }
 0xc13   : > { %1502 = vrot.lane.b32.xlu0 %v1487_v28, %s2422_s24 }
 0xc16   : > { %1508 = vrot.lane.b32.xlu1 %v1486_v30, %s2424_s15 }
 0xc17   : > { %1510 = vrot.lane.b32.xlu0 %v1487_v28, %s2424_s15 }
 0xc1a   : > { %1516 = vrot.lane.b32.xlu1 %v1486_v30, %s2425_s16 }
 0xc1b   : > { %1518 = vrot.lane.b32.xlu0 %v1487_v28, %s2425_s16 }
 0xc1e   : > { %1524 = vrot.lane.b32.xlu1 %v1486_v30, %s2426_s17 }
 0xc1f   : > { %1526 = vrot.lane.b32.xlu0 %v1487_v28, %s2426_s17 }
 0xc22   : > { %1532 = vrot.lane.b32.xlu1 %v1486_v30, %s2427_s18 }
 0xc23   : > { %1534 = vrot.lane.b32.xlu0 %v1487_v28, %s2427_s18 }
 0xc26   : > { %1540 = vrot.lane.b32.xlu1 %v1486_v30, %s2429_s19 }
 0xc27   : > { %1542 = vrot.lane.b32.xlu0 %v1487_v28, %s2429_s19 }
 0xc2a   : > { %1548 = vrot.lane.b32.xlu1 %v1486_v30, %s2430_s20 }
 0xc2b   : > { %1550 = vrot.lane.b32.xlu0 %v1487_v28, %s2430_s20 }
 0xc2e   : > { %1568 = vperm.xlu1 %2301, %v1491_v45  }
 0xc80   : > { %v1493_v7 = vpop.permute.xlu1 %1492 }
 0xc81   : > { %v1495_v58 = vpop.permute.xlu0 %1494 }
 0xc82   : > { %v1496_v44 = vsel %vm334_vm1, %v1493_v7, %v1495_v58  ;;  %v1497_v46 = vsel %vm334_vm1, %v1495_v58, %v1493_v7 }
 0xc83   : > { %v1498_v63 = vmul.f32 %v3101_v8, %v1497_v46  ;;  %v1499_v0 = vmul.f32 %v3104_v15, %v1496_v44 }
 0xc84   : > { %v1501_v49 = vpop.permute.xlu1 %1500 }
 0xc85   : > { %v1503_v54 = vpop.permute.xlu0 %1502 }
 0xc86   : > { %v1504_v60 = vsel %vm345_vm2, %v1501_v49, %v1503_v54  ;;  %v1505_v62 = vsel %vm345_vm2, %v1503_v54, %v1501_v49 }
 0xc87   : > { %v1506_v61 = vmul.f32 %v3107_v18, %v1505_v62  ;;  %v1507_v21 = vmul.f32 %v3110_v24, %v1504_v60 }
 0xc88   : > { %v1509_v20 = vpop.permute.xlu1 %1508 }
 0xc89   : > { %v1556_v53 = vpack.c.bf16 %v1506_v61, %v1498_v63  ;;  %v1511_v9 = vpop.permute.xlu0 %1510  ;;  %v1557_v17 = vpack.c.bf16 %v1507_v21, %v1499_v0 }
 0xc8a   : > { %v1512_v23 = vsel %vm357_vm3, %v1509_v20, %v1511_v9  ;;  %v1513_v25 = vsel %vm357_vm3, %v1511_v9, %v1509_v20 }
 0xc8b   : > { %1580 = vmatprep.subr.bf16.mxu0 %v1557_v17  ;;  %v1514_v33 = vmul.f32 %v3121_v36, %v1513_v25  ;;  %v1515_v51 = vmul.f32 %v3124_v6, %v1512_v23  ;;  %v2236_v25 = vld [vmem:[%s3761_s2 + $0x20] sm:$0xf] }
 0xc8c   : > { %1581 = vmatpush1.bf16.msra.mxu0 %v1556_v53  ;;  %v1517_v26 = vpop.permute.xlu1 %1516 }
 0xc8d   : > { %v1519_v37 = vpop.permute.xlu0 %1518 }
 0xc8e   : > { %v1520_v41 = vsel %vm369_vm4, %v1517_v26, %v1519_v37  ;;  %v1521_v31 = vsel %vm369_vm4, %v1519_v37, %v1517_v26 }
 0xc8f   : > { %v1522_v52 = vmul.f32 %v3127_v47, %v1521_v31  ;;  %v1523_v35 = vmul.f32 %v3130_v11, %v1520_v41 }
 0xc90   : > { %v1525_v48 = vpop.permute.xlu1 %1524 }
 0xc91   : > { %v1558_v32 = vpack.c.bf16 %v1522_v52, %v1514_v33  ;;  %v1527_v34 = vpop.permute.xlu0 %1526  ;;  %v1559_v50 = vpack.c.bf16 %v1523_v35, %v1515_v51 }
 0xc92   : > { %v1528_v40 = vsel %vm381_vm5, %v1525_v48, %v1527_v34  ;;  %v1529_v4 = vsel %vm381_vm5, %v1527_v34, %v1525_v48 }
 0xc93   : > { %v1530_v1 = vmul.f32 %v3137_v5, %v1528_v40  ;;  %v1531_v12 = vmul.f32 %v3140_v13, %v1529_v4  ;;  %1582 = vmatprep.subr.bf16.mxu0 %v1559_v50 }
 0xc94   : > { %1583 = vmatpush1.bf16.msra.mxu0 %v1558_v32  ;;  %v1533_v55 = vpop.permute.xlu1 %1532  ;;  %v1626_v32 = vld [vmem:[#allocation2 + $0x48] sm:$0xff] }
 0xc95   : > { %v2238_v2 = vpack.c.bf16 %v1531_v12, %v3378_v27  ;;  %v2241_v43 = vpack.c.bf16 %v1530_v1, %v3374_v10  ;;  %v1535_v30 = vpop.permute.xlu0 %1534 }
 0xc96   : > { %v1536_v28 = vsel %vm393_vm8, %v1533_v55, %v1535_v30  ;;  %v1537_v45 = vsel %vm393_vm8, %v1535_v30, %v1533_v55 }
 0xc97   : > { %2239 = vmatprep.subr.msk.bf16.mxu0 %vm2237_vm7, %v2238_v2  ;;  %v1538_v27 = vmul.f32 %v3153_v59, %v1536_v28  ;;  %v1539_v10 = vmul.f32 %v3156_v56, %v1537_v45 }
 0xc98   : > { %2242 = vmatpush1.bf16.msk.msra.mxu0 %vm2237_vm7, %v2241_v43  ;;  %v1541_v7 = vpop.permute.xlu1 %1540 }
 0xc99   : > { %v1543_v58 = vpop.permute.xlu0 %1542 }
 0xc9a   : > { %v1544_v44 = vsel %vm405_vm9, %v1541_v7, %v1543_v58  ;;  %v1545_v46 = vsel %vm405_vm9, %v1543_v58, %v1541_v7 }
 0xc9b   : > { %v1546_v49 = vmul.f32 %v3159_v19, %v1544_v44  ;;  %v1547_v54 = vmul.f32 %v3162_v22, %v1545_v46 }
 0xc9c   : > { %v1549_v60 = vpop.permute.xlu1 %1548 }
 0xc9d   : > { %v1562_v62 = vpack.c.bf16 %v1546_v49, %v1538_v27  ;;  %v1551_v63 = vpop.permute.xlu0 %1550  ;;  %v1563_v0 = vpack.c.bf16 %v1547_v54, %v1539_v10 }
 0xc9e   : > { %v1552_v61 = vsel %vm417_vm10, %v1549_v60, %v1551_v63  ;;  %v1553_v21 = vsel %vm417_vm10, %v1551_v63, %v1549_v60 }
 0xc9f   : > { %v1554_v20 = vmul.f32 %v3169_v38, %v1552_v61  ;;  %v1555_v53 = vmul.f32 %v3172_v42, %v1553_v21  ;;  %1586 = vmatprep.subr.bf16.mxu0 %v1563_v0 }
 0xca0   : > { %1587 = vmatpush1.bf16.msra.mxu0 %v1562_v62 }
 0xca1   : > { %v1564_v9 = vpack.c.bf16 %v1554_v20, %v1554_v20  ;;  %v1565_v17 = vpack.c.bf16 %v1555_v53, %v1555_v53 }
 0xca3   : > { %2243 = vmatprep.subr.msk.bf16.mxu0 %vm444_vm11, %v1565_v17  ;;  %v1575_v23 = vsel %vm444_vm11, %v1564_v9, 0 }
 0xca4   : > { %1589 = vmatpush1.bf16.msra.mxu0 %v1575_v23 }
 0xca7   : > { %2244 = vmatmul.mubr.msk.bf16.vlgmr.msra.gmra.mrb[16].mxu0 %vm440_vm12, %v2236_v25 }
 0xca8   : > { %1882 = vmatprep.mubr.bf16.mxu0 %v2428_v14 }
 0xcad   : > { %v1569_v26 = vpop.permute.xlu1 %1568 }
 0xd7a   : > { %v1614_v37 = vpop.f32.mrb[16].mxu0 }
 0xd7b   : > { %v1615_v41 = vadd.f32 %v1614_v37, %v1569_v26  ;;  %v1616_v31 = vpop.f32.mrb[17].mxu0 }
 0xd7c   : > { %v1617_v33 = vadd.f32 %v1616_v31, %v1569_v26  ;;  %v1618_v51 = vpop.f32.mrb[18].mxu0 }
 0xd7d   : > { %v3459_v52 = vmax.f32 %v1615_v41, 0.0  ;;  %v1619_v35 = vpop.f32.mrb[19].mxu0 }
 0xd7e   : > { %v1622_v48 = vmax.f32 %v1617_v33, 0.0 }
 0xd7f   : > { %1627 = vrot.lane.b32.xlu0 %v3459_v52, %s2423_s14 }
 0xd80   : > { %1629 = vrot.lane.b32.xlu1 %v1622_v48, %s2423_s14 }
 0xd83   : > { %1635 = vrot.lane.b32.xlu0 %v3459_v52, %s2422_s24 }
 0xd84   : > { %1637 = vrot.lane.b32.xlu1 %v1622_v48, %s2422_s24 }
 0xd87   : > { %1643 = vrot.lane.b32.xlu0 %v3459_v52, %s2424_s15 }
 0xd88   : > { %1645 = vrot.lane.b32.xlu1 %v1622_v48, %s2424_s15 }
 0xd8b   : > { %1651 = vrot.lane.b32.xlu0 %v3459_v52, %s2425_s16 }
 0xd8c   : > { %1653 = vrot.lane.b32.xlu1 %v1622_v48, %s2425_s16 }
 0xd8f   : > { %1659 = vrot.lane.b32.xlu0 %v3459_v52, %s2426_s17 }
 0xd90   : > { %1661 = vrot.lane.b32.xlu1 %v1622_v48, %s2426_s17 }
 0xd93   : > { %1667 = vrot.lane.b32.xlu0 %v3459_v52, %s2427_s18 }
 0xd94   : > { %1669 = vrot.lane.b32.xlu1 %v1622_v48, %s2427_s18 }
 0xd97   : > { %1675 = vrot.lane.b32.xlu0 %v3459_v52, %s2429_s19 }
 0xd98   : > { %1677 = vrot.lane.b32.xlu1 %v1622_v48, %s2429_s19 }
 0xd9b   : > { %1683 = vrot.lane.b32.xlu0 %v3459_v52, %s2430_s20 }
 0xd9c   : > { %1685 = vrot.lane.b32.xlu1 %v1622_v48, %s2430_s20 }
 0xd9f   : > { %1703 = vperm.xlu0 %2300, %v1626_v32  }
 0xdf1   : > { %v1628_v34 = vpop.permute.xlu0 %1627 }
 0xdf2   : > { %v1630_v50 = vpop.permute.xlu1 %1629 }
 0xdf3   : > { %v1631_v40 = vsel %vm334_vm1, %v1628_v34, %v1630_v50  ;;  %v1632_v4 = vsel %vm334_vm1, %v1630_v50, %v1628_v34 }
 0xdf4   : > { %v1633_v43 = vmul.f32 %v3101_v8, %v1632_v4  ;;  %v1634_v30 = vmul.f32 %v3104_v15, %v1631_v40  ;;  %v2245_v4 = vld [vmem:[%s3761_s2 + $0x24] sm:$0xf] }
 0xdf5   : > { %v1636_v1 = vpop.permute.xlu0 %1635 }
 0xdf6   : > { %v1638_v12 = vpop.permute.xlu1 %1637 }
 0xdf7   : > { %v1639_v55 = vsel %vm345_vm2, %v1636_v1, %v1638_v12  ;;  %v1640_v2 = vsel %vm345_vm2, %v1638_v12, %v1636_v1 }
 0xdf8   : > { %v1641_v28 = vmul.f32 %v3107_v18, %v1640_v2  ;;  %v1642_v45 = vmul.f32 %v3110_v24, %v1639_v55 }
 0xdf9   : > { %v1644_v7 = vpop.permute.xlu0 %1643 }
 0xdfa   : > { %v1691_v58 = vpack.c.bf16 %v1641_v28, %v1633_v43  ;;  %v1646_v44 = vpop.permute.xlu1 %1645  ;;  %v1692_v46 = vpack.c.bf16 %v1642_v45, %v1634_v30 }
 0xdfb   : > { %v1647_v27 = vsel %vm357_vm3, %v1644_v7, %v1646_v44  ;;  %v1648_v10 = vsel %vm357_vm3, %v1646_v44, %v1644_v7 }
 0xdfc   : > { %1715 = vmatprep.subr.bf16.mxu1 %v1692_v46  ;;  %v1649_v24 = vmul.f32 %v3121_v36, %v1648_v10  ;;  %v1650_v54 = vmul.f32 %v3124_v6, %v1647_v27 }
 0xdfd   : > { %1716 = vmatpush1.bf16.msra.mxu1 %v1691_v58  ;;  %v1652_v49 = vpop.permute.xlu0 %1651 }
 0xdfe   : > { %v1654_v8 = vpop.permute.xlu1 %1653 }
 0xdff   : > { %v1655_v15 = vsel %vm369_vm4, %v1652_v49, %v1654_v8  ;;  %v1656_v18 = vsel %vm369_vm4, %v1654_v8, %v1652_v49  ;;  %v3585_v8 = vld [vmem:[#allocation4] sm:$0xff] }
 0xe00   : > { %v1657_v60 = vmul.f32 %v3127_v47, %v1656_v18  ;;  %v1658_v62 = vmul.f32 %v3130_v11, %v1655_v15  ;;  %v3588_v18 = vld [vmem:[#allocation4 + $0x8] sm:$0xff] }
 0xe01   : > { %v1660_v63 = vpop.permute.xlu0 %1659 }
 0xe02   : > { %v1693_v0 = vpack.c.bf16 %v1657_v60, %v1649_v24  ;;  %v1662_v61 = vpop.permute.xlu1 %1661  ;;  %v1694_v21 = vpack.c.bf16 %v1658_v62, %v1650_v54  ;;  %v3591_v54 = vld [vmem:[#allocation4 + $0x10] sm:$0xff]  ;;  %v3594_v62 = vld [vmem:[#allocation4 + $0x18] sm:$0xff] }
 0xe03   : > { %v1663_v20 = vsel %vm381_vm5, %v1660_v63, %v1662_v61  ;;  %v1664_v53 = vsel %vm381_vm5, %v1662_v61, %v1660_v63 }
 0xe04   : > { %v1665_v9 = vmul.f32 %v3137_v5, %v1663_v20  ;;  %v1666_v36 = vmul.f32 %v3140_v13, %v1664_v53  ;;  %1717 = vmatprep.subr.bf16.mxu1 %v1694_v21 }
 0xe05   : > { %1718 = vmatpush1.bf16.msra.mxu1 %v1693_v0  ;;  %v1668_v6 = vpop.permute.xlu0 %1667 }
 0xe06   : > { %v1695_v47 = vpack.c.bf16 %v1665_v9, %v3459_v52  ;;  %v1670_v11 = vpop.permute.xlu1 %1669  ;;  %v1696_v17 = vpack.c.bf16 %v1666_v36, %v1622_v48 }
 0xe07   : > { %v1671_v23 = vsel %vm393_vm8, %v1668_v6, %v1670_v11  ;;  %v1672_v25 = vsel %vm393_vm8, %v1670_v11, %v1668_v6 }
 0xe08   : > { %1719 = vmatprep.subr.bf16.mxu1 %v1696_v17  ;;  %v1673_v41 = vmul.f32 %v3153_v59, %v1671_v23  ;;  %v1674_v31 = vmul.f32 %v3156_v56, %v1672_v25  ;;  %v3605_v17 = vld [vmem:[#allocation4 + $0x20] sm:$0xff]  ;;  %v3608_v25 = vld [vmem:[#allocation4 + $0x28] sm:$0xff] }
 0xe09   : > { %1720 = vmatpush1.bf16.msra.mxu1 %v1695_v47  ;;  %v1676_v26 = vpop.permute.xlu0 %1675 }
 0xe0a   : > { %v1678_v37 = vpop.permute.xlu1 %1677 }
 0xe0b   : > { %v1679_v5 = vsel %vm405_vm9, %v1676_v26, %v1678_v37  ;;  %v1680_v13 = vsel %vm405_vm9, %v1678_v37, %v1676_v26  ;;  %v3611_v37 = vld [vmem:[#allocation4 + $0x30] sm:$0xff] }
 0xe0c   : > { %v1681_v33 = vmul.f32 %v3159_v19, %v1679_v5  ;;  %v1682_v51 = vmul.f32 %v3162_v22, %v1680_v13  ;;  %v3614_v13 = vld [vmem:[#allocation4 + $0x38] sm:$0xff] }
 0xe0d   : > { %v1684_v52 = vpop.permute.xlu0 %1683 }
 0xe0e   : > { %v1697_v35 = vpack.c.bf16 %v1681_v33, %v1673_v41  ;;  %v1686_v48 = vpop.permute.xlu1 %1685  ;;  %v1698_v32 = vpack.c.bf16 %v1682_v51, %v1674_v31 }
 0xe0f   : > { %v1687_v34 = vsel %vm417_vm10, %v1684_v52, %v1686_v48  ;;  %v1688_v50 = vsel %vm417_vm10, %v1686_v48, %v1684_v52 }
 0xe10   : > { %v1689_v40 = vmul.f32 %v3169_v38, %v1687_v34  ;;  %v1690_v59 = vmul.f32 %v3172_v42, %v1688_v50  ;;  %1721 = vmatprep.subr.bf16.mxu1 %v1698_v32  ;;  %v3621_v32 = vld [vmem:[#allocation4 + $0x50] sm:$0xff]  ;;  %v3624_v50 = vld [vmem:[#allocation4 + $0x58] sm:$0xff] }
 0xe11   : > { %1722 = vmatpush1.bf16.msra.mxu1 %v1697_v35 }
 0xe12   : > { %v1699_v56 = vpack.c.bf16 %v1689_v40, %v1689_v40  ;;  %v1700_v19 = vpack.c.bf16 %v1690_v59, %v1690_v59 }
 0xe14   : > { %2246 = vmatprep.subr.msk.bf16.mxu1 %vm444_vm11, %v1700_v19  ;;  %v1710_v22 = vsel %vm444_vm11, %v1699_v56, 0 }
 0xe15   : > { %1724 = vmatpush1.bf16.msra.mxu1 %v1710_v22 }
 0xe18   : > { %2247 = vmatmul.mubr.msk.bf16.vlgmr.msra.gmra.mrb[16].mxu1 %vm440_vm12, %v2245_v4 }
 0xe19   : > { %2017 = vmatprep.mubr.bf16.mxu1 %v2428_v14  ;;  %v1761_v14 = vld [vmem:[#allocation2 + $0x50] sm:$0xff] }
 0xe1e   : > { %v1704_v38 = vpop.permute.xlu0 %1703 }
 0xeeb   : > { %v1749_v1 = vpop.f32.mrb[16].mxu1 }
 0xeec   : > { %v1750_v42 = vadd.f32 %v1749_v1, %v1704_v38  ;;  %v1751_v12 = vpop.f32.mrb[17].mxu1 }
 0xeed   : > { %v1752_v55 = vadd.f32 %v1751_v12, %v1704_v38  ;;  %v1753_v2 = vpop.f32.mrb[18].mxu1 }
 0xeee   : > { %v3541_v43 = vmax.f32 %v1750_v42, 0.0  ;;  %v1754_v30 = vpop.f32.mrb[19].mxu1  ;;  %v3637_v2 = vld [vmem:[#allocation4 + $0x60] sm:$0xff] }
 0xeef   : > { %v3543_v28 = vmax.f32 %v1752_v55, 0.0  ;;  %v3640_v30 = vld [vmem:[#allocation4 + $0x68] sm:$0xff] }
 0xef0   : > { %1762 = vrot.lane.b32.xlu1 %v3541_v43, %s2423_s14 }
 0xef1   : > { %1764 = vrot.lane.b32.xlu0 %v3543_v28, %s2423_s14 }
 0xef4   : > { %1770 = vrot.lane.b32.xlu1 %v3541_v43, %s2422_s24 }
 0xef5   : > { %1772 = vrot.lane.b32.xlu0 %v3543_v28, %s2422_s24 }
 0xef8   : > { %1778 = vrot.lane.b32.xlu1 %v3541_v43, %s2424_s15 }
 0xef9   : > { %1780 = vrot.lane.b32.xlu0 %v3543_v28, %s2424_s15 }
 0xefc   : > { %1786 = vrot.lane.b32.xlu1 %v3541_v43, %s2425_s16 }
 0xefd   : > { %1788 = vrot.lane.b32.xlu0 %v3543_v28, %s2425_s16 }
 0xf00   : > { %1794 = vrot.lane.b32.xlu1 %v3541_v43, %s2426_s17 }
 0xf01   : > { %1796 = vrot.lane.b32.xlu0 %v3543_v28, %s2426_s17 }
 0xf04   : > { %1802 = vrot.lane.b32.xlu1 %v3541_v43, %s2427_s18 }
 0xf05   : > { %1804 = vrot.lane.b32.xlu0 %v3543_v28, %s2427_s18 }
 0xf08   : > { %1810 = vrot.lane.b32.xlu1 %v3541_v43, %s2429_s19 }
 0xf09   : > { %1812 = vrot.lane.b32.xlu0 %v3543_v28, %s2429_s19 }
 0xf0c   : > { %1818 = vrot.lane.b32.xlu1 %v3541_v43, %s2430_s20 }
 0xf0d   : > { %1820 = vrot.lane.b32.xlu0 %v3543_v28, %s2430_s20 }
 0xf10   : > { %1838 = vperm.xlu1 %2301, %v1761_v14   ;;  %v3643_v14 = vld [vmem:[#allocation4 + $0x70] sm:$0xff] }
 0xf62   : > { %v1763_v45 = vpop.permute.xlu1 %1762 }
 0xf63   : > { %v1765_v7 = vpop.permute.xlu0 %1764 }
 0xf64   : > { %v1766_v58 = vsel %vm334_vm1, %v1763_v45, %v1765_v7  ;;  %v1767_v44 = vsel %vm334_vm1, %v1765_v7, %v1763_v45  ;;  %v3646_v7 = vld [vmem:[#allocation4 + $0x78] sm:$0xff] }
 0xf65   : > { %v1768_v15 = vmul.f32 %v3585_v8, %v1767_v44  ;;  %v1769_v24 = vmul.f32 %v3588_v18, %v1766_v58 }
 0xf66   : > { %v1771_v46 = vpop.permute.xlu1 %1770 }
 0xf67   : > { %v1773_v27 = vpop.permute.xlu0 %1772 }
 0xf68   : > { %v1774_v10 = vsel %vm345_vm2, %v1771_v46, %v1773_v27  ;;  %v1775_v49 = vsel %vm345_vm2, %v1773_v27, %v1771_v46 }
 0xf69   : > { %v1776_v60 = vmul.f32 %v3591_v54, %v1775_v49  ;;  %v1777_v63 = vmul.f32 %v3594_v62, %v1774_v10 }
 0xf6a   : > { %v1779_v0 = vpop.permute.xlu1 %1778 }
 0xf6b   : > { %v1826_v61 = vpack.c.bf16 %v1776_v60, %v1768_v15  ;;  %v1781_v21 = vpop.permute.xlu0 %1780  ;;  %v1827_v20 = vpack.c.bf16 %v1777_v63, %v1769_v24  ;;  %v3653_v24 = vld [vmem:[#allocation4 + $0x80] sm:$0xff]  ;;  %v3656_v63 = vld [vmem:[#allocation4 + $0x88] sm:$0xff] }
 0xf6c   : > { %v1782_v53 = vsel %vm357_vm3, %v1779_v0, %v1781_v21  ;;  %v1783_v9 = vsel %vm357_vm3, %v1781_v21, %v1779_v0 }
 0xf6d   : > { %1850 = vmatprep.subr.bf16.mxu0 %v1827_v20  ;;  %v1784_v23 = vmul.f32 %v3605_v17, %v1783_v9  ;;  %v1785_v26 = vmul.f32 %v3608_v25, %v1782_v53  ;;  %v2248_v53 = vld [vmem:[%s3761_s2 + $0x28] sm:$0xf] }
 0xf6e   : > { %1851 = vmatpush1.bf16.msra.mxu0 %v1826_v61  ;;  %v1787_v36 = vpop.permute.xlu1 %1786 }
 0xf6f   : > { %v1789_v6 = vpop.permute.xlu0 %1788 }
 0xf70   : > { %v1790_v47 = vsel %vm369_vm4, %v1787_v36, %v1789_v6  ;;  %v1791_v11 = vsel %vm369_vm4, %v1789_v6, %v1787_v36 }
 0xf71   : > { %v1792_v5 = vmul.f32 %v3611_v37, %v1791_v11  ;;  %v1793_v41 = vmul.f32 %v3614_v13, %v1790_v47 }
 0xf72   : > { %v1795_v31 = vpop.permute.xlu1 %1794 }
 0xf73   : > { %v1828_v33 = vpack.c.bf16 %v1792_v5, %v1784_v23  ;;  %v1797_v51 = vpop.permute.xlu0 %1796  ;;  %v1829_v52 = vpack.c.bf16 %v1793_v41, %v1785_v26 }
 0xf74   : > { %v1798_v35 = vsel %vm381_vm5, %v1795_v31, %v1797_v51  ;;  %v1799_v48 = vsel %vm381_vm5, %v1797_v51, %v1795_v31  ;;  %v1896_v31 = vld [vmem:[#allocation2 + $0x58] sm:$0xff] }
 0xf75   : > { %v1800_v34 = vmul.f32 %v3621_v32, %v1798_v35  ;;  %v1801_v40 = vmul.f32 %v3624_v50, %v1799_v48  ;;  %1852 = vmatprep.subr.bf16.mxu0 %v1829_v52 }
 0xf76   : > { %1853 = vmatpush1.bf16.msra.mxu0 %v1828_v33  ;;  %v1803_v59 = vpop.permute.xlu1 %1802 }
 0xf77   : > { %v1830_v56 = vpack.c.bf16 %v1800_v34, %v3541_v43  ;;  %v1805_v19 = vpop.permute.xlu0 %1804  ;;  %v1831_v22 = vpack.c.bf16 %v1801_v40, %v3543_v28 }
 0xf78   : > { %v1806_v4 = vsel %vm393_vm8, %v1803_v59, %v1805_v19  ;;  %v1807_v38 = vsel %vm393_vm8, %v1805_v19, %v1803_v59 }
 0xf79   : > { %1854 = vmatprep.subr.bf16.mxu0 %v1831_v22  ;;  %v1808_v43 = vmul.f32 %v3637_v2, %v1806_v4  ;;  %v1809_v28 = vmul.f32 %v3640_v30, %v1807_v38 }
 0xf7a   : > { %1855 = vmatpush1.bf16.msra.mxu0 %v1830_v56  ;;  %v1811_v1 = vpop.permute.xlu1 %1810 }
 0xf7b   : > { %v1813_v42 = vpop.permute.xlu0 %1812 }
 0xf7c   : > { %v1814_v12 = vsel %vm405_vm9, %v1811_v1, %v1813_v42  ;;  %v1815_v55 = vsel %vm405_vm9, %v1813_v42, %v1811_v1 }
 0xf7d   : > { %v1816_v45 = vmul.f32 %v3643_v14, %v1814_v12  ;;  %v1817_v58 = vmul.f32 %v3646_v7, %v1815_v55 }
 0xf7e   : > { %v1819_v44 = vpop.permute.xlu1 %1818 }
 0xf7f   : > { %v1832_v46 = vpack.c.bf16 %v1816_v45, %v1808_v43  ;;  %v1821_v27 = vpop.permute.xlu0 %1820  ;;  %v1833_v10 = vpack.c.bf16 %v1817_v58, %v1809_v28 }
 0xf80   : > { %v1822_v49 = vsel %vm417_vm10, %v1819_v44, %v1821_v27  ;;  %v1823_v15 = vsel %vm417_vm10, %v1821_v27, %v1819_v44 }
 0xf81   : > { %v1824_v60 = vmul.f32 %v3653_v24, %v1822_v49  ;;  %v1825_v0 = vmul.f32 %v3656_v63, %v1823_v15  ;;  %1856 = vmatprep.subr.bf16.mxu0 %v1833_v10 }
 0xf82   : > { %1857 = vmatpush1.bf16.msra.mxu0 %v1832_v46 }
 0xf83   : > { %v1834_v61 = vpack.c.bf16 %v1824_v60, %v1824_v60  ;;  %v1835_v21 = vpack.c.bf16 %v1825_v0, %v1825_v0 }
 0xf85   : > { %2249 = vmatprep.subr.msk.bf16.mxu0 %vm444_vm11, %v1835_v21  ;;  %v1845_v20 = vsel %vm444_vm11, %v1834_v61, 0 }
 0xf86   : > { %1859 = vmatpush1.bf16.msra.mxu0 %v1845_v20 }
 0xf89   : > { %2250 = vmatmul.mubr.msk.bf16.vlgmr.msra.gmra.mrb[20].mxu0 %vm440_vm12, %v2248_v53 }
 0xf8f   : > { %v1839_v9 = vpop.permute.xlu1 %1838 }
0x105c   : > { %v1884_v36 = vpop.f32.mrb[20].mxu0 }
0x105d   : > { %v1885_v6 = vadd.f32 %v1884_v36, %v1839_v9  ;;  %v1886_v47 = vpop.f32.mrb[21].mxu0 }
0x105e   : > { %v1887_v11 = vadd.f32 %v1886_v47, %v1839_v9  ;;  %v1888_v23 = vpop.f32.mrb[22].mxu0 }
0x105f   : > { %v3665_v26 = vmax.f32 %v1885_v6, 0.0  ;;  %v1889_v5 = vpop.f32.mrb[23].mxu0 }
0x1060   : > { %v1892_v41 = vmax.f32 %v1887_v11, 0.0 }
0x1061   : > { %1897 = vrot.lane.b32.xlu0 %v3665_v26, %s2423_s14 }
0x1062   : > { %1899 = vrot.lane.b32.xlu1 %v1892_v41, %s2423_s14 }
0x1065   : > { %1905 = vrot.lane.b32.xlu0 %v3665_v26, %s2422_s24 }
0x1066   : > { %1907 = vrot.lane.b32.xlu1 %v1892_v41, %s2422_s24 }
0x1069   : > { %1913 = vrot.lane.b32.xlu0 %v3665_v26, %s2424_s15 }
0x106a   : > { %1915 = vrot.lane.b32.xlu1 %v1892_v41, %s2424_s15 }
0x106d   : > { %1921 = vrot.lane.b32.xlu0 %v3665_v26, %s2425_s16 }
0x106e   : > { %1923 = vrot.lane.b32.xlu1 %v1892_v41, %s2425_s16 }
0x1071   : > { %1929 = vrot.lane.b32.xlu0 %v3665_v26, %s2426_s17 }
0x1072   : > { %1931 = vrot.lane.b32.xlu1 %v1892_v41, %s2426_s17  ;;  %s300_s17 = scalar_lea.vmem %s3764_s5, %s2552_s27 }
0x1075   : > { %1937 = vrot.lane.b32.xlu0 %v3665_v26, %s2427_s18 }
0x1076   : > { %1939 = vrot.lane.b32.xlu1 %v1892_v41, %s2427_s18 }
0x1079   : > { %1945 = vrot.lane.b32.xlu0 %v3665_v26, %s2429_s19 }
0x107a   : > { %1947 = vrot.lane.b32.xlu1 %v1892_v41, %s2429_s19 }
0x107d   : > { %1953 = vrot.lane.b32.xlu0 %v3665_v26, %s2430_s20 }
0x107e   : > { %1955 = vrot.lane.b32.xlu1 %v1892_v41, %s2430_s20 }
0x1081   : > { %1973 = vperm.xlu0 %2300, %v1896_v31  }
0x10d3   : > { %v1898_v33 = vpop.permute.xlu0 %1897 }
0x10d4   : > { %v1900_v51 = vpop.permute.xlu1 %1899 }
0x10d5   : > { %v1901_v52 = vsel %vm334_vm1, %v1898_v33, %v1900_v51  ;;  %v1902_v35 = vsel %vm334_vm1, %v1900_v51, %v1898_v33 }
0x10d6   : > { %v1903_v56 = vmul.f32 %v3585_v8, %v1902_v35  ;;  %v1904_v19 = vmul.f32 %v3588_v18, %v1901_v52  ;;  %v2251_v52 = vld [vmem:[%s3761_s2 + $0x2c] sm:$0xf] }
0x10d7   : > { %v1906_v48 = vpop.permute.xlu0 %1905 }
0x10d8   : > { %v1908_v34 = vpop.permute.xlu1 %1907 }
0x10d9   : > { %v1909_v40 = vsel %vm345_vm2, %v1906_v48, %v1908_v34  ;;  %v1910_v59 = vsel %vm345_vm2, %v1908_v34, %v1906_v48 }
0x10da   : > { %v1911_v22 = vmul.f32 %v3591_v54, %v1910_v59  ;;  %v1912_v4 = vmul.f32 %v3594_v62, %v1909_v40 }
0x10db   : > { %v1914_v38 = vpop.permute.xlu0 %1913 }
0x10dc   : > { %v1961_v1 = vpack.c.bf16 %v1911_v22, %v1903_v56  ;;  %v1916_v42 = vpop.permute.xlu1 %1915  ;;  %v1962_v12 = vpack.c.bf16 %v1912_v4, %v1904_v19 }
0x10dd   : > { %v1917_v55 = vsel %vm357_vm3, %v1914_v38, %v1916_v42  ;;  %v1918_v43 = vsel %vm357_vm3, %v1916_v42, %v1914_v38 }
0x10de   : > { %1985 = vmatprep.subr.bf16.mxu1 %v1962_v12  ;;  %v1919_v62 = vmul.f32 %v3605_v17, %v1918_v43  ;;  %v1920_v45 = vmul.f32 %v3608_v25, %v1917_v55 }
0x10df   : > { %1986 = vmatpush1.bf16.msra.mxu1 %v1961_v1  ;;  %v1922_v28 = vpop.permute.xlu0 %1921 }
0x10e0   : > { %v1924_v8 = vpop.permute.xlu1 %1923 }
0x10e1   : > { %v1925_v18 = vsel %vm369_vm4, %v1922_v28, %v1924_v8  ;;  %v1926_v54 = vsel %vm369_vm4, %v1924_v8, %v1922_v28 }
0x10e2   : > { %v1927_v58 = vmul.f32 %v3611_v37, %v1926_v54  ;;  %v1928_v44 = vmul.f32 %v3614_v13, %v1925_v18 }
0x10e3   : > { %v1930_v46 = vpop.permute.xlu0 %1929 }
0x10e4   : > { %v1963_v27 = vpack.c.bf16 %v1927_v58, %v1919_v62  ;;  %v1932_v10 = vpop.permute.xlu1 %1931  ;;  %v1964_v49 = vpack.c.bf16 %v1928_v44, %v1920_v45 }
0x10e5   : > { %v1933_v15 = vsel %vm381_vm5, %v1930_v46, %v1932_v10  ;;  %v1934_v60 = vsel %vm381_vm5, %v1932_v10, %v1930_v46 }
0x10e6   : > { %v1935_v0 = vmul.f32 %v3621_v32, %v1933_v15  ;;  %v1936_v17 = vmul.f32 %v3624_v50, %v1934_v60  ;;  %1987 = vmatprep.subr.bf16.mxu1 %v1964_v49 }
0x10e7   : > { %1988 = vmatpush1.bf16.msra.mxu1 %v1963_v27  ;;  %v1938_v25 = vpop.permute.xlu0 %1937 }
0x10e8   : > { %v1965_v37 = vpack.c.bf16 %v1935_v0, %v3665_v26  ;;  %v1940_v13 = vpop.permute.xlu1 %1939  ;;  %v1966_v61 = vpack.c.bf16 %v1936_v17, %v1892_v41 }
0x10e9   : > { %v1941_v21 = vsel %vm393_vm8, %v1938_v25, %v1940_v13  ;;  %v1942_v20 = vsel %vm393_vm8, %v1940_v13, %v1938_v25 }
0x10ea   : > { %1989 = vmatprep.subr.bf16.mxu1 %v1966_v61  ;;  %v1943_v36 = vmul.f32 %v3637_v2, %v1941_v21  ;;  %v1944_v6 = vmul.f32 %v3640_v30, %v1942_v20 }
0x10eb   : > { %1990 = vmatpush1.bf16.msra.mxu1 %v1965_v37  ;;  %v1946_v53 = vpop.permute.xlu0 %1945 }
0x10ec   : > { %v1948_v9 = vpop.permute.xlu1 %1947 }
0x10ed   : > { %v1949_v32 = vsel %vm405_vm9, %v1946_v53, %v1948_v9  ;;  %v1950_v50 = vsel %vm405_vm9, %v1948_v9, %v1946_v53 }
0x10ee   : > { %v1951_v47 = vmul.f32 %v3643_v14, %v1949_v32  ;;  %v1952_v11 = vmul.f32 %v3646_v7, %v1950_v50 }
0x10ef   : > { %v1954_v23 = vpop.permute.xlu0 %1953 }
0x10f0   : > { %v1967_v26 = vpack.c.bf16 %v1951_v47, %v1943_v36  ;;  %v1956_v5 = vpop.permute.xlu1 %1955  ;;  %v1968_v41 = vpack.c.bf16 %v1952_v11, %v1944_v6 }
0x10f1   : > { %v1957_v31 = vsel %vm417_vm10, %v1954_v23, %v1956_v5  ;;  %v1958_v33 = vsel %vm417_vm10, %v1956_v5, %v1954_v23 }
0x10f2   : > { %v1959_v51 = vmul.f32 %v3653_v24, %v1957_v31  ;;  %v1960_v2 = vmul.f32 %v3656_v63, %v1958_v33  ;;  %1991 = vmatprep.subr.bf16.mxu1 %v1968_v41 }
0x10f3   : > { %1992 = vmatpush1.bf16.msra.mxu1 %v1967_v26 }
0x10f4   : > { %v1969_v30 = vpack.c.bf16 %v1959_v51, %v1959_v51  ;;  %v1970_v14 = vpack.c.bf16 %v1960_v2, %v1960_v2 }
0x10f6   : > { %2252 = vmatprep.subr.msk.bf16.mxu1 %vm444_vm11, %v1970_v14  ;;  %v1980_v7 = vsel %vm444_vm11, %v1969_v30, 0 }
0x10f7   : > { %1994 = vmatpush1.bf16.msra.mxu1 %v1980_v7 }
0x10fa   : > { %2253 = vmatmul.mubr.msk.bf16.vlgmr.msra.gmra.mrb[20].mxu1 %vm440_vm12, %v2251_v52 }
0x1100   : > { %v1974_v16 = vpop.permute.xlu0 %1973 }
0x11cd   : > { %v2019_v24 = vpop.f32.mrb[20].mxu1 }
0x11ce   : > { %v2020_v35 = vadd.f32 %v2019_v24, %v1974_v16  ;;  %v2021_v63 = vpop.f32.mrb[21].mxu1 }
0x11cf   : > { %v2022_v48 = vadd.f32 %v2021_v63, %v1974_v16  ;;  %v2023_v34 = vpop.f32.mrb[22].mxu1 }
0x11d0   : > { %v2026_v40 = vadd.f32 %v2020_v35, %v3366_v29  ;;  %v2024_v59 = vpop.f32.mrb[23].mxu1 }
0x11d1   : > { %v2027_v56 = vadd.f32 %v2022_v48, %v3368_v57 }
0x11d3   : > { %v2030_v19 = vcombine.low %v2026_v40, %v2027_v56 }
0x11d5   : > { %v2037_v22 = vrot.slane %v2030_v19, %v3349_v3 }
0x11d7   : > { %v2044_v4 = vrot.slane %v2037_v22, %v3349_v3 }
0x11d9   : > { %2050 = vst.msk [vmem:[%s300_s17] sm:$0x3] %vm3357_vm15, %v2044_v4 }
0x11da PF: > { %s19_s21 = sadd.s32 1, %s2414_s21  }
0x11db   : > { %p16_p5 = scmp.ge.s32.totalorder %s19_s21, 4  }
0x11dd   :  { %18 = sbr.rel (!%p16_p5) target bundleno = 2 (0x2), region = 123 }
0x11e4   :  { %2103 = vsyncpa [#allocation3], 1 }
0x11e5   :  { %2105 = vsyncpa [#allocation3 + $0x1], 1 }
0x11e6   :  { %2106 = vsyncpa [#allocation5], 1 }

</bundles_post_ra>
